<compile_context>
chip_gen: v6e
topology: v6e:2x2x1
jax: 0.10.0
libtpu: 0.0.40
codegen_flags: <defaults>
</compile_context>

<pallas_src>
import numpy as np

import jax
import jax.numpy as jnp
from jax import lax
from jax.experimental import pallas as pl
from jax.experimental.pallas import tpu as pltpu

EPS = 1e-5  # PyTorch GroupNorm default eps


# ----------------------------- fused Pallas kernel ---------------------------


def _make_aspp_kernel(h, w, cin, cout, mid, dilations, groups):
    hw = h * w
    nd = len(dilations)
    cpg = cout // groups
    kpool = cin * (1 + 9 * nd)          # start of the pooled (global-branch) rows
    inv_hw = 1.0 / hw
    inv_cnt = 1.0 / (cpg * hw)

    def kernel(x_ref, wblk_ref, gmat_ref, mask_ref, gamma_ref, beta_ref,
               fc1wT_ref, fc1b_ref, fc2wT_ref, fc2b_ref, fw_ref, fb_ref,
               o_ref, t_ref):
        x = x_ref[0]                                    # (Cin, HW) f32
        xb = x.astype(jnp.bfloat16)

        # ---- build the tap tensor T (Ktot, HW) bf16 in VMEM -----------------
        # rows [0:Cin]            : x                (1x1 branch)
        # rows [Cin + (9*di+t)*Cin): shifted/masked x (dilated branches)
        # rows [kpool : kpool+Cin]: broadcast(mean(x)) (global branch)
        t_ref[pl.ds(0, cin), :] = xb
        pooled = jnp.sum(x, axis=1, keepdims=True) * inv_hw            # (Cin,1) f32
        t_ref[pl.ds(kpool, cin), :] = jnp.broadcast_to(
            pooled.astype(jnp.bfloat16), (cin, hw))

        for di, d in enumerate(dilations):
            for t in range(9):
                ky, kx = divmod(t, 3)
                s = (ky - 1) * d * w + (kx - 1) * d     # flat tap offset
                off = cin + (di * 9 + t) * cin
                if s == 0:                              # center tap: mask == 1
                    t_ref[pl.ds(off, cin), :] = xb
                else:
                    # XLU lane rotation; the hoisted (row & col validity) mask
                    # zeroes wrapped and out-of-image taps.  Mask in f32, then
                    # one bf16 cast (v5e has no bf16 VALU).
                    rolled = pltpu.roll(x, shift=(-s) % hw, axis=1)
                    t_ref[pl.ds(off, cin), :] = (
                        rolled * mask_ref[di * 9 + t]).astype(jnp.bfloat16)

        # ---- every branch conv: ONE block-diagonal (mid, Ktot) matmul -------
        y = jnp.dot(wblk_ref[...], t_ref[...],
                    preferred_element_type=jnp.float32)                # (mid, HW) f32

        # ---- unified two-pass GroupNorm + ReLU over all 96 channels ---------
        # Groups are adjacent channel pairs (cpg rows) of the stacked cat; the
        # group reduce is a lane-broadcast (mid, mid)x(mid, 128) dot, so no
        # N=1 MXU ops remain and the cost is independent of H*W.
        gmat = gmat_ref[...]
        sc = jnp.sum(y, axis=1, keepdims=True)                         # (mid, 1)
        gsum = jnp.dot(gmat, jnp.broadcast_to(sc, (mid, 128)),
                       preferred_element_type=jnp.float32)[:, 0:1]
        mean = gsum * inv_cnt
        dcen = y - mean
        sq = jnp.sum(dcen * dcen, axis=1, keepdims=True)               # (mid, 1)
        gvar = jnp.dot(gmat, jnp.broadcast_to(sq, (mid, 128)),
                       preferred_element_type=jnp.float32)[:, 0:1] * inv_cnt
        cat = jnp.maximum(
            dcen * lax.rsqrt(gvar + EPS) * gamma_ref[...] + beta_ref[...], 0.0)

        # ---- SE gate (f32, row-oriented) folded into the final 1x1 weight ----
        # per-channel mean of cat, directly in (1, mid) orientation (NT dot).
        pc = lax.dot_general(jnp.full((1, hw), inv_hw, jnp.float32), cat,
                             (((1,), (1,)), ((), ())),
                             preferred_element_type=jnp.float32)        # (1, mid)
        h1 = jnp.maximum(
            jnp.dot(pc, fc1wT_ref[...], preferred_element_type=jnp.float32)
            + fc1b_ref[...], 0.0)                                       # (1, r)
        s_se = jax.nn.sigmoid(
            jnp.dot(h1, fc2wT_ref[...], preferred_element_type=jnp.float32)
            + fc2b_ref[...])                                            # (1, mid)
        # out = Wf @ (cat * (1+s)) == (Wf * (1+s)) @ cat  (diag scaling commutes)
        fw_scaled = (fw_ref[...] * (1.0 + s_se)).astype(jnp.bfloat16)   # (Cout, mid)

        # ---- final 1x1 conv (residual + SE already folded in) ---------------
        o_ref[0] = (jnp.dot(fw_scaled, cat.astype(jnp.bfloat16),
                            preferred_element_type=jnp.float32) + fb_ref[...])

    return kernel


# ----------------------------- pallas_call wrapper ---------------------------


def _const_spec(shape):
    nd = len(shape)
    return pl.BlockSpec(shape, lambda i, _nd=nd: (0,) * _nd)


def aspp_forward(x_nchw, ops, dilations, groups=8):
    n, cin, h, w = x_nchw.shape
    hw = h * w
    mid, ktot = ops["wblk"].shape
    cout = ops["final_w"].shape[0]
    x_flat = x_nchw.reshape(n, cin, hw)          # free reshape, stays NCHW-major

    kernel = _make_aspp_kernel(h, w, cin, cout, mid, dilations, groups)
    args = (x_flat, ops["wblk"], ops["gmat"], ops["masks"],
            ops["gamma"], ops["beta"],
            ops["fc1wT"], ops["fc1b"], ops["fc2wT"], ops["fc2b"],
            ops["final_w"], ops["final_b"])
    in_specs = [pl.BlockSpec((1, cin, hw), lambda i: (i, 0, 0))]
    in_specs += [_const_spec(a.shape) for a in args[1:]]

    out = pl.pallas_call(
        kernel,
        out_shape=jax.ShapeDtypeStruct((n, cout, hw), jnp.float32),
        grid=(n,),
        in_specs=in_specs,
        out_specs=pl.BlockSpec((1, cout, hw), lambda i: (i, 0, 0)),
        scratch_shapes=[pltpu.VMEM((ktot, hw), jnp.bfloat16)],
        compiler_params=pltpu.CompilerParams(dimension_semantics=("parallel",)),
    )(*args)
    return out.reshape(n, cout, h, w)


# ----------------------------- parameter init & packing ----------------------


def init_params(key, cin, cout, dilations, groups=8, se_reduction=16):
    nd = len(dilations)
    mid = (nd + 2) * cout
    r = mid // se_reduction
    keys = iter(jax.random.split(key, 16))

    def nrm(shape, scale=0.1, shift=0.0):
        return jax.random.normal(next(keys), shape, jnp.float32) * scale + shift

    return dict(
        w1x1=nrm((cout, cin)),
        wglob=nrm((cout, cin)),
        wdil=nrm((nd, cout, 3, 3, cin)),           # (o, ky, kx, ci)
        gn_g=nrm((2 + nd, cout), 0.3, 1.0),        # [0]=1x1, [1]=global, [2+i]=dil
        gn_b=nrm((2 + nd, cout), 0.1),
        fc1_w=nrm((r, mid)),
        fc1_b=nrm((r,)),
        fc2_w=nrm((mid, r)),
        fc2_b=nrm((mid,)),
        final_w=nrm((cout, mid)),
        final_b=nrm((cout,)),
    )


def pack_params(p, h, w, dilations, groups=8):
    """Hoist everything static: block-diagonal branch weight, same-group matrix,
    per-tap validity masks, stacked GN affines, transposed SE weights."""
    cout, cin = p["w1x1"].shape
    nd = len(dilations)
    mid = (2 + nd) * cout
    cpg = cout // groups
    ktot = cin * (2 + 9 * nd)
    kpool = cin * (1 + 9 * nd)
    hw = h * w

    # block-diagonal weight (cat row order matches torch.cat: [1x1, global, d...])
    wblk = np.zeros((mid, ktot), np.float32)
    wblk[0:cout, 0:cin] = np.asarray(p["w1x1"])
    wblk[cout:2 * cout, kpool:kpool + cin] = np.asarray(p["wglob"])
    for di in range(nd):
        off = cin + di * 9 * cin
        wblk[(2 + di) * cout:(3 + di) * cout, off:off + 9 * cin] = \
            np.asarray(p["wdil"][di]).reshape(cout, 9 * cin)

    gid = np.arange(mid) // cpg
    gmat = (gid[:, None] == gid[None, :]).astype(np.float32)

    rr = np.arange(hw) // w
    cc = np.arange(hw) % w
    masks = np.zeros((nd * 9, 1, hw), np.float32)
    for di, d in enumerate(dilations):
        for t in range(9):
            ky, kx = divmod(t, 3)
            dy, dx = (ky - 1) * d, (kx - 1) * d
            masks[di * 9 + t, 0] = ((rr + dy >= 0) & (rr + dy < h) &
                                    (cc + dx >= 0) & (cc + dx < w)
                                    ).astype(np.float32)

    return dict(
        wblk=jnp.asarray(wblk, jnp.bfloat16),
        gmat=jnp.asarray(gmat),
        masks=jnp.asarray(masks),
        gamma=p["gn_g"].reshape(mid, 1),
        beta=p["gn_b"].reshape(mid, 1),
        fc1wT=p["fc1_w"].T,                         # (mid, r)
        fc1b=p["fc1_b"].reshape(1, -1),
        fc2wT=p["fc2_w"].T,                         # (r, mid)
        fc2b=p["fc2_b"].reshape(1, -1),
        final_w=p["final_w"],                       # f32; SE-scaled & cast in-kernel
        final_b=p["final_b"].reshape(-1, 1),
    )


# ----------------------------- pure-JAX reference ----------------------------
# Mirrors the kernel's quantization points (bf16 weights/activations at every
# conv matmul with f32 accumulation, f32 GN/SE, SE gate folded into an f32
# final weight that is then cast to bf16).


def ref_forward(x_nchw, p, dilations, groups=8):
    hi = lax.Precision.HIGHEST
    f32, bf16 = jnp.float32, jnp.bfloat16
    x = jnp.transpose(x_nchw, (0, 2, 3, 1))          # NHWC f32
    xb = x.astype(bf16)
    n, h, w, cin = x.shape
    cout = p["w1x1"].shape[0]
    nd = len(dilations)
    mid = (2 + nd) * cout
    cpg = cout // groups

    def gn_relu(y, gamma, beta):                     # y: (N, H', W', Cout) f32
        nn_, hh, ww, cc = y.shape
        yr = y.reshape(nn_, hh * ww, groups, cpg)
        mean = yr.mean(axis=(1, 3), keepdims=True)
        var = ((yr - mean) ** 2).mean(axis=(1, 3), keepdims=True)
        yn = ((yr - mean) * lax.rsqrt(var + EPS)).reshape(y.shape)
        return jax.nn.relu(yn * gamma.reshape(1, 1, 1, cc)
                           + beta.reshape(1, 1, 1, cc))

    # 1x1 branch
    y1 = jnp.einsum("nhwc,oc->nhwo", xb, p["w1x1"].astype(bf16),
                    preferred_element_type=f32)
    x1 = gn_relu(y1, p["gn_g"][0], p["gn_b"][0])

    # global branch (bilinear upsample of a 1x1 map == broadcast)
    pooled = x.mean(axis=(1, 2), keepdims=True)
    yg = jnp.einsum("nhwc,oc->nhwo", pooled.astype(bf16), p["wglob"].astype(bf16),
                    preferred_element_type=f32)
    xg = jnp.broadcast_to(gn_relu(yg, p["gn_g"][1], p["gn_b"][1]),
                          (n, h, w, cout))

    # dilated 3x3 branches
    feats = [x1, xg]
    for i, d in enumerate(dilations):
        w_hwio = jnp.transpose(p["wdil"][i], (1, 2, 3, 0)).astype(bf16)
        y = lax.conv_general_dilated(
            xb, w_hwio, (1, 1), ((d, d), (d, d)), rhs_dilation=(d, d),
            dimension_numbers=("NHWC", "HWIO", "NHWC"),
            preferred_element_type=f32)
        feats.append(gn_relu(y, p["gn_g"][2 + i], p["gn_b"][2 + i]))

    cat = jnp.concatenate(feats, axis=-1)            # (n, h, w, mid) f32
    pc = cat.mean(axis=(1, 2), keepdims=True)
    h1 = jax.nn.relu(jnp.einsum("nhwc,rc->nhwr", pc, p["fc1_w"], precision=hi)
                     + p["fc1_b"].reshape(1, 1, 1, -1))
    s = jax.nn.sigmoid(jnp.einsum("nhwr,cr->nhwc", h1, p["fc2_w"], precision=hi)
                       + p["fc2_b"].reshape(1, 1, 1, -1))   # (n,1,1,mid)
    fw_scaled = (p["final_w"][None] * (1.0 + s.reshape(n, 1, mid))).astype(bf16)
    out = (jnp.einsum("nhwc,noc->nhwo", cat.astype(bf16), fw_scaled,
                      preferred_element_type=f32)
           + p["final_b"].reshape(1, 1, 1, -1))
    return jnp.transpose(out, (0, 3, 1, 2))


# ----------------------------- main -------------------------------------------


if __name__ == "__main__":
    key = jax.random.PRNGKey(0)
    kx_, kp_ = jax.random.split(key)

    N, C_IN, H, W = 2, 16, 16, 16
    C_OUT = 16
    DILATIONS = [1, 3, 7, 11]

    x = jax.random.normal(kx_, (N, C_IN, H, W), jnp.float32)   # NCHW, like PyTorch
    params = init_params(kp_, C_IN, C_OUT, DILATIONS)
    ops = pack_params(params, H, W, DILATIONS)

    out = jax.block_until_ready(aspp_forward(x, ops, DILATIONS))
    assert out.shape == (N, C_OUT, H, W), out.shape

    ref = ref_forward(x, params, DILATIONS)
    max_err = float(jnp.max(jnp.abs(out - ref)))
    assert max_err < 3e-2, f"max abs err {max_err}"

    print("KERNEL_OK")
</pallas_src>

<mosaic_0001>
module attributes {stable_mosaic.version = 11 : i64} {
  func.func @kernel(%arg0: i32, %arg1: memref<1x16x256xf32, #tpu.memory_space<vmem>>, %arg2: memref<96x608xbf16, #tpu.memory_space<vmem>>, %arg3: memref<96x96xf32, #tpu.memory_space<vmem>>, %arg4: memref<36x1x256xf32, #tpu.memory_space<vmem>>, %arg5: memref<96x1xf32, #tpu.memory_space<vmem>>, %arg6: memref<96x1xf32, #tpu.memory_space<vmem>>, %arg7: memref<96x6xf32, #tpu.memory_space<vmem>>, %arg8: memref<1x6xf32, #tpu.memory_space<vmem>>, %arg9: memref<6x96xf32, #tpu.memory_space<vmem>>, %arg10: memref<1x96xf32, #tpu.memory_space<vmem>>, %arg11: memref<16x96xf32, #tpu.memory_space<vmem>>, %arg12: memref<16x1xf32, #tpu.memory_space<vmem>>, %arg13: memref<1x16x256xf32, #tpu.memory_space<vmem>>, %arg14: memref<608x256xbf16, #tpu.memory_space<vmem>>) attributes {dimension_semantics = [#tpu.dimension_semantics<parallel>], iteration_bounds = array<i64: 2>, scalar_prefetch = 0 : i64, scratch_operands = 1 : i64, tpu.core_type = #tpu.core_type<tc>, window_params = [{transform_indices = @transform_0, window_bounds = array<i64: 1, 16, 256>}, {pipeline_mode = #tpu.pipeline_mode<synchronous>, transform_indices = @transform_1, window_bounds = array<i64: 96, 608>}, {pipeline_mode = #tpu.pipeline_mode<synchronous>, transform_indices = @transform_2, window_bounds = array<i64: 96, 96>}, {pipeline_mode = #tpu.pipeline_mode<synchronous>, transform_indices = @transform_3, window_bounds = array<i64: 36, 1, 256>}, {pipeline_mode = #tpu.pipeline_mode<synchronous>, transform_indices = @transform_4, window_bounds = array<i64: 96, 1>}, {pipeline_mode = #tpu.pipeline_mode<synchronous>, transform_indices = @transform_5, window_bounds = array<i64: 96, 1>}, {pipeline_mode = #tpu.pipeline_mode<synchronous>, transform_indices = @transform_6, window_bounds = array<i64: 96, 6>}, {pipeline_mode = #tpu.pipeline_mode<synchronous>, transform_indices = @transform_7, window_bounds = array<i64: 1, 6>}, {pipeline_mode = #tpu.pipeline_mode<synchronous>, transform_indices = @transform_8, window_bounds = array<i64: 6, 96>}, {pipeline_mode = #tpu.pipeline_mode<synchronous>, transform_indices = @transform_9, window_bounds = array<i64: 1, 96>}, {pipeline_mode = #tpu.pipeline_mode<synchronous>, transform_indices = @transform_10, window_bounds = array<i64: 16, 96>}, {pipeline_mode = #tpu.pipeline_mode<synchronous>, transform_indices = @transform_11, window_bounds = array<i64: 16, 1>}, {transform_indices = @transform_12, window_bounds = array<i64: 1, 16, 256>}]} {
    %c0 = arith.constant 0 : index
    %c0_0 = arith.constant 0 : index
    %c0_1 = arith.constant 0 : index
    %0 = vector.load %arg1[%c0, %c0_0, %c0_1] : memref<1x16x256xf32, #tpu.memory_space<vmem>>, vector<1x16x256xf32>
    %1 = vector.shape_cast %0 : vector<1x16x256xf32> to vector<16x256xf32>
    %2 = arith.truncf %1 : vector<16x256xf32> to vector<16x256xbf16>
    %c0_2 = arith.constant 0 : index
    %c0_3 = arith.constant 0 : index
    %3 = vector.load %arg14[%c0_2, %c0_3] : memref<608x256xbf16, #tpu.memory_space<vmem>>, vector<16x256xbf16>
    tpu.vector_store %arg14[%c0_2, %c0_3], %2 {strides = array<i32>} : memref<608x256xbf16, #tpu.memory_space<vmem>>, vector<16x256xbf16>,
    %cst = arith.constant dense<0.000000e+00> : vector<16xf32>
    %4 = vector.multi_reduction <add>, %1, %cst [1] : vector<16x256xf32> to vector<16xf32>
    %5 = vector.shape_cast %4 : vector<16xf32> to vector<16x1xf32>
    %cst_4 = arith.constant 3.906250e-03 : f32
    %6 = vector.broadcast %cst_4 : f32 to vector<16x1xf32>
    %7 = arith.mulf %5, %6 : vector<16x1xf32>
    %8 = arith.truncf %7 : vector<16x1xf32> to vector<16x1xbf16>
    %9 = vector.shape_cast %8 : vector<16x1xbf16> to vector<16x1xbf16>
    %10 = vector.broadcast %9 : vector<16x1xbf16> to vector<16x256xbf16>
    %c592 = arith.constant 592 : index
    %c0_5 = arith.constant 0 : index
    %11 = vector.load %arg14[%c592, %c0_5] : memref<608x256xbf16, #tpu.memory_space<vmem>>, vector<16x256xbf16>
    tpu.vector_store %arg14[%c592, %c0_5], %10 {strides = array<i32>} : memref<608x256xbf16, #tpu.memory_space<vmem>>, vector<16x256xbf16>,
    %c17_i32 = arith.constant 17 : i32
    %12 = tpu.dynamic_rotate %1 by %c17_i32 dim 1 : vector<16x256xf32>, i32 -> vector<16x256xf32>
    %c0_6 = arith.constant 0 : index
    %c0_7 = arith.constant 0 : index
    %c0_8 = arith.constant 0 : index
    %13 = vector.load %arg4[%c0_6, %c0_7, %c0_8] : memref<36x1x256xf32, #tpu.memory_space<vmem>>, vector<1x1x256xf32>
    %14 = vector.shape_cast %13 : vector<1x1x256xf32> to vector<1x256xf32>
    %15 = vector.broadcast %14 : vector<1x256xf32> to vector<16x256xf32>
    %16 = arith.mulf %12, %15 : vector<16x256xf32>
    %17 = arith.truncf %16 : vector<16x256xf32> to vector<16x256xbf16>
    %c16 = arith.constant 16 : index
    %c0_9 = arith.constant 0 : index
    %18 = vector.load %arg14[%c16, %c0_9] : memref<608x256xbf16, #tpu.memory_space<vmem>>, vector<16x256xbf16>
    tpu.vector_store %arg14[%c16, %c0_9], %17 {strides = array<i32>} : memref<608x256xbf16, #tpu.memory_space<vmem>>, vector<16x256xbf16>,
    %c16_i32 = arith.constant 16 : i32
    %19 = tpu.dynamic_rotate %1 by %c16_i32 dim 1 : vector<16x256xf32>, i32 -> vector<16x256xf32>
    %c1 = arith.constant 1 : index
    %c0_10 = arith.constant 0 : index
    %c0_11 = arith.constant 0 : index
    %20 = vector.load %arg4[%c1, %c0_10, %c0_11] : memref<36x1x256xf32, #tpu.memory_space<vmem>>, vector<1x1x256xf32>
    %21 = vector.shape_cast %20 : vector<1x1x256xf32> to vector<1x256xf32>
    %22 = vector.broadcast %21 : vector<1x256xf32> to vector<16x256xf32>
    %23 = arith.mulf %19, %22 : vector<16x256xf32>
    %24 = arith.truncf %23 : vector<16x256xf32> to vector<16x256xbf16>
    %c32 = arith.constant 32 : index
    %c0_12 = arith.constant 0 : index
    %25 = vector.load %arg14[%c32, %c0_12] : memref<608x256xbf16, #tpu.memory_space<vmem>>, vector<16x256xbf16>
    tpu.vector_store %arg14[%c32, %c0_12], %24 {strides = array<i32>} : memref<608x256xbf16, #tpu.memory_space<vmem>>, vector<16x256xbf16>,
    %c15_i32 = arith.constant 15 : i32
    %26 = tpu.dynamic_rotate %1 by %c15_i32 dim 1 : vector<16x256xf32>, i32 -> vector<16x256xf32>
    %c2 = arith.constant 2 : index
    %c0_13 = arith.constant 0 : index
    %c0_14 = arith.constant 0 : index
    %27 = vector.load %arg4[%c2, %c0_13, %c0_14] : memref<36x1x256xf32, #tpu.memory_space<vmem>>, vector<1x1x256xf32>
    %28 = vector.shape_cast %27 : vector<1x1x256xf32> to vector<1x256xf32>
    %29 = vector.broadcast %28 : vector<1x256xf32> to vector<16x256xf32>
    %30 = arith.mulf %26, %29 : vector<16x256xf32>
    %31 = arith.truncf %30 : vector<16x256xf32> to vector<16x256xbf16>
    %c48 = arith.constant 48 : index
    %c0_15 = arith.constant 0 : index
    %32 = vector.load %arg14[%c48, %c0_15] : memref<608x256xbf16, #tpu.memory_space<vmem>>, vector<16x256xbf16>
    tpu.vector_store %arg14[%c48, %c0_15], %31 {strides = array<i32>} : memref<608x256xbf16, #tpu.memory_space<vmem>>, vector<16x256xbf16>,
    %c1_i32 = arith.constant 1 : i32
    %33 = tpu.dynamic_rotate %1 by %c1_i32 dim 1 : vector<16x256xf32>, i32 -> vector<16x256xf32>
    %c3 = arith.constant 3 : index
    %c0_16 = arith.constant 0 : index
    %c0_17 = arith.constant 0 : index
    %34 = vector.load %arg4[%c3, %c0_16, %c0_17] : memref<36x1x256xf32, #tpu.memory_space<vmem>>, vector<1x1x256xf32>
    %35 = vector.shape_cast %34 : vector<1x1x256xf32> to vector<1x256xf32>
    %36 = vector.broadcast %35 : vector<1x256xf32> to vector<16x256xf32>
    %37 = arith.mulf %33, %36 : vector<16x256xf32>
    %38 = arith.truncf %37 : vector<16x256xf32> to vector<16x256xbf16>
    %c64 = arith.constant 64 : index
    %c0_18 = arith.constant 0 : index
    %39 = vector.load %arg14[%c64, %c0_18] : memref<608x256xbf16, #tpu.memory_space<vmem>>, vector<16x256xbf16>
    tpu.vector_store %arg14[%c64, %c0_18], %38 {strides = array<i32>} : memref<608x256xbf16, #tpu.memory_space<vmem>>, vector<16x256xbf16>,
    %c80 = arith.constant 80 : index
    %c0_19 = arith.constant 0 : index
    %40 = vector.load %arg14[%c80, %c0_19] : memref<608x256xbf16, #tpu.memory_space<vmem>>, vector<16x256xbf16>
    tpu.vector_store %arg14[%c80, %c0_19], %2 {strides = array<i32>} : memref<608x256xbf16, #tpu.memory_space<vmem>>, vector<16x256xbf16>,
    %c255_i32 = arith.constant 255 : i32
    %41 = tpu.dynamic_rotate %1 by %c255_i32 dim 1 : vector<16x256xf32>, i32 -> vector<16x256xf32>
    %c5 = arith.constant 5 : index
    %c0_20 = arith.constant 0 : index
    %c0_21 = arith.constant 0 : index
    %42 = vector.load %arg4[%c5, %c0_20, %c0_21] : memref<36x1x256xf32, #tpu.memory_space<vmem>>, vector<1x1x256xf32>
    %43 = vector.shape_cast %42 : vector<1x1x256xf32> to vector<1x256xf32>
    %44 = vector.broadcast %43 : vector<1x256xf32> to vector<16x256xf32>
    %45 = arith.mulf %41, %44 : vector<16x256xf32>
    %46 = arith.truncf %45 : vector<16x256xf32> to vector<16x256xbf16>
    %c96 = arith.constant 96 : index
    %c0_22 = arith.constant 0 : index
    %47 = vector.load %arg14[%c96, %c0_22] : memref<608x256xbf16, #tpu.memory_space<vmem>>, vector<16x256xbf16>
    tpu.vector_store %arg14[%c96, %c0_22], %46 {strides = array<i32>} : memref<608x256xbf16, #tpu.memory_space<vmem>>, vector<16x256xbf16>,
    %c241_i32 = arith.constant 241 : i32
    %48 = tpu.dynamic_rotate %1 by %c241_i32 dim 1 : vector<16x256xf32>, i32 -> vector<16x256xf32>
    %c6 = arith.constant 6 : index
    %c0_23 = arith.constant 0 : index
    %c0_24 = arith.constant 0 : index
    %49 = vector.load %arg4[%c6, %c0_23, %c0_24] : memref<36x1x256xf32, #tpu.memory_space<vmem>>, vector<1x1x256xf32>
    %50 = vector.shape_cast %49 : vector<1x1x256xf32> to vector<1x256xf32>
    %51 = vector.broadcast %50 : vector<1x256xf32> to vector<16x256xf32>
    %52 = arith.mulf %48, %51 : vector<16x256xf32>
    %53 = arith.truncf %52 : vector<16x256xf32> to vector<16x256xbf16>
    %c112 = arith.constant 112 : index
    %c0_25 = arith.constant 0 : index
    %54 = vector.load %arg14[%c112, %c0_25] : memref<608x256xbf16, #tpu.memory_space<vmem>>, vector<16x256xbf16>
    tpu.vector_store %arg14[%c112, %c0_25], %53 {strides = array<i32>} : memref<608x256xbf16, #tpu.memory_space<vmem>>, vector<16x256xbf16>,
    %c240_i32 = arith.constant 240 : i32
    %55 = tpu.dynamic_rotate %1 by %c240_i32 dim 1 : vector<16x256xf32>, i32 -> vector<16x256xf32>
    %c7 = arith.constant 7 : index
    %c0_26 = arith.constant 0 : index
    %c0_27 = arith.constant 0 : index
    %56 = vector.load %arg4[%c7, %c0_26, %c0_27] : memref<36x1x256xf32, #tpu.memory_space<vmem>>, vector<1x1x256xf32>
    %57 = vector.shape_cast %56 : vector<1x1x256xf32> to vector<1x256xf32>
    %58 = vector.broadcast %57 : vector<1x256xf32> to vector<16x256xf32>
    %59 = arith.mulf %55, %58 : vector<16x256xf32>
    %60 = arith.truncf %59 : vector<16x256xf32> to vector<16x256xbf16>
    %c128 = arith.constant 128 : index
    %c0_28 = arith.constant 0 : index
    %61 = vector.load %arg14[%c128, %c0_28] : memref<608x256xbf16, #tpu.memory_space<vmem>>, vector<16x256xbf16>
    tpu.vector_store %arg14[%c128, %c0_28], %60 {strides = array<i32>} : memref<608x256xbf16, #tpu.memory_space<vmem>>, vector<16x256xbf16>,
    %c239_i32 = arith.constant 239 : i32
    %62 = tpu.dynamic_rotate %1 by %c239_i32 dim 1 : vector<16x256xf32>, i32 -> vector<16x256xf32>
    %c8 = arith.constant 8 : index
    %c0_29 = arith.constant 0 : index
    %c0_30 = arith.constant 0 : index
    %63 = vector.load %arg4[%c8, %c0_29, %c0_30] : memref<36x1x256xf32, #tpu.memory_space<vmem>>, vector<1x1x256xf32>
    %64 = vector.shape_cast %63 : vector<1x1x256xf32> to vector<1x256xf32>
    %65 = vector.broadcast %64 : vector<1x256xf32> to vector<16x256xf32>
    %66 = arith.mulf %62, %65 : vector<16x256xf32>
    %67 = arith.truncf %66 : vector<16x256xf32> to vector<16x256xbf16>
    %c144 = arith.constant 144 : index
    %c0_31 = arith.constant 0 : index
    %68 = vector.load %arg14[%c144, %c0_31] : memref<608x256xbf16, #tpu.memory_space<vmem>>, vector<16x256xbf16>
    tpu.vector_store %arg14[%c144, %c0_31], %67 {strides = array<i32>} : memref<608x256xbf16, #tpu.memory_space<vmem>>, vector<16x256xbf16>,
    %c51_i32 = arith.constant 51 : i32
    %69 = tpu.dynamic_rotate %1 by %c51_i32 dim 1 : vector<16x256xf32>, i32 -> vector<16x256xf32>
    %c9 = arith.constant 9 : index
    %c0_32 = arith.constant 0 : index
    %c0_33 = arith.constant 0 : index
    %70 = vector.load %arg4[%c9, %c0_32, %c0_33] : memref<36x1x256xf32, #tpu.memory_space<vmem>>, vector<1x1x256xf32>
    %71 = vector.shape_cast %70 : vector<1x1x256xf32> to vector<1x256xf32>
    %72 = vector.broadcast %71 : vector<1x256xf32> to vector<16x256xf32>
    %73 = arith.mulf %69, %72 : vector<16x256xf32>
    %74 = arith.truncf %73 : vector<16x256xf32> to vector<16x256xbf16>
    %c160 = arith.constant 160 : index
    %c0_34 = arith.constant 0 : index
    %75 = vector.load %arg14[%c160, %c0_34] : memref<608x256xbf16, #tpu.memory_space<vmem>>, vector<16x256xbf16>
    tpu.vector_store %arg14[%c160, %c0_34], %74 {strides = array<i32>} : memref<608x256xbf16, #tpu.memory_space<vmem>>, vector<16x256xbf16>,
    %c48_i32 = arith.constant 48 : i32
    %76 = tpu.dynamic_rotate %1 by %c48_i32 dim 1 : vector<16x256xf32>, i32 -> vector<16x256xf32>
    %c10 = arith.constant 10 : index
    %c0_35 = arith.constant 0 : index
    %c0_36 = arith.constant 0 : index
    %77 = vector.load %arg4[%c10, %c0_35, %c0_36] : memref<36x1x256xf32, #tpu.memory_space<vmem>>, vector<1x1x256xf32>
    %78 = vector.shape_cast %77 : vector<1x1x256xf32> to vector<1x256xf32>
    %79 = vector.broadcast %78 : vector<1x256xf32> to vector<16x256xf32>
    %80 = arith.mulf %76, %79 : vector<16x256xf32>
    %81 = arith.truncf %80 : vector<16x256xf32> to vector<16x256xbf16>
    %c176 = arith.constant 176 : index
    %c0_37 = arith.constant 0 : index
    %82 = vector.load %arg14[%c176, %c0_37] : memref<608x256xbf16, #tpu.memory_space<vmem>>, vector<16x256xbf16>
    tpu.vector_store %arg14[%c176, %c0_37], %81 {strides = array<i32>} : memref<608x256xbf16, #tpu.memory_space<vmem>>, vector<16x256xbf16>,
    %c45_i32 = arith.constant 45 : i32
    %83 = tpu.dynamic_rotate %1 by %c45_i32 dim 1 : vector<16x256xf32>, i32 -> vector<16x256xf32>
    %c11 = arith.constant 11 : index
    %c0_38 = arith.constant 0 : index
    %c0_39 = arith.constant 0 : index
    %84 = vector.load %arg4[%c11, %c0_38, %c0_39] : memref<36x1x256xf32, #tpu.memory_space<vmem>>, vector<1x1x256xf32>
    %85 = vector.shape_cast %84 : vector<1x1x256xf32> to vector<1x256xf32>
    %86 = vector.broadcast %85 : vector<1x256xf32> to vector<16x256xf32>
    %87 = arith.mulf %83, %86 : vector<16x256xf32>
    %88 = arith.truncf %87 : vector<16x256xf32> to vector<16x256xbf16>
    %c192 = arith.constant 192 : index
    %c0_40 = arith.constant 0 : index
    %89 = vector.load %arg14[%c192, %c0_40] : memref<608x256xbf16, #tpu.memory_space<vmem>>, vector<16x256xbf16>
    tpu.vector_store %arg14[%c192, %c0_40], %88 {strides = array<i32>} : memref<608x256xbf16, #tpu.memory_space<vmem>>, vector<16x256xbf16>,
    %c3_i32 = arith.constant 3 : i32
    %90 = tpu.dynamic_rotate %1 by %c3_i32 dim 1 : vector<16x256xf32>, i32 -> vector<16x256xf32>
    %c12 = arith.constant 12 : index
    %c0_41 = arith.constant 0 : index
    %c0_42 = arith.constant 0 : index
    %91 = vector.load %arg4[%c12, %c0_41, %c0_42] : memref<36x1x256xf32, #tpu.memory_space<vmem>>, vector<1x1x256xf32>
    %92 = vector.shape_cast %91 : vector<1x1x256xf32> to vector<1x256xf32>
    %93 = vector.broadcast %92 : vector<1x256xf32> to vector<16x256xf32>
    %94 = arith.mulf %90, %93 : vector<16x256xf32>
    %95 = arith.truncf %94 : vector<16x256xf32> to vector<16x256xbf16>
    %c208 = arith.constant 208 : index
    %c0_43 = arith.constant 0 : index
    %96 = vector.load %arg14[%c208, %c0_43] : memref<608x256xbf16, #tpu.memory_space<vmem>>, vector<16x256xbf16>
    tpu.vector_store %arg14[%c208, %c0_43], %95 {strides = array<i32>} : memref<608x256xbf16, #tpu.memory_space<vmem>>, vector<16x256xbf16>,
    %c224 = arith.constant 224 : index
    %c0_44 = arith.constant 0 : index
    %97 = vector.load %arg14[%c224, %c0_44] : memref<608x256xbf16, #tpu.memory_space<vmem>>, vector<16x256xbf16>
    tpu.vector_store %arg14[%c224, %c0_44], %2 {strides = array<i32>} : memref<608x256xbf16, #tpu.memory_space<vmem>>, vector<16x256xbf16>,
    %c253_i32 = arith.constant 253 : i32
    %98 = tpu.dynamic_rotate %1 by %c253_i32 dim 1 : vector<16x256xf32>, i32 -> vector<16x256xf32>
    %c14 = arith.constant 14 : index
    %c0_45 = arith.constant 0 : index
    %c0_46 = arith.constant 0 : index
    %99 = vector.load %arg4[%c14, %c0_45, %c0_46] : memref<36x1x256xf32, #tpu.memory_space<vmem>>, vector<1x1x256xf32>
    %100 = vector.shape_cast %99 : vector<1x1x256xf32> to vector<1x256xf32>
    %101 = vector.broadcast %100 : vector<1x256xf32> to vector<16x256xf32>
    %102 = arith.mulf %98, %101 : vector<16x256xf32>
    %103 = arith.truncf %102 : vector<16x256xf32> to vector<16x256xbf16>
    %c240 = arith.constant 240 : index
    %c0_47 = arith.constant 0 : index
    %104 = vector.load %arg14[%c240, %c0_47] : memref<608x256xbf16, #tpu.memory_space<vmem>>, vector<16x256xbf16>
    tpu.vector_store %arg14[%c240, %c0_47], %103 {strides = array<i32>} : memref<608x256xbf16, #tpu.memory_space<vmem>>, vector<16x256xbf16>,
    %c211_i32 = arith.constant 211 : i32
    %105 = tpu.dynamic_rotate %1 by %c211_i32 dim 1 : vector<16x256xf32>, i32 -> vector<16x256xf32>
    %c15 = arith.constant 15 : index
    %c0_48 = arith.constant 0 : index
    %c0_49 = arith.constant 0 : index
    %106 = vector.load %arg4[%c15, %c0_48, %c0_49] : memref<36x1x256xf32, #tpu.memory_space<vmem>>, vector<1x1x256xf32>
    %107 = vector.shape_cast %106 : vector<1x1x256xf32> to vector<1x256xf32>
    %108 = vector.broadcast %107 : vector<1x256xf32> to vector<16x256xf32>
    %109 = arith.mulf %105, %108 : vector<16x256xf32>
    %110 = arith.truncf %109 : vector<16x256xf32> to vector<16x256xbf16>
    %c256 = arith.constant 256 : index
    %c0_50 = arith.constant 0 : index
    %111 = vector.load %arg14[%c256, %c0_50] : memref<608x256xbf16, #tpu.memory_space<vmem>>, vector<16x256xbf16>
    tpu.vector_store %arg14[%c256, %c0_50], %110 {strides = array<i32>} : memref<608x256xbf16, #tpu.memory_space<vmem>>, vector<16x256xbf16>,
    %c208_i32 = arith.constant 208 : i32
    %112 = tpu.dynamic_rotate %1 by %c208_i32 dim 1 : vector<16x256xf32>, i32 -> vector<16x256xf32>
    %c16_51 = arith.constant 16 : index
    %c0_52 = arith.constant 0 : index
    %c0_53 = arith.constant 0 : index
    %113 = vector.load %arg4[%c16_51, %c0_52, %c0_53] : memref<36x1x256xf32, #tpu.memory_space<vmem>>, vector<1x1x256xf32>
    %114 = vector.shape_cast %113 : vector<1x1x256xf32> to vector<1x256xf32>
    %115 = vector.broadcast %114 : vector<1x256xf32> to vector<16x256xf32>
    %116 = arith.mulf %112, %115 : vector<16x256xf32>
    %117 = arith.truncf %116 : vector<16x256xf32> to vector<16x256xbf16>
    %c272 = arith.constant 272 : index
    %c0_54 = arith.constant 0 : index
    %118 = vector.load %arg14[%c272, %c0_54] : memref<608x256xbf16, #tpu.memory_space<vmem>>, vector<16x256xbf16>
    tpu.vector_store %arg14[%c272, %c0_54], %117 {strides = array<i32>} : memref<608x256xbf16, #tpu.memory_space<vmem>>, vector<16x256xbf16>,
    %c205_i32 = arith.constant 205 : i32
    %119 = tpu.dynamic_rotate %1 by %c205_i32 dim 1 : vector<16x256xf32>, i32 -> vector<16x256xf32>
    %c17 = arith.constant 17 : index
    %c0_55 = arith.constant 0 : index
    %c0_56 = arith.constant 0 : index
    %120 = vector.load %arg4[%c17, %c0_55, %c0_56] : memref<36x1x256xf32, #tpu.memory_space<vmem>>, vector<1x1x256xf32>
    %121 = vector.shape_cast %120 : vector<1x1x256xf32> to vector<1x256xf32>
    %122 = vector.broadcast %121 : vector<1x256xf32> to vector<16x256xf32>
    %123 = arith.mulf %119, %122 : vector<16x256xf32>
    %124 = arith.truncf %123 : vector<16x256xf32> to vector<16x256xbf16>
    %c288 = arith.constant 288 : index
    %c0_57 = arith.constant 0 : index
    %125 = vector.load %arg14[%c288, %c0_57] : memref<608x256xbf16, #tpu.memory_space<vmem>>, vector<16x256xbf16>
    tpu.vector_store %arg14[%c288, %c0_57], %124 {strides = array<i32>} : memref<608x256xbf16, #tpu.memory_space<vmem>>, vector<16x256xbf16>,
    %c119_i32 = arith.constant 119 : i32
    %126 = tpu.dynamic_rotate %1 by %c119_i32 dim 1 : vector<16x256xf32>, i32 -> vector<16x256xf32>
    %c18 = arith.constant 18 : index
    %c0_58 = arith.constant 0 : index
    %c0_59 = arith.constant 0 : index
    %127 = vector.load %arg4[%c18, %c0_58, %c0_59] : memref<36x1x256xf32, #tpu.memory_space<vmem>>, vector<1x1x256xf32>
    %128 = vector.shape_cast %127 : vector<1x1x256xf32> to vector<1x256xf32>
    %129 = vector.broadcast %128 : vector<1x256xf32> to vector<16x256xf32>
    %130 = arith.mulf %126, %129 : vector<16x256xf32>
    %131 = arith.truncf %130 : vector<16x256xf32> to vector<16x256xbf16>
    %c304 = arith.constant 304 : index
    %c0_60 = arith.constant 0 : index
    %132 = vector.load %arg14[%c304, %c0_60] : memref<608x256xbf16, #tpu.memory_space<vmem>>, vector<16x256xbf16>
    tpu.vector_store %arg14[%c304, %c0_60], %131 {strides = array<i32>} : memref<608x256xbf16, #tpu.memory_space<vmem>>, vector<16x256xbf16>,
    %c112_i32 = arith.constant 112 : i32
    %133 = tpu.dynamic_rotate %1 by %c112_i32 dim 1 : vector<16x256xf32>, i32 -> vector<16x256xf32>
    %c19 = arith.constant 19 : index
    %c0_61 = arith.constant 0 : index
    %c0_62 = arith.constant 0 : index
    %134 = vector.load %arg4[%c19, %c0_61, %c0_62] : memref<36x1x256xf32, #tpu.memory_space<vmem>>, vector<1x1x256xf32>
    %135 = vector.shape_cast %134 : vector<1x1x256xf32> to vector<1x256xf32>
    %136 = vector.broadcast %135 : vector<1x256xf32> to vector<16x256xf32>
    %137 = arith.mulf %133, %136 : vector<16x256xf32>
    %138 = arith.truncf %137 : vector<16x256xf32> to vector<16x256xbf16>
    %c320 = arith.constant 320 : index
    %c0_63 = arith.constant 0 : index
    %139 = vector.load %arg14[%c320, %c0_63] : memref<608x256xbf16, #tpu.memory_space<vmem>>, vector<16x256xbf16>
    tpu.vector_store %arg14[%c320, %c0_63], %138 {strides = array<i32>} : memref<608x256xbf16, #tpu.memory_space<vmem>>, vector<16x256xbf16>,
    %c105_i32 = arith.constant 105 : i32
    %140 = tpu.dynamic_rotate %1 by %c105_i32 dim 1 : vector<16x256xf32>, i32 -> vector<16x256xf32>
    %c20 = arith.constant 20 : index
    %c0_64 = arith.constant 0 : index
    %c0_65 = arith.constant 0 : index
    %141 = vector.load %arg4[%c20, %c0_64, %c0_65] : memref<36x1x256xf32, #tpu.memory_space<vmem>>, vector<1x1x256xf32>
    %142 = vector.shape_cast %141 : vector<1x1x256xf32> to vector<1x256xf32>
    %143 = vector.broadcast %142 : vector<1x256xf32> to vector<16x256xf32>
    %144 = arith.mulf %140, %143 : vector<16x256xf32>
    %145 = arith.truncf %144 : vector<16x256xf32> to vector<16x256xbf16>
    %c336 = arith.constant 336 : index
    %c0_66 = arith.constant 0 : index
    %146 = vector.load %arg14[%c336, %c0_66] : memref<608x256xbf16, #tpu.memory_space<vmem>>, vector<16x256xbf16>
    tpu.vector_store %arg14[%c336, %c0_66], %145 {strides = array<i32>} : memref<608x256xbf16, #tpu.memory_space<vmem>>, vector<16x256xbf16>,
    %c7_i32 = arith.constant 7 : i32
    %147 = tpu.dynamic_rotate %1 by %c7_i32 dim 1 : vector<16x256xf32>, i32 -> vector<16x256xf32>
    %c21 = arith.constant 21 : index
    %c0_67 = arith.constant 0 : index
    %c0_68 = arith.constant 0 : index
    %148 = vector.load %arg4[%c21, %c0_67, %c0_68] : memref<36x1x256xf32, #tpu.memory_space<vmem>>, vector<1x1x256xf32>
    %149 = vector.shape_cast %148 : vector<1x1x256xf32> to vector<1x256xf32>
    %150 = vector.broadcast %149 : vector<1x256xf32> to vector<16x256xf32>
    %151 = arith.mulf %147, %150 : vector<16x256xf32>
    %152 = arith.truncf %151 : vector<16x256xf32> to vector<16x256xbf16>
    %c352 = arith.constant 352 : index
    %c0_69 = arith.constant 0 : index
    %153 = vector.load %arg14[%c352, %c0_69] : memref<608x256xbf16, #tpu.memory_space<vmem>>, vector<16x256xbf16>
    tpu.vector_store %arg14[%c352, %c0_69], %152 {strides = array<i32>} : memref<608x256xbf16, #tpu.memory_space<vmem>>, vector<16x256xbf16>,
    %c368 = arith.constant 368 : index
    %c0_70 = arith.constant 0 : index
    %154 = vector.load %arg14[%c368, %c0_70] : memref<608x256xbf16, #tpu.memory_space<vmem>>, vector<16x256xbf16>
    tpu.vector_store %arg14[%c368, %c0_70], %2 {strides = array<i32>} : memref<608x256xbf16, #tpu.memory_space<vmem>>, vector<16x256xbf16>,
    %c249_i32 = arith.constant 249 : i32
    %155 = tpu.dynamic_rotate %1 by %c249_i32 dim 1 : vector<16x256xf32>, i32 -> vector<16x256xf32>
    %c23 = arith.constant 23 : index
    %c0_71 = arith.constant 0 : index
    %c0_72 = arith.constant 0 : index
    %156 = vector.load %arg4[%c23, %c0_71, %c0_72] : memref<36x1x256xf32, #tpu.memory_space<vmem>>, vector<1x1x256xf32>
    %157 = vector.shape_cast %156 : vector<1x1x256xf32> to vector<1x256xf32>
    %158 = vector.broadcast %157 : vector<1x256xf32> to vector<16x256xf32>
    %159 = arith.mulf %155, %158 : vector<16x256xf32>
    %160 = arith.truncf %159 : vector<16x256xf32> to vector<16x256xbf16>
    %c384 = arith.constant 384 : index
    %c0_73 = arith.constant 0 : index
    %161 = vector.load %arg14[%c384, %c0_73] : memref<608x256xbf16, #tpu.memory_space<vmem>>, vector<16x256xbf16>
    tpu.vector_store %arg14[%c384, %c0_73], %160 {strides = array<i32>} : memref<608x256xbf16, #tpu.memory_space<vmem>>, vector<16x256xbf16>,
    %c151_i32 = arith.constant 151 : i32
    %162 = tpu.dynamic_rotate %1 by %c151_i32 dim 1 : vector<16x256xf32>, i32 -> vector<16x256xf32>
    %c24 = arith.constant 24 : index
    %c0_74 = arith.constant 0 : index
    %c0_75 = arith.constant 0 : index
    %163 = vector.load %arg4[%c24, %c0_74, %c0_75] : memref<36x1x256xf32, #tpu.memory_space<vmem>>, vector<1x1x256xf32>
    %164 = vector.shape_cast %163 : vector<1x1x256xf32> to vector<1x256xf32>
    %165 = vector.broadcast %164 : vector<1x256xf32> to vector<16x256xf32>
    %166 = arith.mulf %162, %165 : vector<16x256xf32>
    %167 = arith.truncf %166 : vector<16x256xf32> to vector<16x256xbf16>
    %c400 = arith.constant 400 : index
    %c0_76 = arith.constant 0 : index
    %168 = vector.load %arg14[%c400, %c0_76] : memref<608x256xbf16, #tpu.memory_space<vmem>>, vector<16x256xbf16>
    tpu.vector_store %arg14[%c400, %c0_76], %167 {strides = array<i32>} : memref<608x256xbf16, #tpu.memory_space<vmem>>, vector<16x256xbf16>,
    %c144_i32 = arith.constant 144 : i32
    %169 = tpu.dynamic_rotate %1 by %c144_i32 dim 1 : vector<16x256xf32>, i32 -> vector<16x256xf32>
    %c25 = arith.constant 25 : index
    %c0_77 = arith.constant 0 : index
    %c0_78 = arith.constant 0 : index
    %170 = vector.load %arg4[%c25, %c0_77, %c0_78] : memref<36x1x256xf32, #tpu.memory_space<vmem>>, vector<1x1x256xf32>
    %171 = vector.shape_cast %170 : vector<1x1x256xf32> to vector<1x256xf32>
    %172 = vector.broadcast %171 : vector<1x256xf32> to vector<16x256xf32>
    %173 = arith.mulf %169, %172 : vector<16x256xf32>
    %174 = arith.truncf %173 : vector<16x256xf32> to vector<16x256xbf16>
    %c416 = arith.constant 416 : index
    %c0_79 = arith.constant 0 : index
    %175 = vector.load %arg14[%c416, %c0_79] : memref<608x256xbf16, #tpu.memory_space<vmem>>, vector<16x256xbf16>
    tpu.vector_store %arg14[%c416, %c0_79], %174 {strides = array<i32>} : memref<608x256xbf16, #tpu.memory_space<vmem>>, vector<16x256xbf16>,
    %c137_i32 = arith.constant 137 : i32
    %176 = tpu.dynamic_rotate %1 by %c137_i32 dim 1 : vector<16x256xf32>, i32 -> vector<16x256xf32>
    %c26 = arith.constant 26 : index
    %c0_80 = arith.constant 0 : index
    %c0_81 = arith.constant 0 : index
    %177 = vector.load %arg4[%c26, %c0_80, %c0_81] : memref<36x1x256xf32, #tpu.memory_space<vmem>>, vector<1x1x256xf32>
    %178 = vector.shape_cast %177 : vector<1x1x256xf32> to vector<1x256xf32>
    %179 = vector.broadcast %178 : vector<1x256xf32> to vector<16x256xf32>
    %180 = arith.mulf %176, %179 : vector<16x256xf32>
    %181 = arith.truncf %180 : vector<16x256xf32> to vector<16x256xbf16>
    %c432 = arith.constant 432 : index
    %c0_82 = arith.constant 0 : index
    %182 = vector.load %arg14[%c432, %c0_82] : memref<608x256xbf16, #tpu.memory_space<vmem>>, vector<16x256xbf16>
    tpu.vector_store %arg14[%c432, %c0_82], %181 {strides = array<i32>} : memref<608x256xbf16, #tpu.memory_space<vmem>>, vector<16x256xbf16>,
    %c187_i32 = arith.constant 187 : i32
    %183 = tpu.dynamic_rotate %1 by %c187_i32 dim 1 : vector<16x256xf32>, i32 -> vector<16x256xf32>
    %c27 = arith.constant 27 : index
    %c0_83 = arith.constant 0 : index
    %c0_84 = arith.constant 0 : index
    %184 = vector.load %arg4[%c27, %c0_83, %c0_84] : memref<36x1x256xf32, #tpu.memory_space<vmem>>, vector<1x1x256xf32>
    %185 = vector.shape_cast %184 : vector<1x1x256xf32> to vector<1x256xf32>
    %186 = vector.broadcast %185 : vector<1x256xf32> to vector<16x256xf32>
    %187 = arith.mulf %183, %186 : vector<16x256xf32>
    %188 = arith.truncf %187 : vector<16x256xf32> to vector<16x256xbf16>
    %c448 = arith.constant 448 : index
    %c0_85 = arith.constant 0 : index
    %189 = vector.load %arg14[%c448, %c0_85] : memref<608x256xbf16, #tpu.memory_space<vmem>>, vector<16x256xbf16>
    tpu.vector_store %arg14[%c448, %c0_85], %188 {strides = array<i32>} : memref<608x256xbf16, #tpu.memory_space<vmem>>, vector<16x256xbf16>,
    %c176_i32 = arith.constant 176 : i32
    %190 = tpu.dynamic_rotate %1 by %c176_i32 dim 1 : vector<16x256xf32>, i32 -> vector<16x256xf32>
    %c28 = arith.constant 28 : index
    %c0_86 = arith.constant 0 : index
    %c0_87 = arith.constant 0 : index
    %191 = vector.load %arg4[%c28, %c0_86, %c0_87] : memref<36x1x256xf32, #tpu.memory_space<vmem>>, vector<1x1x256xf32>
    %192 = vector.shape_cast %191 : vector<1x1x256xf32> to vector<1x256xf32>
    %193 = vector.broadcast %192 : vector<1x256xf32> to vector<16x256xf32>
    %194 = arith.mulf %190, %193 : vector<16x256xf32>
    %195 = arith.truncf %194 : vector<16x256xf32> to vector<16x256xbf16>
    %c464 = arith.constant 464 : index
    %c0_88 = arith.constant 0 : index
    %196 = vector.load %arg14[%c464, %c0_88] : memref<608x256xbf16, #tpu.memory_space<vmem>>, vector<16x256xbf16>
    tpu.vector_store %arg14[%c464, %c0_88], %195 {strides = array<i32>} : memref<608x256xbf16, #tpu.memory_space<vmem>>, vector<16x256xbf16>,
    %c165_i32 = arith.constant 165 : i32
    %197 = tpu.dynamic_rotate %1 by %c165_i32 dim 1 : vector<16x256xf32>, i32 -> vector<16x256xf32>
    %c29 = arith.constant 29 : index
    %c0_89 = arith.constant 0 : index
    %c0_90 = arith.constant 0 : index
    %198 = vector.load %arg4[%c29, %c0_89, %c0_90] : memref<36x1x256xf32, #tpu.memory_space<vmem>>, vector<1x1x256xf32>
    %199 = vector.shape_cast %198 : vector<1x1x256xf32> to vector<1x256xf32>
    %200 = vector.broadcast %199 : vector<1x256xf32> to vector<16x256xf32>
    %201 = arith.mulf %197, %200 : vector<16x256xf32>
    %202 = arith.truncf %201 : vector<16x256xf32> to vector<16x256xbf16>
    %c480 = arith.constant 480 : index
    %c0_91 = arith.constant 0 : index
    %203 = vector.load %arg14[%c480, %c0_91] : memref<608x256xbf16, #tpu.memory_space<vmem>>, vector<16x256xbf16>
    tpu.vector_store %arg14[%c480, %c0_91], %202 {strides = array<i32>} : memref<608x256xbf16, #tpu.memory_space<vmem>>, vector<16x256xbf16>,
    %c11_i32 = arith.constant 11 : i32
    %204 = tpu.dynamic_rotate %1 by %c11_i32 dim 1 : vector<16x256xf32>, i32 -> vector<16x256xf32>
    %c30 = arith.constant 30 : index
    %c0_92 = arith.constant 0 : index
    %c0_93 = arith.constant 0 : index
    %205 = vector.load %arg4[%c30, %c0_92, %c0_93] : memref<36x1x256xf32, #tpu.memory_space<vmem>>, vector<1x1x256xf32>
    %206 = vector.shape_cast %205 : vector<1x1x256xf32> to vector<1x256xf32>
    %207 = vector.broadcast %206 : vector<1x256xf32> to vector<16x256xf32>
    %208 = arith.mulf %204, %207 : vector<16x256xf32>
    %209 = arith.truncf %208 : vector<16x256xf32> to vector<16x256xbf16>
    %c496 = arith.constant 496 : index
    %c0_94 = arith.constant 0 : index
    %210 = vector.load %arg14[%c496, %c0_94] : memref<608x256xbf16, #tpu.memory_space<vmem>>, vector<16x256xbf16>
    tpu.vector_store %arg14[%c496, %c0_94], %209 {strides = array<i32>} : memref<608x256xbf16, #tpu.memory_space<vmem>>, vector<16x256xbf16>,
    %c512 = arith.constant 512 : index
    %c0_95 = arith.constant 0 : index
    %211 = vector.load %arg14[%c512, %c0_95] : memref<608x256xbf16, #tpu.memory_space<vmem>>, vector<16x256xbf16>
    tpu.vector_store %arg14[%c512, %c0_95], %2 {strides = array<i32>} : memref<608x256xbf16, #tpu.memory_space<vmem>>, vector<16x256xbf16>,
    %c245_i32 = arith.constant 245 : i32
    %212 = tpu.dynamic_rotate %1 by %c245_i32 dim 1 : vector<16x256xf32>, i32 -> vector<16x256xf32>
    %c32_96 = arith.constant 32 : index
    %c0_97 = arith.constant 0 : index
    %c0_98 = arith.constant 0 : index
    %213 = vector.load %arg4[%c32_96, %c0_97, %c0_98] : memref<36x1x256xf32, #tpu.memory_space<vmem>>, vector<1x1x256xf32>
    %214 = vector.shape_cast %213 : vector<1x1x256xf32> to vector<1x256xf32>
    %215 = vector.broadcast %214 : vector<1x256xf32> to vector<16x256xf32>
    %216 = arith.mulf %212, %215 : vector<16x256xf32>
    %217 = arith.truncf %216 : vector<16x256xf32> to vector<16x256xbf16>
    %c528 = arith.constant 528 : index
    %c0_99 = arith.constant 0 : index
    %218 = vector.load %arg14[%c528, %c0_99] : memref<608x256xbf16, #tpu.memory_space<vmem>>, vector<16x256xbf16>
    tpu.vector_store %arg14[%c528, %c0_99], %217 {strides = array<i32>} : memref<608x256xbf16, #tpu.memory_space<vmem>>, vector<16x256xbf16>,
    %c91_i32 = arith.constant 91 : i32
    %219 = tpu.dynamic_rotate %1 by %c91_i32 dim 1 : vector<16x256xf32>, i32 -> vector<16x256xf32>
    %c33 = arith.constant 33 : index
    %c0_100 = arith.constant 0 : index
    %c0_101 = arith.constant 0 : index
    %220 = vector.load %arg4[%c33, %c0_100, %c0_101] : memref<36x1x256xf32, #tpu.memory_space<vmem>>, vector<1x1x256xf32>
    %221 = vector.shape_cast %220 : vector<1x1x256xf32> to vector<1x256xf32>
    %222 = vector.broadcast %221 : vector<1x256xf32> to vector<16x256xf32>
    %223 = arith.mulf %219, %222 : vector<16x256xf32>
    %224 = arith.truncf %223 : vector<16x256xf32> to vector<16x256xbf16>
    %c544 = arith.constant 544 : index
    %c0_102 = arith.constant 0 : index
    %225 = vector.load %arg14[%c544, %c0_102] : memref<608x256xbf16, #tpu.memory_space<vmem>>, vector<16x256xbf16>
    tpu.vector_store %arg14[%c544, %c0_102], %224 {strides = array<i32>} : memref<608x256xbf16, #tpu.memory_space<vmem>>, vector<16x256xbf16>,
    %c80_i32 = arith.constant 80 : i32
    %226 = tpu.dynamic_rotate %1 by %c80_i32 dim 1 : vector<16x256xf32>, i32 -> vector<16x256xf32>
    %c34 = arith.constant 34 : index
    %c0_103 = arith.constant 0 : index
    %c0_104 = arith.constant 0 : index
    %227 = vector.load %arg4[%c34, %c0_103, %c0_104] : memref<36x1x256xf32, #tpu.memory_space<vmem>>, vector<1x1x256xf32>
    %228 = vector.shape_cast %227 : vector<1x1x256xf32> to vector<1x256xf32>
    %229 = vector.broadcast %228 : vector<1x256xf32> to vector<16x256xf32>
    %230 = arith.mulf %226, %229 : vector<16x256xf32>
    %231 = arith.truncf %230 : vector<16x256xf32> to vector<16x256xbf16>
    %c560 = arith.constant 560 : index
    %c0_105 = arith.constant 0 : index
    %232 = vector.load %arg14[%c560, %c0_105] : memref<608x256xbf16, #tpu.memory_space<vmem>>, vector<16x256xbf16>
    tpu.vector_store %arg14[%c560, %c0_105], %231 {strides = array<i32>} : memref<608x256xbf16, #tpu.memory_space<vmem>>, vector<16x256xbf16>,
    %c69_i32 = arith.constant 69 : i32
    %233 = tpu.dynamic_rotate %1 by %c69_i32 dim 1 : vector<16x256xf32>, i32 -> vector<16x256xf32>
    %c35 = arith.constant 35 : index
    %c0_106 = arith.constant 0 : index
    %c0_107 = arith.constant 0 : index
    %234 = vector.load %arg4[%c35, %c0_106, %c0_107] : memref<36x1x256xf32, #tpu.memory_space<vmem>>, vector<1x1x256xf32>
    %235 = vector.shape_cast %234 : vector<1x1x256xf32> to vector<1x256xf32>
    %236 = vector.broadcast %235 : vector<1x256xf32> to vector<16x256xf32>
    %237 = arith.mulf %233, %236 : vector<16x256xf32>
    %238 = arith.truncf %237 : vector<16x256xf32> to vector<16x256xbf16>
    %c576 = arith.constant 576 : index
    %c0_108 = arith.constant 0 : index
    %239 = vector.load %arg14[%c576, %c0_108] : memref<608x256xbf16, #tpu.memory_space<vmem>>, vector<16x256xbf16>
    tpu.vector_store %arg14[%c576, %c0_108], %238 {strides = array<i32>} : memref<608x256xbf16, #tpu.memory_space<vmem>>, vector<16x256xbf16>,
    %c0_109 = arith.constant 0 : index
    %c0_110 = arith.constant 0 : index
    %240 = vector.load %arg2[%c0_109, %c0_110] : memref<96x608xbf16, #tpu.memory_space<vmem>>, vector<96x608xbf16>
    %c0_111 = arith.constant 0 : index
    %c0_112 = arith.constant 0 : index
    %241 = vector.load %arg14[%c0_111, %c0_112] : memref<608x256xbf16, #tpu.memory_space<vmem>>, vector<608x256xbf16>
    %cst_113 = arith.constant dense<0.000000e+00> : vector<96x256xf32>
    %242 = tpu.matmul %240, %241, %cst_113 {dimension_numbers = #tpu.dot_dimension_numbers<[1], [0], [0], [1], [0, 0, 1, 1], [], []>} : vector<96x608xbf16>, vector<608x256xbf16>, vector<96x256xf32> -> vector<96x256xf32>
    %c0_114 = arith.constant 0 : index
    %c0_115 = arith.constant 0 : index
    %243 = vector.load %arg3[%c0_114, %c0_115] : memref<96x96xf32, #tpu.memory_space<vmem>>, vector<96x96xf32>
    %cst_116 = arith.constant dense<0.000000e+00> : vector<96xf32>
    %244 = vector.multi_reduction <add>, %242, %cst_116 [1] : vector<96x256xf32> to vector<96xf32>
    %245 = vector.shape_cast %244 : vector<96xf32> to vector<96x1xf32>
    %246 = vector.shape_cast %245 : vector<96x1xf32> to vector<96x1xf32>
    %247 = vector.broadcast %246 : vector<96x1xf32> to vector<96x128xf32>
    %cst_117 = arith.constant dense<0.000000e+00> : vector<96x128xf32>
    %248 = tpu.matmul %243, %247, %cst_117 {dimension_numbers = #tpu.dot_dimension_numbers<[1], [0], [0], [1], [0, 0, 1, 1], [], []>} : vector<96x96xf32>, vector<96x128xf32>, vector<96x128xf32> -> vector<96x128xf32>
    %249 = vector.extract_strided_slice %248 {offsets = [0, 0], sizes = [96, 1], strides = [1, 1]} : vector<96x128xf32> to vector<96x1xf32>
    %cst_118 = arith.constant 0.001953125 : f32
    %250 = vector.broadcast %cst_118 : f32 to vector<96x1xf32>
    %251 = arith.mulf %249, %250 : vector<96x1xf32>
    %252 = vector.broadcast %251 : vector<96x1xf32> to vector<96x256xf32>
    %253 = arith.subf %242, %252 : vector<96x256xf32>
    %254 = arith.mulf %253, %253 : vector<96x256xf32>
    %cst_119 = arith.constant dense<0.000000e+00> : vector<96xf32>
    %255 = vector.multi_reduction <add>, %254, %cst_119 [1] : vector<96x256xf32> to vector<96xf32>
    %256 = vector.shape_cast %255 : vector<96xf32> to vector<96x1xf32>
    %257 = vector.shape_cast %256 : vector<96x1xf32> to vector<96x1xf32>
    %258 = vector.broadcast %257 : vector<96x1xf32> to vector<96x128xf32>
    %cst_120 = arith.constant dense<0.000000e+00> : vector<96x128xf32>
    %259 = tpu.matmul %243, %258, %cst_120 {dimension_numbers = #tpu.dot_dimension_numbers<[1], [0], [0], [1], [0, 0, 1, 1], [], []>} : vector<96x96xf32>, vector<96x128xf32>, vector<96x128xf32> -> vector<96x128xf32>
    %260 = vector.extract_strided_slice %259 {offsets = [0, 0], sizes = [96, 1], strides = [1, 1]} : vector<96x128xf32> to vector<96x1xf32>
    %cst_121 = arith.constant 0.001953125 : f32
    %261 = vector.broadcast %cst_121 : f32 to vector<96x1xf32>
    %262 = arith.mulf %260, %261 : vector<96x1xf32>
    %cst_122 = arith.constant 9.99999974E-6 : f32
    %263 = vector.broadcast %cst_122 : f32 to vector<96x1xf32>
    %264 = arith.addf %262, %263 : vector<96x1xf32>
    %265 = math.rsqrt %264 : vector<96x1xf32>
    %266 = vector.broadcast %265 : vector<96x1xf32> to vector<96x256xf32>
    %267 = arith.mulf %253, %266 : vector<96x256xf32>
    %c0_123 = arith.constant 0 : index
    %c0_124 = arith.constant 0 : index
    %268 = vector.load %arg5[%c0_123, %c0_124] : memref<96x1xf32, #tpu.memory_space<vmem>>, vector<96x1xf32>
    %269 = vector.broadcast %268 : vector<96x1xf32> to vector<96x256xf32>
    %270 = arith.mulf %267, %269 : vector<96x256xf32>
    %c0_125 = arith.constant 0 : index
    %c0_126 = arith.constant 0 : index
    %271 = vector.load %arg6[%c0_125, %c0_126] : memref<96x1xf32, #tpu.memory_space<vmem>>, vector<96x1xf32>
    %272 = vector.broadcast %271 : vector<96x1xf32> to vector<96x256xf32>
    %273 = arith.addf %270, %272 : vector<96x256xf32>
    %cst_127 = arith.constant 0.000000e+00 : f32
    %274 = vector.broadcast %cst_127 : f32 to vector<96x256xf32>
    %275 = arith.maximumf %273, %274 : vector<96x256xf32>
    %cst_128 = arith.constant 3.906250e-03 : f32
    %276 = vector.broadcast %cst_128 : f32 to vector<1x256xf32>
    %cst_129 = arith.constant dense<0.000000e+00> : vector<1x96xf32>
    %277 = tpu.matmul %276, %275, %cst_129 {dimension_numbers = #tpu.dot_dimension_numbers<[1], [1], [0], [0], [0, 0, 1, 0], [], []>} : vector<1x256xf32>, vector<96x256xf32>, vector<1x96xf32> -> vector<1x96xf32>
    %c0_130 = arith.constant 0 : index
    %c0_131 = arith.constant 0 : index
    %278 = vector.load %arg7[%c0_130, %c0_131] : memref<96x6xf32, #tpu.memory_space<vmem>>, vector<96x6xf32>
    %cst_132 = arith.constant dense<0.000000e+00> : vector<1x6xf32>
    %279 = tpu.matmul %277, %278, %cst_132 {dimension_numbers = #tpu.dot_dimension_numbers<[1], [0], [0], [1], [0, 0, 1, 1], [], []>} : vector<1x96xf32>, vector<96x6xf32>, vector<1x6xf32> -> vector<1x6xf32>
    %c0_133 = arith.constant 0 : index
    %c0_134 = arith.constant 0 : index
    %280 = vector.load %arg8[%c0_133, %c0_134] : memref<1x6xf32, #tpu.memory_space<vmem>>, vector<1x6xf32>
    %281 = arith.addf %279, %280 : vector<1x6xf32>
    %cst_135 = arith.constant 0.000000e+00 : f32
    %282 = vector.broadcast %cst_135 : f32 to vector<1x6xf32>
    %283 = arith.maximumf %281, %282 : vector<1x6xf32>
    %c0_136 = arith.constant 0 : index
    %c0_137 = arith.constant 0 : index
    %284 = vector.load %arg9[%c0_136, %c0_137] : memref<6x96xf32, #tpu.memory_space<vmem>>, vector<6x96xf32>
    %cst_138 = arith.constant dense<0.000000e+00> : vector<1x96xf32>
    %285 = tpu.matmul %283, %284, %cst_138 {dimension_numbers = #tpu.dot_dimension_numbers<[1], [0], [0], [1], [0, 0, 1, 1], [], []>} : vector<1x6xf32>, vector<6x96xf32>, vector<1x96xf32> -> vector<1x96xf32>
    %c0_139 = arith.constant 0 : index
    %c0_140 = arith.constant 0 : index
    %286 = vector.load %arg10[%c0_139, %c0_140] : memref<1x96xf32, #tpu.memory_space<vmem>>, vector<1x96xf32>
    %287 = arith.addf %285, %286 : vector<1x96xf32>
    %288 = arith.negf %287 : vector<1x96xf32>
    %289 = math.exp %288 : vector<1x96xf32>
    %cst_141 = arith.constant 1.000000e+00 : f32
    %290 = vector.broadcast %cst_141 : f32 to vector<1x96xf32>
    %291 = arith.addf %290, %289 : vector<1x96xf32>
    %292 = arith.divf %290, %291 : vector<1x96xf32>
    %c0_142 = arith.constant 0 : index
    %c0_143 = arith.constant 0 : index
    %293 = vector.load %arg11[%c0_142, %c0_143] : memref<16x96xf32, #tpu.memory_space<vmem>>, vector<16x96xf32>
    %cst_144 = arith.constant 1.000000e+00 : f32
    %294 = vector.broadcast %cst_144 : f32 to vector<1x96xf32>
    %295 = arith.addf %294, %292 : vector<1x96xf32>
    %296 = vector.broadcast %295 : vector<1x96xf32> to vector<16x96xf32>
    %297 = arith.mulf %293, %296 : vector<16x96xf32>
    %298 = arith.truncf %297 : vector<16x96xf32> to vector<16x96xbf16>
    %299 = arith.truncf %275 : vector<96x256xf32> to vector<96x256xbf16>
    %cst_145 = arith.constant dense<0.000000e+00> : vector<16x256xf32>
    %300 = tpu.matmul %298, %299, %cst_145 {dimension_numbers = #tpu.dot_dimension_numbers<[1], [0], [0], [1], [0, 0, 1, 1], [], []>} : vector<16x96xbf16>, vector<96x256xbf16>, vector<16x256xf32> -> vector<16x256xf32>
    %c0_146 = arith.constant 0 : index
    %c0_147 = arith.constant 0 : index
    %301 = vector.load %arg12[%c0_146, %c0_147] : memref<16x1xf32, #tpu.memory_space<vmem>>, vector<16x1xf32>
    %302 = vector.broadcast %301 : vector<16x1xf32> to vector<16x256xf32>
    %303 = arith.addf %300, %302 : vector<16x256xf32>
    %c0_148 = arith.constant 0 : index
    %c0_149 = arith.constant 0 : index
    %c0_150 = arith.constant 0 : index
    %304 = vector.load %arg13[%c0_148, %c0_149, %c0_150] : memref<1x16x256xf32, #tpu.memory_space<vmem>>, vector<1x16x256xf32>
    %305 = vector.shape_cast %304 : vector<1x16x256xf32> to vector<16x256xf32>
    %306 = vector.shape_cast %303 : vector<16x256xf32> to vector<1x16x256xf32>
    tpu.vector_store %arg13[%c0_148, %c0_149, %c0_150], %306 {strides = array<i32>} : memref<1x16x256xf32, #tpu.memory_space<vmem>>, vector<1x16x256xf32>,
    return
  }
  func.func @transform_0(%arg0: i32) -> (i32, i32, i32) {
    %c0_i32 = arith.constant 0 : i32
    %c0_i32_0 = arith.constant 0 : i32
    %c0_i32_1 = arith.constant 0 : i32
    return %arg0, %c0_i32, %c0_i32_0 : i32, i32, i32
  }
  func.func @transform_1(%arg0: i32) -> (i32, i32) {
    %c0_i32 = arith.constant 0 : i32
    %c0_i32_0 = arith.constant 0 : i32
    %c0_i32_1 = arith.constant 0 : i32
    return %c0_i32, %c0_i32_0 : i32, i32
  }
  func.func @transform_2(%arg0: i32) -> (i32, i32) {
    %c0_i32 = arith.constant 0 : i32
    %c0_i32_0 = arith.constant 0 : i32
    %c0_i32_1 = arith.constant 0 : i32
    return %c0_i32, %c0_i32_0 : i32, i32
  }
  func.func @transform_3(%arg0: i32) -> (i32, i32, i32) {
    %c0_i32 = arith.constant 0 : i32
    %c0_i32_0 = arith.constant 0 : i32
    %c0_i32_1 = arith.constant 0 : i32
    %c0_i32_2 = arith.constant 0 : i32
    return %c0_i32, %c0_i32_0, %c0_i32_1 : i32, i32, i32
  }
  func.func @transform_4(%arg0: i32) -> (i32, i32) {
    %c0_i32 = arith.constant 0 : i32
    %c0_i32_0 = arith.constant 0 : i32
    %c0_i32_1 = arith.constant 0 : i32
    return %c0_i32, %c0_i32_0 : i32, i32
  }
  func.func @transform_5(%arg0: i32) -> (i32, i32) {
    %c0_i32 = arith.constant 0 : i32
    %c0_i32_0 = arith.constant 0 : i32
    %c0_i32_1 = arith.constant 0 : i32
    return %c0_i32, %c0_i32_0 : i32, i32
  }
  func.func @transform_6(%arg0: i32) -> (i32, i32) {
    %c0_i32 = arith.constant 0 : i32
    %c0_i32_0 = arith.constant 0 : i32
    %c0_i32_1 = arith.constant 0 : i32
    return %c0_i32, %c0_i32_0 : i32, i32
  }
  func.func @transform_7(%arg0: i32) -> (i32, i32) {
    %c0_i32 = arith.constant 0 : i32
    %c0_i32_0 = arith.constant 0 : i32
    %c0_i32_1 = arith.constant 0 : i32
    return %c0_i32, %c0_i32_0 : i32, i32
  }
  func.func @transform_8(%arg0: i32) -> (i32, i32) {
    %c0_i32 = arith.constant 0 : i32
    %c0_i32_0 = arith.constant 0 : i32
    %c0_i32_1 = arith.constant 0 : i32
    return %c0_i32, %c0_i32_0 : i32, i32
  }
  func.func @transform_9(%arg0: i32) -> (i32, i32) {
    %c0_i32 = arith.constant 0 : i32
    %c0_i32_0 = arith.constant 0 : i32
    %c0_i32_1 = arith.constant 0 : i32
    return %c0_i32, %c0_i32_0 : i32, i32
  }
  func.func @transform_10(%arg0: i32) -> (i32, i32) {
    %c0_i32 = arith.constant 0 : i32
    %c0_i32_0 = arith.constant 0 : i32
    %c0_i32_1 = arith.constant 0 : i32
    return %c0_i32, %c0_i32_0 : i32, i32
  }
  func.func @transform_11(%arg0: i32) -> (i32, i32) {
    %c0_i32 = arith.constant 0 : i32
    %c0_i32_0 = arith.constant 0 : i32
    %c0_i32_1 = arith.constant 0 : i32
    return %c0_i32, %c0_i32_0 : i32, i32
  }
  func.func @transform_12(%arg0: i32) -> (i32, i32, i32) {
    %c0_i32 = arith.constant 0 : i32
    %c0_i32_0 = arith.constant 0 : i32
    %c0_i32_1 = arith.constant 0 : i32
    return %arg0, %c0_i32, %c0_i32_0 : i32, i32, i32
  }
}

</mosaic_0001>

<bundles_post_ra>
// kernel: tpu_custom_call.1
= control target key start
LH: loop header
LB: loop body
LE: loop exit
PB: predicated region body
PF: predicated region fallthrough
CT: control target
= control target key end

     0   :  { %s6455_s0 = inlined_call_operand.hbm [shape: f32[2,16,256], index: 0, kind: input, shape index: {}]   ;;  %s6456_s1 = inlined_call_operand.vmem [shape: bf16[96,608], index: 1, kind: input, shape index: {}]   ;;  %s6457_s2 = inlined_call_operand.hbm [shape: f32[96,96], index: 2, kind: input, shape index: {}]   ;;  %s6458_s3 = inlined_call_operand.vmem [shape: f32[36,1,256], index: 3, kind: input, shape index: {}]   ;;  %s6459_s4 = inlined_call_operand.vmem [shape: f32[96,1], index: 4, kind: input, shape index: {}]   ;;  %s6460_s5 = inlined_call_operand.vmem [shape: f32[96,1], index: 5, kind: input, shape index: {}]   ;;  %s6461_s6 = inlined_call_operand.vmem [shape: f32[96,6], index: 6, kind: input, shape index: {}]   ;;  %s6462_s7 = inlined_call_operand.vmem [shape: f32[1,6], index: 7, kind: input, shape index: {}]   ;;  %s6463_s8 = inlined_call_operand.hbm [shape: f32[6,96], index: 8, kind: input, shape index: {}]   ;;  %s6464_s9 = inlined_call_operand.hbm [shape: f32[1,96], index: 9, kind: input, shape index: {}]   ;;  %s6465_s10 = inlined_call_operand.vmem [shape: f32[16,96], index: 10, kind: input, shape index: {}]   ;;  %s6466_s11 = inlined_call_operand.vmem [shape: f32[16,1], index: 11, kind: input, shape index: {}]   ;;  %s6467_s12 = inlined_call_operand.hbm [shape: f32[2,16,256], index: 12, kind: output, shape index: {}]  }
   0x1   :  { %6478 = sst [smem:[#allocation33_spill]] %s6457_s2 }
   0x2   :  { %6479 = sst [smem:[#allocation34_spill]] %s6463_s8 }
   0x3   :  { %6480 = sst [smem:[#allocation35_spill]] %s6464_s9 }
   0x4   :  { %17 = vsyncpa [#allocation4], 0 }
   0x5   :  { %19 = vsyncpa [#allocation4 + $0x1], 0 }
   0x6   :  { %20 = vsyncpa [#allocation7], 0 }
   0x7   :  { %21 = vsyncpa [#allocation10], 0 }
   0x8   :  { %22 = vsyncpa [#allocation5], 0 }
   0x9   :  { %24 = vsyncpa [#allocation5 + $0x1], 0  ;;  %s5145_s21 = smov 0   ;;  %s5147_s22 = smov 0  }
   0xa   :  { %s5149_s23 = smov 0   ;;  %s5151_s24 = smov 0  }
   0xb LB: > { %6481 = sst [smem:[#allocation16_spill]] %s5030_s23  ;;  %s5166_s25 = sadd.s32 4294967295, %s5034_s24   ;;  %s5034_s24 = sphi %s5151_s24, %s6537_s24   ;;  %s5030_s23 = sphi %s5149_s23, %s6534_s23   ;;  %s5026_s22 = sphi %s5147_s22, %s6536_s22   ;;  %s5022_s21 = sphi %s5145_s21, %s6535_s21  }
   0xc   : > { %s4093_s26 = sadd.s32 4294967294, %s5034_s24   ;;  %p50_p0 = scmp.ne.s32.totalorder %s5026_s22, %s5022_s21 }
   0xd   : > { %p6468_p1 = scmp.eq.s32.totalorder %s5166_s25, 0  ;;  %p311_p3 = scmp.eq.s32.totalorder %s4093_s26, 1 }
   0xe   : > { %p4094_p5 = scmp.ge.s32.totalorder %s5034_s24, 1  ;;  %p318_p7 = scmp.lt.s32.totalorder %s5034_s24, 3 }
   0xf   : > { %p5175_p4 = por %p6468_p1, %p50_p0  ;;  %p5180_p6 = por %p311_p3, %p50_p0 }
  0x10   : > { %p5185_p8 = pnand %p4094_p5, %p318_p7  ;;  %s5036_s30 = smov [#allocation6]  }
  0x11   : > { %s6482_s27 = scalar_select %p5175_p4, 1, 0 }
  0x12   : > { %s6483_s28 = scalar_select %p5180_p6, 1, 0 }
  0x13   : > { %s6485_s29 = scalar_select %p5185_p8, 1, 0 }
  0x14   : > { %6484 = sst [smem:[#allocation17_spill]] %s6483_s28  ;;  %s333_s13 = sshll.u32 %s5036_s30, 4  ;;  %s334_s13 = int_to_ptr.vmem [resolvable:$true] %s333_s13 }
  0x15   : > { %p4680_p9 = pneg %p5185_p8  ;;  %s5037_s15 = smov [#allocation8]  }
  0x16   : > { %s362_s16 = sshll.u32 %s5037_s15, 4  ;;  %s5038_s17 = smov [#allocation9]   ;;  %s363_s16 = int_to_ptr.vmem [resolvable:$true] %s362_s16 }
  0x17   : > { %p5194_p11 = pnand %p4680_p9, %p6468_p1  ;;  %s373_s18 = sshll.u32 %s5038_s17, 4  ;;  %s374_s18 = int_to_ptr.vmem [resolvable:$true] %s373_s18 }
  0x18   : > { %s4867_s19 = scalar_lea.vmem %s334_s13, 1536  ;;  %p4875_p5 = scmp.lt.s32.totalorder %s334_s13, %s334_s13 }
  0x19   : > { %p4858_p12 = pneg %p5194_p11  ;;  %p4868_p13 = scmp.ne.s32.totalorder %s334_s13, %s4867_s19 }
  0x1a   : > { %p4876_p7 = scmp.lt.s32.totalorder %s4867_s19, %s4867_s19 }
  0x1b   : > { %p4870_p0 = pnand %p4868_p13, %p4858_p12 }
  0x1c   : > { %p4877_p9 = por %p4876_p7, %p4875_p5 }
  0x1d   : > { %p4871_p3 = pneg %p4870_p0 }
  0x1f   : > { %p4878_p10 = pnand %p4877_p9, %p4871_p3 }
  0x21   : > { %4881 = shalt.err (!%p4878_p10)
}
  0x22   : > { %s5039_s20 = smov 128   ;;  %s5040_s26 = smov 8  }
  0x23   : > { %s6487_s2 = sld [smem:[#allocation33_spill]]  ;;  %s4893_s17 = scalar_lea.vmem %s363_s16, 128 }
  0x24   : > { %p4894_p1 = scmp.ne.s32.totalorder %s363_s16, %s4893_s17  ;;  %p4901_p2 = scmp.lt.s32.totalorder %s363_s16, %s363_s16 }
  0x25   : > { %p4902_p6 = scmp.lt.s32.totalorder %s4893_s17, %s4893_s17 }
  0x26   : > { %p4896_p13 = pnand %p4894_p1, %p4858_p12 }
  0x27   : > { %p4903_p5 = por %p4902_p6, %p4901_p2 }
  0x28   : > { %p4897_p0 = pneg %p4896_p13 }
  0x29   : > { %4683 = dma.hbm_to_vmem [thread:$0]  (!%p5194_p11), %s6487_s2, 1536, %s334_s13, [#allocation7], %s5039_s20, %s5039_s20, %s5040_s26  }
  0x2a   : > { %p4904_p3 = pnand %p4903_p5, %p4897_p0 }
  0x2c   : > { %4907 = shalt.err (!%p4904_p3)
}
  0x2d   : > { %s6488_s8 = sld [smem:[#allocation34_spill]]  ;;  %s4919_s13 = scalar_lea.vmem %s374_s18, 16 }
  0x2e   : > { %p4920_p10 = scmp.ne.s32.totalorder %s374_s18, %s4919_s13  ;;  %s4926_s20 = scalar_lea.vmem %s374_s18, 32 }
  0x2f   : > { %p4927_p9 = scmp.lt.s32.totalorder %s374_s18, %s374_s18  ;;  %p4928_p13 = scmp.lt.s32.totalorder %s4926_s20, %s4919_s13 }
  0x30   : > { %p4922_p7 = pnand %p4920_p10, %p4858_p12 }
  0x31   : > { %p4929_p2 = por %p4928_p13, %p4927_p9 }
  0x32   : > { %p4923_p1 = pneg %p4922_p7 }
  0x33   : > { %4686 = dma.hbm_to_vmem [thread:$0]  (!%p5194_p11), %s6488_s8, 128, %s363_s16, [#allocation7]  }
  0x34   : > { %p4930_p6 = pnand %p4929_p2, %p4923_p1 }
  0x36   : > { %4933 = shalt.err (!%p4930_p6)
}
  0x37   : > { %s6489_s9 = sld [smem:[#allocation35_spill]]  ;;  %s5225_s28 = sadd.s32 1, %s5034_s24  }
  0x38   : > { %s34_s16 = ssub.s32 %s5034_s24, %s5225_s28  ;;  %s37_s14 = sadd.s32 1, %s5030_s23 }
  0x39   : > { %p35_p12 = scmp.eq.s32.totalorder %s34_s16, 0  ;;  %p44_p0 = scmp.ne.s32.totalorder %s5030_s23, %s5026_s22 }
  0x3a   : > { %p45_p5 = scmp.eq.s32.totalorder %s5034_s24, 0  ;;  %p4701_p3 = scmp.lt.s32.totalorder %s5034_s24, 2 }
  0x3b   : > { %s5235_s15 = scalar_select %p35_p12, %s5030_s23, %s37_s14  }
  0x3c   : > { %p46_p10 = por %p45_p5, %p44_p0  ;;  %p6491_p7 = scmp.eq.s32.totalorder %s5166_s25, 1 }
  0x3d   : > { %4689 = dma.hbm_to_vmem [thread:$0]  (!%p5194_p11), %s6489_s9, 16, %s374_s18, [#allocation10]  }
  0x3e   : > { %6490 = sst [smem:[#allocation18_spill]] %s5235_s15  ;;  %p5239_p1 = por %p6491_p7, %p44_p0 }
  0x3f   : > { %s390_s19 = sand.u32 1, %s5030_s23   ;;  %s4351_s13 = sshll.u32 %s5034_s24, 9 }
  0x40   : > { %s6492_s17 = scalar_select %p5239_p1, 1, 0 }
  0x41   : > { %s4099_s18 = sshll.u32 %s390_s19, 5  ;;  %s5248_s30 = scalar_lea.hbm %s6455_s0, %s4351_s13 }
  0x42   : > { %s394_s16 = scalar_lea.vmem [#allocation3], %s4099_s18  ;;  %p5250_p11 = pnand %p4701_p3, %p46_p10 }
  0x43   : > { %s401_s14 = sshll.u32 %s394_s16, 4  ;;  %s5256_s8 = scalar_lea.sflag [#allocation4], %s390_s19  ;;  %s5254_s14 = int_to_ptr.vmem [resolvable:$true] %s401_s14 }
  0x44   : > { %s4934_s9 = scalar_lea.hbm %s5248_s30, 512  ;;  %p4936_p13 = pneg %p5250_p11 }
  0x45   : > { %p4935_p9 = scmp.ne.s32.totalorder %s5248_s30, %s4934_s9  ;;  %s4939_s18 = scalar_lea.hbm %s6455_s0, 1024 }
  0x46   : > { %p4940_p12 = scmp.lt.s32.totalorder %s5248_s30, %s6455_s0  ;;  %p4941_p0 = scmp.lt.s32.totalorder %s4939_s18, %s4934_s9 }
  0x47   : > { %p4937_p2 = pnand %p4936_p13, %p4935_p9 }
  0x48   : > { %p4942_p5 = por %p4941_p0, %p4940_p12 }
  0x49   : > { %p4938_p6 = pneg %p4937_p2 }
  0x4b   : > { %p4943_p3 = pnand %p4942_p5, %p4938_p6 }
  0x4d   : > { %4946 = shalt.err (!%p4943_p3)
}
  0x4e   : > { %s4947_s19 = scalar_lea.vmem %s5254_s14, 512  ;;  %s5041_s15 = smov [#allocation3]  }
  0x4f   : > { %p4948_p10 = scmp.ne.s32.totalorder %s5254_s14, %s4947_s19  ;;  %s4952_s23 = sshll.u32 %s5041_s15, 4  ;;  %s4953_s23 = int_to_ptr.vmem [resolvable:$false] %s4952_s23 }
  0x50   : > { %s4954_s13 = scalar_lea.vmem %s4953_s23, 1024  ;;  %p4955_p2 = scmp.lt.s32.totalorder %s5254_s14, %s4953_s23 }
  0x51   : > { %p4950_p7 = pnand %p4948_p10, %p4936_p13  ;;  %p4956_p1 = scmp.lt.s32.totalorder %s4954_s13, %s4947_s19 }
  0x53   : > { %p4951_p9 = pneg %p4950_p7  ;;  %p4957_p4 = por %p4956_p1, %p4955_p2 }
  0x55   : > { %p4958_p8 = pnand %p4957_p4, %p4951_p9 }
  0x57   : > { %4961 = shalt.err (!%p4958_p8)
}
  0x58   : > { %s5042_s9 = smov 256   ;;  %s5043_s20 = smov 16  }
  0x59   : > { %4693 = dma.hbm_to_vmem [thread:$0]  (!%p5250_p11), %s5248_s30, 512, %s5254_s14, %s5256_s8, %s5042_s9, %s5042_s9, %s5043_s20  }
  0x5a   : > { %p6494_p13 = scmp.ne.s32.totalorder %s6485_s29, 0 }
  0x5c   : > { %413 = sbr.rel (%p6494_p13) target bundleno = 2694 (0xa86), region = 68 }
  0x61   : > { %s5280_s15 = sand.u32 1, %s5026_s22   ;;  %p6495_p4 = scmp.ne.s32.totalorder %s6482_s27, 0 }
  0x62   : > { %s4103_s23 = sshll.u32 %s5280_s15, 5  ;;  %s416_s18 = scalar_lea.sflag [#allocation4], %s5280_s15 }
  0x63   : > { %s5286_s26 = scalar_lea.vmem [#allocation3], %s4103_s23 }
  0x64   : > { %5005 = dma.done.wait (%p6495_p4), %s416_s18, 512  }
  0x65   : > { %5007 = vsyncadd (%p6495_p4), %s416_s18, 4294966784  ;;  %p6496_p8 = scmp.eq.s32.totalorder %s5166_s25, 0 }
  0x67   : > { %5009 = dma.done.wait (%p6496_p8), [#allocation7], 1664   ;;  %p6497_p1 = pmov %p6496_p8 }
  0x69   : > { %5011 = vsyncadd (%p6497_p1), [#allocation7], 4294965632  ;;  %p6498_p11 = pmov %p6497_p1 }
  0x6a   : > { %p6499_p6 = pmov %p6497_p1 }
  0x6b   : > { %5013 = dma.done.wait (%p6498_p11), [#allocation10], 16  }
  0x6c   : > { %5015 = vsyncadd (%p6499_p6), [#allocation10], 4294967280  ;;  %v5301_v0 = vld [vmem:[%s5286_s26 + $0x8] sm:$0xff]  ;;  %v5304_v1 = vld [vmem:[%s5286_s26] sm:$0xff]  ;;  %s5044_s2 = smov 113   ;;  %s5045_s8 = smov 127   ;;  %v504_v6 = vlaneseq }
  0x6d   : > { %746 = vrot.lane.b32.xlu1 %v5301_v0, %s5044_s2  ;;  %742 = vrot.lane.b32.xlu0 %v5304_v1, %s5044_s2  ;;  %v5309_v2 = vld [vmem:[%s5286_s26 + $0x18] sm:$0xff]  ;;  %v5312_v3 = vld [vmem:[%s5286_s26 + $0x10] sm:$0xff]  ;;  %s5046_s27 = smov 1   ;;  %s5047_s29 = smov 15  }
  0x6e   : > { %v5318_v4 = vpack.c.bf16 %v5309_v2, %v5301_v0  ;;  %v5324_v5 = vpack.c.bf16 %v5312_v3, %v5304_v1  ;;  %s5048_s30 = smov 16   ;;  %s5049_s14 = smov 17   ;;  %v5380_v7 = vshrl.u32 %v504_v6, 7  ;;  %v5384_v8 = vand.u32 127, %v504_v6  ;;  %v4124_v11 = vld [vmem:[%s6458_s3 + $0xc] sm:$0x3] }
  0x6f   : > { %s5050_s16 = smov 125   ;;  %s5051_s19 = smov 3   ;;  %v4121_v26 = vld [vmem:[%s6458_s3 + $0xa] sm:$0x3]  ;;  %v4118_v43 = vld [vmem:[%s6458_s3 + $0x6] sm:$0x3] }
  0x70   : > { %2638 = vmatprep.subr.bf16.mxu1 %v5318_v4  ;;  %s5052_s13 = smov 45   ;;  %s5053_s9 = smov 48   ;;  %v5387_v9 = vsub.s32 1, %v5380_v7  ;;  %v5392_v10 = vsub.s32 0, %v5380_v7  ;;  %vm750_vm0 = vcmp.lt.s32.totalorder %v5384_v8, 113  ;;  %vm706_vm1 = vcmp.lt.s32.totalorder %v5384_v8, 127 }
  0x71   : > { %748 = vrot.lane.b32.xlu1 %v5309_v2, %s5044_s2  ;;  %744 = vrot.lane.b32.xlu0 %v5312_v3, %s5044_s2  ;;  %s5054_s20 = smov 7   ;;  %s5055_s18 = smov 51   ;;  %vm660_vm2 = vcmp.lt.s32.totalorder %v5384_v8, 1  ;;  %v4115_v60 = vld [vmem:[%s6458_s3 + $0x4] sm:$0x3]  ;;  %vm616_vm3 = vcmp.lt.s32.totalorder %v5384_v8, 15 }
  0x72   : > { %2639 = vmatpush1.bf16.msra.mxu1 %v5324_v5  ;;  %s5056_s2 = smov 105   ;;  %6500 = vst [vmem:[#allocation19_spill] sm:$0xff] %v5392_v10  ;;  %v765_v14 = vrot.slane %v4124_v11, %v5387_v9  ;;  %v761_v16 = vrot.slane %v4124_v11, %v5392_v10  ;;  %v717_v31 = vrot.slane %v4121_v26, %v5392_v10  ;;  %vm572_vm4 = vcmp.lt.s32.totalorder %v5384_v8, 16  ;;  %p6529_p0 = scmp.ne.s32.totalorder %s6492_s17, 0 }
  0x73   : > { %v721_v32 = vrot.slane %v4121_v26, %v5387_v9  ;;  %v671_v48 = vrot.slane %v4118_v43, %v5392_v10  ;;  %v675_v49 = vrot.slane %v4118_v43, %v5387_v9  ;;  %v627_v11 = vrot.slane %v4115_v60, %v5392_v10 }
  0x74   : > { %vm529_vm5 = vcmp.lt.s32.totalorder %v5384_v8, 17  ;;  %vm1060_vm6 = vcmp.lt.s32.totalorder %v5384_v8, 125  ;;  %vm1014_vm7 = vcmp.lt.s32.totalorder %v5384_v8, 3  ;;  %vm970_vm8 = vcmp.lt.s32.totalorder %v5384_v8, 45 }
  0x75   : > { %700 = vrot.lane.b32.xlu1 %v5312_v3, %s5045_s8  ;;  %698 = vrot.lane.b32.xlu0 %v5304_v1, %s5045_s8  ;;  %vm926_vm9 = vcmp.lt.s32.totalorder %v5384_v8, 48  ;;  %vm1355_vm10 = vcmp.lt.s32.totalorder %v5384_v8, 7  ;;  %vm882_vm11 = vcmp.lt.s32.totalorder %v5384_v8, 51  ;;  %vm1311_vm12 = vcmp.lt.s32.totalorder %v5384_v8, 105 }
  0x76   : > { %vm838_vm13 = vcmp.lt.s32.totalorder %v5384_v8, 111  ;;  %vm794_vm14 = vcmp.lt.s32.totalorder %v5384_v8, 112  ;;  %vm1236_vm15 = vcmp.lt.s32.totalorder %v5384_v8, 119 }
  0x79   : > { %704 = vrot.lane.b32.xlu1 %v5309_v2, %s5045_s8  ;;  %702 = vrot.lane.b32.xlu0 %v5301_v0, %s5045_s8  ;;  %s5057_s8 = smov 111  }
  0x7d   : > { %654 = vrot.lane.b32.xlu1 %v5312_v3, %s5046_s27  ;;  %652 = vrot.lane.b32.xlu0 %v5304_v1, %s5046_s27 }
  0x81   : > { %658 = vrot.lane.b32.xlu1 %v5309_v2, %s5046_s27  ;;  %656 = vrot.lane.b32.xlu0 %v5301_v0, %s5046_s27  ;;  %s5058_s27 = smov 112  }
  0x85   : > { %610 = vrot.lane.b32.xlu1 %v5312_v3, %s5047_s29  ;;  %608 = vrot.lane.b32.xlu0 %v5304_v1, %s5047_s29 }
  0x89   : > { %614 = vrot.lane.b32.xlu1 %v5309_v2, %s5047_s29  ;;  %612 = vrot.lane.b32.xlu0 %v5301_v0, %s5047_s29  ;;  %s5068_s29 = smov 91  }
  0x8d   : > { %566 = vrot.lane.b32.xlu1 %v5312_v3, %s5048_s30  ;;  %564 = vrot.lane.b32.xlu0 %v5304_v1, %s5048_s30 }
  0x91   : > { %570 = vrot.lane.b32.xlu1 %v5309_v2, %s5048_s30  ;;  %568 = vrot.lane.b32.xlu0 %v5301_v0, %s5048_s30 }
  0x95   : > { %521 = vrot.lane.b32.xlu1 %v5312_v3, %s5049_s14  ;;  %519 = vrot.lane.b32.xlu0 %v5304_v1, %s5049_s14 }
  0x99   : > { %525 = vrot.lane.b32.xlu1 %v5309_v2, %s5049_s14  ;;  %523 = vrot.lane.b32.xlu0 %v5301_v0, %s5049_s14  ;;  %s5063_s14 = smov 11  }
  0x9d   : > { %1054 = vrot.lane.b32.xlu1 %v5312_v3, %s5050_s16  ;;  %1052 = vrot.lane.b32.xlu0 %v5304_v1, %s5050_s16 }
  0xa1   : > { %1058 = vrot.lane.b32.xlu1 %v5309_v2, %s5050_s16  ;;  %1056 = vrot.lane.b32.xlu0 %v5301_v0, %s5050_s16  ;;  %s5059_s16 = smov 119  }
  0xa5   : > { %1008 = vrot.lane.b32.xlu1 %v5312_v3, %s5051_s19  ;;  %1006 = vrot.lane.b32.xlu0 %v5304_v1, %s5051_s19 }
  0xa9   : > { %1012 = vrot.lane.b32.xlu1 %v5309_v2, %s5051_s19  ;;  %1010 = vrot.lane.b32.xlu0 %v5301_v0, %s5051_s19 }
  0xad   : > { %964 = vrot.lane.b32.xlu1 %v5312_v3, %s5052_s13  ;;  %962 = vrot.lane.b32.xlu0 %v5304_v1, %s5052_s13 }
  0xb1   : > { %968 = vrot.lane.b32.xlu1 %v5309_v2, %s5052_s13  ;;  %966 = vrot.lane.b32.xlu0 %v5301_v0, %s5052_s13  ;;  %s5064_s13 = smov 37  }
  0xb5   : > { %920 = vrot.lane.b32.xlu1 %v5312_v3, %s5053_s9  ;;  %918 = vrot.lane.b32.xlu0 %v5304_v1, %s5053_s9 }
  0xb9   : > { %924 = vrot.lane.b32.xlu1 %v5309_v2, %s5053_s9  ;;  %922 = vrot.lane.b32.xlu0 %v5301_v0, %s5053_s9  ;;  %s5060_s9 = smov 77  }
  0xbd   : > { %1349 = vrot.lane.b32.xlu1 %v5312_v3, %s5054_s20  ;;  %1347 = vrot.lane.b32.xlu0 %v5304_v1, %s5054_s20 }
  0xc1   : > { %1353 = vrot.lane.b32.xlu1 %v5309_v2, %s5054_s20  ;;  %1351 = vrot.lane.b32.xlu0 %v5301_v0, %s5054_s20  ;;  %s5071_s20 = smov 121  }
  0xc5   : > { %876 = vrot.lane.b32.xlu1 %v5312_v3, %s5055_s18  ;;  %874 = vrot.lane.b32.xlu0 %v5304_v1, %s5055_s18 }
  0xc9   : > { %880 = vrot.lane.b32.xlu1 %v5309_v2, %s5055_s18  ;;  %878 = vrot.lane.b32.xlu0 %v5301_v0, %s5055_s18  ;;  %s5062_s18 = smov 83  }
  0xcd   : > { %1305 = vrot.lane.b32.xlu1 %v5312_v3, %s5056_s2  ;;  %1303 = vrot.lane.b32.xlu0 %v5304_v1, %s5056_s2 }
  0xd1   : > { %1309 = vrot.lane.b32.xlu1 %v5309_v2, %s5056_s2  ;;  %1307 = vrot.lane.b32.xlu0 %v5301_v0, %s5056_s2  ;;  %s5061_s2 = smov 80  }
  0xd5   : > { %832 = vrot.lane.b32.xlu1 %v5312_v3, %s5057_s8  ;;  %830 = vrot.lane.b32.xlu0 %v5304_v1, %s5057_s8 }
  0xd9   : > { %836 = vrot.lane.b32.xlu1 %v5309_v2, %s5057_s8  ;;  %834 = vrot.lane.b32.xlu0 %v5301_v0, %s5057_s8  ;;  %s4418_s8 = sshll.u32 %s5166_s25, 9  ;;  %s5078_s25 = smov [#allocation11]  }
  0xda   : > { %s4966_s19 = sshll.u32 %s5078_s25, 4  ;;  %s4967_s19 = int_to_ptr.vmem [resolvable:$false] %s4966_s19 }
  0xdd   : > { %788 = vrot.lane.b32.xlu1 %v5312_v3, %s5058_s27  ;;  %786 = vrot.lane.b32.xlu0 %v5304_v1, %s5058_s27 }
  0xdf   : > { %v747_v12 = vpop.permute.xlu1 %746  ;;  %v743_v13 = vpop.permute.xlu0 %742 }
  0xe0   : > { %v753_v15 = vsel %vm750_vm0, %v747_v12, %v743_v13  ;;  %v751_v17 = vsel %vm750_vm0, %v743_v13, %v747_v12  ;;  %v631_v12 = vrot.slane %v4115_v60, %v5387_v9 }
  0xe1   : > { %792 = vrot.lane.b32.xlu1 %v5309_v2, %s5058_s27  ;;  %790 = vrot.lane.b32.xlu0 %v5301_v0, %s5058_s27  ;;  %v769_v22 = vmul.f32 %v765_v14, %v753_v15  ;;  %v768_v24 = vmul.f32 %v761_v16, %v751_v17 }
  0xe3   : > { %v749_v18 = vpop.permute.xlu1 %748  ;;  %v745_v19 = vpop.permute.xlu0 %744 }
  0xe4   : > { %v752_v20 = vsel %vm750_vm0, %v745_v19, %v749_v18  ;;  %v754_v21 = vsel %vm750_vm0, %v749_v18, %v745_v19  ;;  %vm1192_vm0 = vcmp.lt.s32.totalorder %v5384_v8, 77 }
  0xe5   : > { %1230 = vrot.lane.b32.xlu1 %v5312_v3, %s5059_s16  ;;  %1228 = vrot.lane.b32.xlu0 %v5304_v1, %s5059_s16  ;;  %v771_v23 = vmul.f32 %v765_v14, %v754_v21  ;;  %v770_v25 = vmul.f32 %v761_v16, %v752_v20 }
  0xe7   : > { %v701_v27 = vpop.permute.xlu1 %700  ;;  %v699_v28 = vpop.permute.xlu0 %698  ;;  %v4432_v29 = vpack.c.bf16 %v771_v23, %v769_v22  ;;  %v4431_v30 = vpack.c.bf16 %v770_v25, %v768_v24  ;;  %v4112_v23 = vld [vmem:[%s6458_s3 + $0x2] sm:$0x3]  ;;  %v4175_v24 = vld [vmem:[%s6458_s3 + $0x32] sm:$0x3] }
  0xe9   : > { %1234 = vrot.lane.b32.xlu1 %v5309_v2, %s5059_s16  ;;  %1232 = vrot.lane.b32.xlu0 %v5301_v0, %s5059_s16  ;;  %s5070_s16 = smov 117  }
  0xea   : > { %2545 = vmatprep.subr.bf16.mxu0 %v4432_v29  ;;  %v583_v29 = vrot.slane %v4112_v23, %v5392_v10 }
  0xeb   : > { %2546 = vmatpush1.bf16.msra.mxu0 %v4431_v30  ;;  %v705_v33 = vpop.permute.xlu1 %704  ;;  %v703_v34 = vpop.permute.xlu0 %702  ;;  %v587_v30 = vrot.slane %v4112_v23, %v5387_v9 }
  0xec   : > { %v708_v35 = vsel %vm706_vm1, %v701_v27, %v705_v33  ;;  %v710_v36 = vsel %vm706_vm1, %v705_v33, %v701_v27  ;;  %v707_v37 = vsel %vm706_vm1, %v699_v28, %v703_v34  ;;  %v709_v38 = vsel %vm706_vm1, %v703_v34, %v699_v28 }
  0xed   : > { %v726_v39 = vmul.f32 %v717_v31, %v708_v35  ;;  %v727_v40 = vmul.f32 %v721_v32, %v710_v36  ;;  %v724_v41 = vmul.f32 %v717_v31, %v707_v37  ;;  %v725_v42 = vmul.f32 %v721_v32, %v709_v38  ;;  %1186 = vrot.lane.b32.xlu1 %v5312_v3, %s5060_s9 }
  0xee   : > { %1184 = vrot.lane.b32.xlu0 %v5304_v1, %s5060_s9  ;;  %v1487_v31 = vrot.slane %v4175_v24, %v5392_v10  ;;  %v1491_v32 = vrot.slane %v4175_v24, %v5387_v9  ;;  %vm1148_vm1 = vcmp.lt.s32.totalorder %v5384_v8, 80 }
  0xef   : > { %v655_v44 = vpop.permute.xlu1 %654  ;;  %v653_v45 = vpop.permute.xlu0 %652  ;;  %v4430_v46 = vpack.c.bf16 %v727_v40, %v725_v42  ;;  %v4429_v47 = vpack.c.bf16 %v726_v39, %v724_v41 }
  0xf1   : > { %1190 = vrot.lane.b32.xlu1 %v5309_v2, %s5060_s9  ;;  %2547 = vmatprep.subr.bf16.mxu0 %v4430_v46 }
  0xf2   : > { %1188 = vrot.lane.b32.xlu0 %v5301_v0, %s5060_s9  ;;  %2548 = vmatpush1.bf16.msra.mxu0 %v4429_v47  ;;  %v534_v47 = vld [vmem:[%s6458_s3] sm:$0x3] }
  0xf3   : > { %v659_v50 = vpop.permute.xlu1 %658  ;;  %v657_v51 = vpop.permute.xlu0 %656  ;;  %2549 = vmatprep.subr.bf16.mxu0 %v5318_v4 }
  0xf4   : > { %v662_v52 = vsel %vm660_vm2, %v655_v44, %v659_v50  ;;  %v664_v53 = vsel %vm660_vm2, %v659_v50, %v655_v44  ;;  %v661_v54 = vsel %vm660_vm2, %v653_v45, %v657_v51  ;;  %v663_v55 = vsel %vm660_vm2, %v657_v51, %v653_v45 }
  0xf5   : > { %v680_v56 = vmul.f32 %v671_v48, %v664_v53  ;;  %v681_v57 = vmul.f32 %v675_v49, %v662_v52  ;;  %v678_v58 = vmul.f32 %v671_v48, %v663_v55  ;;  %v679_v59 = vmul.f32 %v675_v49, %v661_v54  ;;  %1142 = vrot.lane.b32.xlu1 %v5312_v3, %s5061_s2 }
  0xf6   : > { %1140 = vrot.lane.b32.xlu0 %v5304_v1, %s5061_s2  ;;  %2550 = vmatpush1.bf16.msra.mxu0 %v5324_v5  ;;  %v539_v54 = vrot.slane %v534_v47, %v5392_v10  ;;  %v543_v55 = vrot.slane %v534_v47, %v5387_v9  ;;  %vm1104_vm2 = vcmp.lt.s32.totalorder %v5384_v8, 83 }
  0xf7   : > { %v611_v61 = vpop.permute.xlu1 %610  ;;  %v609_v62 = vpop.permute.xlu0 %608  ;;  %v4428_v63 = vpack.c.bf16 %v681_v57, %v679_v59  ;;  %v4427_v6 = vpack.c.bf16 %v680_v56, %v678_v58 }
  0xf9   : > { %1146 = vrot.lane.b32.xlu1 %v5309_v2, %s5061_s2  ;;  %2551 = vmatprep.subr.bf16.mxu0 %v4428_v63 }
  0xfa   : > { %1144 = vrot.lane.b32.xlu0 %v5301_v0, %s5061_s2  ;;  %2552 = vmatpush1.bf16.msra.mxu0 %v4427_v6  ;;  %s5069_s2 = smov 23  }
  0xfb   : > { %v615_v13 = vpop.permute.xlu1 %614  ;;  %v613_v14 = vpop.permute.xlu0 %612 }
  0xfc   : > { %v618_v15 = vsel %vm616_vm3, %v611_v61, %v615_v13  ;;  %v620_v16 = vsel %vm616_vm3, %v615_v13, %v611_v61  ;;  %v617_v17 = vsel %vm616_vm3, %v609_v62, %v613_v14  ;;  %v619_v18 = vsel %vm616_vm3, %v613_v14, %v609_v62 }
  0xfd   : > { %v636_v19 = vmul.f32 %v627_v11, %v620_v16  ;;  %v637_v20 = vmul.f32 %v631_v12, %v618_v15  ;;  %v634_v21 = vmul.f32 %v627_v11, %v619_v18  ;;  %v635_v22 = vmul.f32 %v631_v12, %v617_v17  ;;  %v4145_v12 = vld [vmem:[%s6458_s3 + $0x1c] sm:$0x3] }
  0xfe   : > { %v1071_v17 = vrot.slane %v4145_v12, %v5392_v10  ;;  %v1075_v18 = vrot.slane %v4145_v12, %v5387_v9  ;;  %vm1683_vm3 = vcmp.lt.s32.totalorder %v5384_v8, 11 }
  0xff   : > { %v567_v25 = vpop.permute.xlu1 %566  ;;  %v565_v26 = vpop.permute.xlu0 %564  ;;  %v4426_v27 = vpack.c.bf16 %v637_v20, %v635_v22  ;;  %v4425_v28 = vpack.c.bf16 %v636_v19, %v634_v21  ;;  %v491_v21 = vadd.f32 %v5301_v0, %v5304_v1 }
 0x101   : > { %2553 = vmatprep.subr.bf16.mxu0 %v4426_v27 }
 0x102   : > { %2554 = vmatpush1.bf16.msra.mxu0 %v4425_v28 }
 0x103   : > { %v571_v33 = vpop.permute.xlu1 %570  ;;  %v569_v34 = vpop.permute.xlu0 %568 }
 0x104   : > { %v574_v35 = vsel %vm572_vm4, %v567_v25, %v571_v33  ;;  %v576_v36 = vsel %vm572_vm4, %v571_v33, %v567_v25  ;;  %v573_v37 = vsel %vm572_vm4, %v565_v26, %v569_v34  ;;  %v575_v38 = vsel %vm572_vm4, %v569_v34, %v565_v26 }
 0x105   : > { %v592_v39 = vmul.f32 %v583_v29, %v576_v36  ;;  %v593_v40 = vmul.f32 %v587_v30, %v574_v35  ;;  %v5445_v41 = vmul.f32 %v1487_v31, %v574_v35  ;;  %v5447_v42 = vmul.f32 %v1491_v32, %v576_v36 }
 0x106   : > { %v590_v43 = vmul.f32 %v583_v29, %v575_v38  ;;  %v591_v44 = vmul.f32 %v587_v30, %v573_v37  ;;  %v5449_v45 = vmul.f32 %v1487_v31, %v573_v37  ;;  %v5451_v46 = vmul.f32 %v1491_v32, %v575_v38  ;;  %v4142_v30 = vld [vmem:[%s6458_s3 + $0x18] sm:$0x3] }
 0x107   : > { %v522_v48 = vpop.permute.xlu1 %521  ;;  %v520_v49 = vpop.permute.xlu0 %519  ;;  %v1025_v35 = vrot.slane %v4142_v30, %v5392_v10  ;;  %v1029_v36 = vrot.slane %v4142_v30, %v5387_v9  ;;  %v494_v37 = vadd.f32 %v5309_v2, %v5312_v3  ;;  %vm1639_vm4 = vcmp.lt.s32.totalorder %v5384_v8, 37 }
 0x108   : > { %v4424_v50 = vpack.c.bf16 %v593_v40, %v591_v44  ;;  %v4423_v51 = vpack.c.bf16 %v592_v39, %v590_v43  ;;  %v4466_v52 = vpack.c.bf16 %v5447_v42, %v5451_v46  ;;  %v4465_v53 = vpack.c.bf16 %v5445_v41, %v5449_v45 }
 0x10a   : > { %2555 = vmatprep.subr.bf16.mxu0 %v4424_v50 }
 0x10b   : > { %2556 = vmatpush1.bf16.msra.mxu0 %v4423_v51  ;;  %v526_v56 = vpop.permute.xlu1 %525  ;;  %v524_v57 = vpop.permute.xlu0 %523 }
 0x10c   : > { %v531_v58 = vsel %vm529_vm5, %v522_v48, %v526_v56  ;;  %v533_v59 = vsel %vm529_vm5, %v526_v56, %v522_v48  ;;  %v530_v60 = vsel %vm529_vm5, %v520_v49, %v524_v57  ;;  %v532_v61 = vsel %vm529_vm5, %v524_v57, %v520_v49 }
 0x10d   : > { %v548_v62 = vmul.f32 %v539_v54, %v533_v59  ;;  %v549_v63 = vmul.f32 %v543_v55, %v531_v58  ;;  %v546_v6 = vmul.f32 %v539_v54, %v532_v61  ;;  %v547_v11 = vmul.f32 %v543_v55, %v530_v60  ;;  %v4139_v54 = vld [vmem:[%s6458_s3 + $0x16] sm:$0x3] }
 0x10e   : > { %v981_v59 = vrot.slane %v4139_v54, %v5392_v10  ;;  %v985_v60 = vrot.slane %v4139_v54, %v5387_v9  ;;  %vm1564_vm5 = vcmp.lt.s32.totalorder %v5384_v8, 59 }
 0x10f   : > { %v1055_v13 = vpop.permute.xlu1 %1054  ;;  %v1053_v14 = vpop.permute.xlu0 %1052  ;;  %v4422_v15 = vpack.c.bf16 %v549_v63, %v547_v11  ;;  %v4421_v16 = vpack.c.bf16 %v548_v62, %v546_v6 }
 0x111   : > { %2557 = vmatprep.subr.bf16.mxu0 %v4422_v15 }
 0x112   : > { %2558 = vmatpush1.bf16.msra.mxu0 %v4421_v16 }
 0x113   : > { %v1059_v19 = vpop.permute.xlu1 %1058  ;;  %v1057_v20 = vpop.permute.xlu0 %1056  ;;  %2559 = vmatprep.subr.bf16.mxu0 %v5318_v4 }
 0x114   : > { %v1062_v22 = vsel %vm1060_vm6, %v1055_v13, %v1059_v19  ;;  %v1064_v23 = vsel %vm1060_vm6, %v1059_v19, %v1055_v13  ;;  %v1061_v24 = vsel %vm1060_vm6, %v1053_v14, %v1057_v20  ;;  %v1063_v25 = vsel %vm1060_vm6, %v1057_v20, %v1053_v14 }
 0x115   : > { %v1080_v26 = vmul.f32 %v1071_v17, %v1062_v22  ;;  %v1081_v27 = vmul.f32 %v1075_v18, %v1064_v23  ;;  %v1078_v28 = vmul.f32 %v1071_v17, %v1061_v24  ;;  %v1079_v29 = vmul.f32 %v1075_v18, %v1063_v25  ;;  %v4136_v17 = vld [vmem:[%s6458_s3 + $0x14] sm:$0x3]  ;;  %v4184_v18 = vld [vmem:[%s6458_s3 + $0x38] sm:$0x3] }
 0x116   : > { %2560 = vmatpush1.bf16.msra.mxu0 %v5324_v5  ;;  %v937_v23 = vrot.slane %v4136_v17, %v5392_v10  ;;  %v941_v24 = vrot.slane %v4136_v17, %v5387_v9  ;;  %v1606_v25 = vrot.slane %v4184_v18, %v5392_v10  ;;  %vm1848_vm6 = vcmp.lt.s32.totalorder %v5384_v8, 69 }
 0x117   : > { %v1009_v31 = vpop.permute.xlu1 %1008  ;;  %v1007_v32 = vpop.permute.xlu0 %1006  ;;  %v4446_v33 = vpack.c.bf16 %v1081_v27, %v1079_v29  ;;  %v4445_v34 = vpack.c.bf16 %v1080_v26, %v1078_v28  ;;  %v1610_v26 = vrot.slane %v4184_v18, %v5387_v9 }
 0x119   : > { %2561 = vmatprep.subr.bf16.mxu0 %v4446_v33  ;;  %492 = vadd.xlane.f32.xlu0 %v491_v21 }
 0x11a   : > { %2562 = vmatpush2.bf16.msra.mxu0 %v4445_v34 }
 0x11b   : > { %v1013_v38 = vpop.permute.xlu1 %1012  ;;  %v1011_v39 = vpop.permute.xlu0 %1010  ;;  %2563 = vmatprep.subr.bf16.mxu0 %v5318_v4 }
 0x11c   : > { %v1016_v40 = vsel %vm1014_vm7, %v1009_v31, %v1013_v38  ;;  %v1018_v43 = vsel %vm1014_vm7, %v1013_v38, %v1009_v31  ;;  %v1015_v44 = vsel %vm1014_vm7, %v1007_v32, %v1011_v39  ;;  %v1017_v47 = vsel %vm1014_vm7, %v1011_v39, %v1007_v32 }
 0x11d   : > { %v1034_v48 = vmul.f32 %v1025_v35, %v1018_v43  ;;  %v1035_v49 = vmul.f32 %v1029_v36, %v1016_v40  ;;  %v1032_v50 = vmul.f32 %v1025_v35, %v1017_v47  ;;  %v1033_v51 = vmul.f32 %v1029_v36, %v1015_v44  ;;  %495 = vadd.xlane.f32.xlu1 %v494_v37  ;;  %v4166_v43 = vld [vmem:[%s6458_s3 + $0x2a] sm:$0x3] }
 0x11e   : > { %2564 = vmatpush2.bf16.msra.mxu0 %v5324_v5  ;;  %vm1520_vm7 = vcmp.lt.s32.totalorder %v5384_v8, 9 }
 0x11f   : > { %v965_v55 = vpop.permute.xlu1 %964  ;;  %v963_v56 = vpop.permute.xlu0 %962  ;;  %v4444_v57 = vpack.c.bf16 %v1035_v49, %v1033_v51  ;;  %v4443_v58 = vpack.c.bf16 %v1034_v48, %v1032_v50  ;;  %v4784_v48 = vld [vmem:[%s6456_s1 + $0x4] ss:$20 sps:$4 sm:$0xff]  }
 0x120   : > { %2577 = vmatprep.mubr.bf16.mxu0 %v4784_v48 }
 0x121   : > { %2565 = vmatprep.subr.bf16.mxu0 %v4444_v57 }
 0x122   : > { %2566 = vmatpush2.bf16.msra.mxu0 %v4443_v58 }
 0x123   : > { %v969_v61 = vpop.permute.xlu1 %968  ;;  %v967_v62 = vpop.permute.xlu0 %966 }
 0x124   : > { %v972_v63 = vsel %vm970_vm8, %v965_v55, %v969_v61  ;;  %v974_v6 = vsel %vm970_vm8, %v969_v61, %v965_v55  ;;  %v971_v11 = vsel %vm970_vm8, %v963_v56, %v967_v62  ;;  %v973_v12 = vsel %vm970_vm8, %v967_v62, %v963_v56 }
 0x125   : > { %v990_v13 = vmul.f32 %v981_v59, %v974_v6  ;;  %v991_v14 = vmul.f32 %v985_v60, %v972_v63  ;;  %v988_v15 = vmul.f32 %v981_v59, %v973_v12  ;;  %v989_v16 = vmul.f32 %v985_v60, %v971_v11 }
 0x126   : > { %v1366_v55 = vrot.slane %v4166_v43, %v5392_v10  ;;  %v1370_v56 = vrot.slane %v4166_v43, %v5387_v9  ;;  %vm1773_vm8 = vcmp.lt.s32.totalorder %v5384_v8, 91 }
 0x127   : > { %v921_v19 = vpop.permute.xlu1 %920  ;;  %v919_v20 = vpop.permute.xlu0 %918  ;;  %v4442_v21 = vpack.c.bf16 %v991_v14, %v989_v16  ;;  %v4441_v22 = vpack.c.bf16 %v990_v13, %v988_v15  ;;  %v4133_v13 = vld [vmem:[%s6458_s3 + $0x12] sm:$0x3] }
 0x128   : > { %v893_v18 = vrot.slane %v4133_v13, %v5392_v10 }
 0x129   : > { %2567 = vmatprep.subr.bf16.mxu0 %v4442_v21 }
 0x12a   : > { %2568 = vmatpush2.bf16.msra.mxu0 %v4441_v22 }
 0x12b   : > { %v925_v27 = vpop.permute.xlu1 %924  ;;  %v923_v28 = vpop.permute.xlu0 %922 }
 0x12c   : > { %v928_v29 = vsel %vm926_vm9, %v921_v19, %v925_v27  ;;  %v930_v30 = vsel %vm926_vm9, %v925_v27, %v921_v19  ;;  %v927_v31 = vsel %vm926_vm9, %v919_v20, %v923_v28  ;;  %v929_v32 = vsel %vm926_vm9, %v923_v28, %v919_v20 }
 0x12d   : > { %v946_v33 = vmul.f32 %v937_v23, %v930_v30  ;;  %v947_v34 = vmul.f32 %v941_v24, %v928_v29  ;;  %v5500_v35 = vmul.f32 %v1606_v25, %v928_v29  ;;  %v5502_v36 = vmul.f32 %v1610_v26, %v930_v30  ;;  %v4163_v30 = vld [vmem:[%s6458_s3 + $0x28] sm:$0x3] }
 0x12e   : > { %v944_v37 = vmul.f32 %v937_v23, %v929_v32  ;;  %v945_v38 = vmul.f32 %v941_v24, %v927_v31  ;;  %v5504_v39 = vmul.f32 %v1606_v25, %v927_v31  ;;  %v5506_v40 = vmul.f32 %v1610_v26, %v929_v32  ;;  %1098 = vrot.lane.b32.xlu1 %v5312_v3, %s5062_s18 }
 0x12f   : > { %v1350_v44 = vpop.permute.xlu1 %1349  ;;  %v1348_v47 = vpop.permute.xlu0 %1347  ;;  %1096 = vrot.lane.b32.xlu0 %v5304_v1, %s5062_s18  ;;  %v897_v19 = vrot.slane %v4133_v13, %v5387_v9  ;;  %vm1445_vm9 = vcmp.lt.s32.totalorder %v5384_v8, 23 }
 0x130   : > { %v4440_v49 = vpack.c.bf16 %v947_v34, %v945_v38  ;;  %v4439_v50 = vpack.c.bf16 %v946_v33, %v944_v37  ;;  %v4472_v51 = vpack.c.bf16 %v5502_v36, %v5506_v40  ;;  %v4471_v54 = vpack.c.bf16 %v5500_v35, %v5504_v39 }
 0x131   : > { %v1322_v37 = vrot.slane %v4163_v30, %v5392_v10  ;;  %v1326_v38 = vrot.slane %v4163_v30, %v5387_v9 }
 0x132   : > { %2569 = vmatprep.subr.bf16.mxu0 %v4440_v49  ;;  %1102 = vrot.lane.b32.xlu1 %v5309_v2, %s5062_s18 }
 0x133   : > { %2570 = vmatpush2.bf16.msra.mxu0 %v4439_v50  ;;  %v1354_v57 = vpop.permute.xlu1 %1353  ;;  %v1352_v58 = vpop.permute.xlu0 %1351  ;;  %1100 = vrot.lane.b32.xlu0 %v5301_v0, %s5062_s18  ;;  %s5065_s18 = smov 59  }
 0x134   : > { %v1357_v59 = vsel %vm1355_vm10, %v1350_v44, %v1354_v57  ;;  %v1359_v60 = vsel %vm1355_vm10, %v1354_v57, %v1350_v44  ;;  %v1356_v61 = vsel %vm1355_vm10, %v1348_v47, %v1352_v58  ;;  %v1358_v62 = vsel %vm1355_vm10, %v1352_v58, %v1348_v47 }
 0x135   : > { %v1375_v63 = vmul.f32 %v1366_v55, %v1359_v60  ;;  %v1376_v6 = vmul.f32 %v1370_v56, %v1357_v59  ;;  %v1373_v11 = vmul.f32 %v1366_v55, %v1358_v62  ;;  %v1374_v12 = vmul.f32 %v1370_v56, %v1356_v61  ;;  %v4130_v59 = vld [vmem:[%s6458_s3 + $0x10] sm:$0x3] }
 0x136   : > { %1677 = vrot.lane.b32.xlu1 %v5312_v3, %s5063_s14  ;;  %vm1729_vm10 = vcmp.lt.s32.totalorder %v5384_v8, 117 }
 0x137   : > { %v877_v14 = vpop.permute.xlu1 %876  ;;  %v875_v15 = vpop.permute.xlu0 %874  ;;  %v4460_v16 = vpack.c.bf16 %v1376_v6, %v1374_v12  ;;  %v4459_v17 = vpack.c.bf16 %v1375_v63, %v1373_v11  ;;  %1675 = vrot.lane.b32.xlu0 %v5304_v1, %s5063_s14  ;;  %v849_v6 = vrot.slane %v4130_v59, %v5392_v10  ;;  %v853_v11 = vrot.slane %v4130_v59, %v5387_v9 }
 0x139   : > { %2640 = vmatprep.subr.bf16.mxu1 %v4460_v16 }
 0x13a   : > { %2641 = vmatpush1.bf16.msra.mxu1 %v4459_v17  ;;  %1681 = vrot.lane.b32.xlu1 %v5309_v2, %s5063_s14 }
 0x13b   : > { %v881_v20 = vpop.permute.xlu1 %880  ;;  %v879_v21 = vpop.permute.xlu0 %878  ;;  %1679 = vrot.lane.b32.xlu0 %v5301_v0, %s5063_s14  ;;  %s5066_s14 = smov 69  }
 0x13c   : > { %v884_v22 = vsel %vm882_vm11, %v877_v14, %v881_v20  ;;  %v886_v23 = vsel %vm882_vm11, %v881_v20, %v877_v14  ;;  %v883_v24 = vsel %vm882_vm11, %v875_v15, %v879_v21  ;;  %v885_v25 = vsel %vm882_vm11, %v879_v21, %v875_v15 }
 0x13d   : > { %v902_v26 = vmul.f32 %v893_v18, %v886_v23  ;;  %v903_v27 = vmul.f32 %v897_v19, %v884_v22  ;;  %v900_v28 = vmul.f32 %v893_v18, %v885_v25  ;;  %v901_v29 = vmul.f32 %v897_v19, %v883_v24  ;;  %v4127_v22 = vld [vmem:[%s6458_s3 + $0xe] sm:$0x3]  ;;  %v4160_v23 = vld [vmem:[%s6458_s3 + $0x26] sm:$0x3] }
 0x13e   : > { %1633 = vrot.lane.b32.xlu1 %v5312_v3, %s5064_s13  ;;  %v1278_v30 = vrot.slane %v4160_v23, %v5392_v10  ;;  %vm1401_vm11 = vcmp.lt.s32.totalorder %v5384_v8, 121  ;;  %v4800_v8 = vld [vmem:[%s6456_s1 + $0x10] ss:$20 sps:$4 sm:$0xff]  }
 0x13f   : > { %v1306_v31 = vpop.permute.xlu1 %1305  ;;  %v1304_v32 = vpop.permute.xlu0 %1303  ;;  %v4438_v33 = vpack.c.bf16 %v903_v27, %v901_v29  ;;  %v4437_v34 = vpack.c.bf16 %v902_v26, %v900_v28  ;;  %1631 = vrot.lane.b32.xlu0 %v5304_v1, %s5064_s13  ;;  %v805_v28 = vrot.slane %v4127_v22, %v5392_v10  ;;  %v809_v29 = vrot.slane %v4127_v22, %v5387_v9  ;;  %v5592_v22 = vld [vmem:[%s5286_s26 + $0x18] sm:$0xff] }
 0x141   : > { %2571 = vmatprep.subr.bf16.mxu0 %v4438_v33 }
 0x142   : > { %2572 = vmatpush2.bf16.msra.mxu0 %v4437_v34  ;;  %1637 = vrot.lane.b32.xlu1 %v5309_v2, %s5064_s13 }
 0x143   : > { %v1310_v43 = vpop.permute.xlu1 %1309  ;;  %v1308_v44 = vpop.permute.xlu0 %1307  ;;  %1635 = vrot.lane.b32.xlu0 %v5301_v0, %s5064_s13  ;;  %s5067_s13 = smov 9  }
 0x144   : > { %v1313_v47 = vsel %vm1311_vm12, %v1306_v31, %v1310_v43  ;;  %v1315_v48 = vsel %vm1311_vm12, %v1310_v43, %v1306_v31  ;;  %v1312_v49 = vsel %vm1311_vm12, %v1304_v32, %v1308_v44  ;;  %v1314_v50 = vsel %vm1311_vm12, %v1308_v44, %v1304_v32 }
 0x145   : > { %v1331_v55 = vmul.f32 %v1322_v37, %v1315_v48  ;;  %v1332_v56 = vmul.f32 %v1326_v38, %v1313_v47  ;;  %v1329_v57 = vmul.f32 %v1322_v37, %v1314_v50  ;;  %v1330_v58 = vmul.f32 %v1326_v38, %v1312_v49 }
 0x146   : > { %1558 = vrot.lane.b32.xlu1 %v5312_v3, %s5065_s18  ;;  %v1282_v31 = vrot.slane %v4160_v23, %v5387_v9  ;;  %v4154_v23 = vld [vmem:[%s6458_s3 + $0x22] sm:$0x3]  ;;  %vm2526_vm12 = vcmask 785408  }
 0x147   : > { %v833_v60 = vpop.permute.xlu1 %832  ;;  %v831_v61 = vpop.permute.xlu0 %830  ;;  %v4458_v62 = vpack.c.bf16 %v1332_v56, %v1330_v58  ;;  %v4457_v63 = vpack.c.bf16 %v1331_v55, %v1329_v57  ;;  %1556 = vrot.lane.b32.xlu0 %v5304_v1, %s5065_s18 }
 0x149   : > { %2642 = vmatprep.subr.bf16.mxu1 %v4458_v62 }
 0x14a   : > { %2643 = vmatpush1.bf16.msra.mxu1 %v4457_v63  ;;  %1562 = vrot.lane.b32.xlu1 %v5309_v2, %s5065_s18 }
 0x14b   : > { %v837_v12 = vpop.permute.xlu1 %836  ;;  %v835_v13 = vpop.permute.xlu0 %834  ;;  %1560 = vrot.lane.b32.xlu0 %v5301_v0, %s5065_s18  ;;  %s471_s18 = scalar_lea.vmem [#allocation11], %s4103_s23  ;;  %s6411_s23 = scalar_lea.hbm %s6467_s12, %s4418_s8 }
 0x14c   : > { %v840_v14 = vsel %vm838_vm13, %v833_v60, %v837_v12  ;;  %v842_v15 = vsel %vm838_vm13, %v837_v12, %v833_v60  ;;  %v839_v16 = vsel %vm838_vm13, %v831_v61, %v835_v13  ;;  %v841_v17 = vsel %vm838_vm13, %v835_v13, %v831_v61  ;;  %v4785_v12 = vld [vmem:[%s6456_s1 + $0x2c] ss:$20 sps:$4 sm:$0xff]  }
 0x14d   : > { %v858_v18 = vmul.f32 %v849_v6, %v840_v14  ;;  %v859_v19 = vmul.f32 %v853_v11, %v842_v15  ;;  %v856_v20 = vmul.f32 %v849_v6, %v839_v16  ;;  %v857_v21 = vmul.f32 %v853_v11, %v841_v17  ;;  %v5587_v17 = vld [vmem:[%s5286_s26 + $0x8] sm:$0xff] }
 0x14e   : > { %1842 = vrot.lane.b32.xlu1 %v5312_v3, %s5066_s14  ;;  %vm5077_vm13 = vmmov 0  }
 0x14f   : > { %v789_v24 = vpop.permute.xlu1 %788  ;;  %v787_v25 = vpop.permute.xlu0 %786  ;;  %v4436_v26 = vpack.c.bf16 %v859_v19, %v857_v21  ;;  %v4435_v27 = vpack.c.bf16 %v858_v18, %v856_v20  ;;  %1840 = vrot.lane.b32.xlu0 %v5304_v1, %s5066_s14 }
 0x151   : > { %2573 = vmatprep.subr.bf16.mxu0 %v4436_v26 }
 0x152   : > { %2574 = vmatpush2.bf16.msra.mxu0 %v4435_v27  ;;  %1846 = vrot.lane.b32.xlu1 %v5309_v2, %s5066_s14  ;;  %v4157_v2 = vld [vmem:[%s6458_s3 + $0x24] sm:$0x3] }
 0x153   : > { %v793_v32 = vpop.permute.xlu1 %792  ;;  %v791_v33 = vpop.permute.xlu0 %790  ;;  %1844 = vrot.lane.b32.xlu0 %v5301_v0, %s5066_s14  ;;  %v1247_v63 = vrot.slane %v4157_v2, %v5392_v10  ;;  %v1251_v6 = vrot.slane %v4157_v2, %v5387_v9  ;;  %s3978_s14 = scalar_lea.sflag [#allocation5], %s5280_s15 }
 0x154   : > { %v796_v34 = vsel %vm794_vm14, %v789_v24, %v793_v32  ;;  %v798_v37 = vsel %vm794_vm14, %v793_v32, %v789_v24  ;;  %v795_v38 = vsel %vm794_vm14, %v787_v25, %v791_v33  ;;  %v797_v43 = vsel %vm794_vm14, %v791_v33, %v787_v25  ;;  %v4787_v32 = vld [vmem:[%s6456_s1 + $0x28] ss:$20 sps:$4 sm:$0xff]  }
 0x155   : > { %v814_v44 = vmul.f32 %v805_v28, %v796_v34  ;;  %v815_v47 = vmul.f32 %v809_v29, %v798_v37  ;;  %v1287_v48 = vmul.f32 %v1278_v30, %v798_v37  ;;  %v1288_v49 = vmul.f32 %v1282_v31, %v796_v34  ;;  %v4788_v34 = vld [vmem:[%s6456_s1 + $0x54] ss:$20 sps:$4 sm:$0xff]  }
 0x156   : > { %v812_v50 = vmul.f32 %v805_v28, %v795_v38  ;;  %v813_v55 = vmul.f32 %v809_v29, %v797_v43  ;;  %v1285_v56 = vmul.f32 %v1278_v30, %v797_v43  ;;  %v1286_v57 = vmul.f32 %v1282_v31, %v795_v38  ;;  %1514 = vrot.lane.b32.xlu1 %v5312_v3, %s5067_s13  ;;  %v4782_v3 = vld [vmem:[%s6456_s1] ss:$20 sps:$4 sm:$0xff]  }
 0x157   : > { %v1231_v0 = vpop.permute.xlu1 %1230  ;;  %v1229_v58 = vpop.permute.xlu0 %1228  ;;  %1512 = vrot.lane.b32.xlu0 %v5304_v1, %s5067_s13  ;;  %v5600_v28 = vld [vmem:[%s5286_s26] sm:$0xff]  ;;  %v1203_v29 = vrot.slane %v4154_v23, %v5392_v10  ;;  %v1207_v30 = vrot.slane %v4154_v23, %v5387_v9  ;;  %v5607_v31 = vld [vmem:[%s5286_s26 + $0x10] sm:$0xff]  ;;  %vm3813_vm14 = vcmask 1045504  }
 0x158   : > { %v4434_v59 = vpack.c.bf16 %v815_v47, %v813_v55  ;;  %v4456_v60 = vpack.c.bf16 %v1288_v49, %v1286_v57  ;;  %v4433_v61 = vpack.c.bf16 %v814_v44, %v812_v50  ;;  %v4455_v62 = vpack.c.bf16 %v1287_v48, %v1285_v56  ;;  %v4151_v56 = vld [vmem:[%s6458_s3 + $0x20] sm:$0x3]  ;;  %v4199_v57 = vld [vmem:[%s6458_s3 + $0x44] sm:$0x3] }
 0x15a   : > { %2575 = vmatprep.subr.bf16.mxu0 %v4434_v59  ;;  %2644 = vmatprep.subr.bf16.mxu1 %v4456_v60  ;;  %v1159_v60 = vrot.slane %v4151_v56, %v5392_v10 }
 0x15b   : > { %2576 = vmatpush2.bf16.msra.mxu0 %v4433_v61  ;;  %2645 = vmatpush1.bf16.msra.mxu1 %v4455_v62  ;;  %v1235_v1 = vpop.permute.xlu1 %1234  ;;  %v1233_v11 = vpop.permute.xlu0 %1232  ;;  %v1163_v61 = vrot.slane %v4151_v56, %v5387_v9  ;;  %v1815_v62 = vrot.slane %v4199_v57, %v5392_v10 }
 0x15c   : > { %v1238_v13 = vsel %vm1236_vm15, %v1231_v0, %v1235_v1  ;;  %v1240_v14 = vsel %vm1236_vm15, %v1235_v1, %v1231_v0  ;;  %v1237_v15 = vsel %vm1236_vm15, %v1229_v58, %v1233_v11  ;;  %v1239_v16 = vsel %vm1236_vm15, %v1233_v11, %v1229_v58  ;;  %1516 = vrot.lane.b32.xlu0 %v5587_v17, %s5067_s13  ;;  %v4791_v1 = vld [vmem:[%s6456_s1 + $0x7c] ss:$20 sps:$4 sm:$0xff]  }
 0x15d   : > { %v1256_v18 = vmul.f32 %v1247_v63, %v1240_v14  ;;  %v1257_v19 = vmul.f32 %v1251_v6, %v1238_v13  ;;  %v1254_v20 = vmul.f32 %v1247_v63, %v1239_v16  ;;  %v1255_v21 = vmul.f32 %v1251_v6, %v1237_v15  ;;  %1518 = vrot.lane.b32.xlu1 %v5592_v22, %s5067_s13  ;;  %v4790_v6 = vld [vmem:[%s6456_s1 + $0x50] ss:$20 sps:$4 sm:$0xff]   ;;  %s4968_s13 = scalar_lea.vmem %s4967_s19, 1024 }
 0x15e   : > { %2578 = vmatmul.mubr.bf16.vlgmr.msra.gmra.mxu0 %v4782_v3  ;;  %v1819_v63 = vrot.slane %v4199_v57, %v5387_v9  ;;  %vm3809_vm15 = vcmask 48128  }
 0x15f   : > { %v1187_v24 = vpop.permute.xlu1 %1186  ;;  %v4454_v25 = vpack.c.bf16 %v1257_v19, %v1255_v21  ;;  %v4453_v26 = vpack.c.bf16 %v1256_v18, %v1254_v20  ;;  %2587 = vmatprep.mubr.bf16.mxu0 %v4785_v12 }
 0x160   : > { %v1185_v27 = vpop.permute.xlu0 %1184  ;;  %1765 = vrot.lane.b32.xlu0 %v5600_v28, %s5068_s29 }
 0x161   : > { %2646 = vmatprep.subr.bf16.mxu1 %v4454_v25  ;;  %1767 = vrot.lane.b32.xlu1 %v5607_v31, %s5068_s29 }
 0x162   : > { %2647 = vmatpush1.bf16.msra.mxu1 %v4453_v26 }
 0x163   : > { %v1191_v33 = vpop.permute.xlu1 %1190 }
 0x164   : > { %v1194_v37 = vsel %vm1192_vm0, %v1187_v24, %v1191_v33  ;;  %v1196_v38 = vsel %vm1192_vm0, %v1191_v33, %v1187_v24  ;;  %v1189_v43 = vpop.permute.xlu0 %1188  ;;  %1769 = vrot.lane.b32.xlu0 %v5587_v17, %s5068_s29  ;;  %v4794_v33 = vld [vmem:[%s6456_s1 + $0xa4] ss:$20 sps:$4 sm:$0xff]  }
 0x165   : > { %v1212_v44 = vmul.f32 %v1203_v29, %v1194_v37  ;;  %v1213_v47 = vmul.f32 %v1207_v30, %v1196_v38  ;;  %v1193_v48 = vsel %vm1192_vm0, %v1185_v27, %v1189_v43  ;;  %v1195_v49 = vsel %vm1192_vm0, %v1189_v43, %v1185_v27  ;;  %1771 = vrot.lane.b32.xlu1 %v5592_v22, %s5068_s29  ;;  %v4797_v38 = vld [vmem:[%s6456_s1 + $0xcc] ss:$20 sps:$4 sm:$0xff]  }
 0x166   : > { %v1210_v50 = vmul.f32 %v1203_v29, %v1193_v48  ;;  %v1211_v55 = vmul.f32 %v1207_v30, %v1195_v49  ;;  %2588 = vmatmul.mubr.bf16.gmra.mxu0 %v4787_v32  ;;  %v4793_v32 = vld [vmem:[%s6456_s1 + $0x78] ss:$20 sps:$4 sm:$0xff]   ;;  %v6474_v37 = vmov 0   ;;  %v5073_v43 = vmov 839922192  }
 0x167   : > { %v1143_v2 = vpop.permute.xlu1 %1142  ;;  %2597 = vmatprep.mubr.bf16.mxu0 %v4788_v34  ;;  %v4796_v34 = vld [vmem:[%s6456_s1 + $0xa0] ss:$20 sps:$4 sm:$0xff]   ;;  %4780 = vset.pattern.permute.xlu1 %v6474_v37 }
 0x168   : > { %v1141_v0 = vpop.permute.xlu0 %1140  ;;  %v4452_v58 = vpack.c.bf16 %v1213_v47, %v1211_v55  ;;  %v4451_v59 = vpack.c.bf16 %v1212_v44, %v1210_v50  ;;  %1437 = vrot.lane.b32.xlu0 %v5600_v28, %s5069_s2  ;;  %v502_v44 = vunpack.c.l.s4 %v5073_v43  ;;  %v5074_v47 = vmov 1985246804  }
 0x169   : > { %1439 = vrot.lane.b32.xlu1 %v5607_v31, %s5069_s2  ;;  %4781 = vset.pattern.permute.xlu0 %v6474_v37 }
 0x16a   : > { %2648 = vmatprep.subr.bf16.mxu1 %v4452_v58 }
 0x16b   : > { %2649 = vmatpush1.bf16.msra.mxu1 %v4451_v59  ;;  %v1147_v3 = vpop.permute.xlu1 %1146  ;;  %v4148_v59 = vld [vmem:[%s6458_s3 + $0x1e] sm:$0x3] }
 0x16c   : > { %v1150_v11 = vsel %vm1148_vm1, %v1143_v2, %v1147_v3  ;;  %v1152_v12 = vsel %vm1148_vm1, %v1147_v3, %v1143_v2  ;;  %v1145_v13 = vpop.permute.xlu0 %1144  ;;  %1441 = vrot.lane.b32.xlu0 %v5587_v17, %s5069_s2  ;;  %v1119_v3 = vrot.slane %v4148_v59, %v5387_v9 }
 0x16d   : > { %v1168_v14 = vmul.f32 %v1159_v60, %v1150_v11  ;;  %v1169_v15 = vmul.f32 %v1163_v61, %v1152_v12  ;;  %v5650_v16 = vmul.f32 %v1815_v62, %v1152_v12  ;;  %v5652_v18 = vmul.f32 %v1819_v63, %v1150_v11  ;;  %1443 = vrot.lane.b32.xlu1 %v5592_v22, %s5069_s2  ;;  %s3991_s2 = sshll.u32 %s471_s18, 4  ;;  %s6406_s2 = int_to_ptr.vmem [resolvable:$true] %s3991_s2 }
 0x16e   : > { %v1149_v19 = vsel %vm1148_vm1, %v1141_v0, %v1145_v13  ;;  %v1151_v20 = vsel %vm1148_vm1, %v1145_v13, %v1141_v0  ;;  %2598 = vmatmul.mubr.bf16.gmra.mxu0 %v4790_v6  ;;  %v1115_v6 = vrot.slane %v4148_v59, %v5392_v10  ;;  %p4969_p10 = scmp.lt.s32.totalorder %s6406_s2, %s4967_s19 }
 0x16f   : > { %v1166_v21 = vmul.f32 %v1159_v60, %v1149_v19  ;;  %v1167_v23 = vmul.f32 %v1163_v61, %v1151_v20  ;;  %v5659_v24 = vmul.f32 %v1815_v62, %v1151_v20  ;;  %v5661_v25 = vmul.f32 %v1819_v63, %v1149_v19  ;;  %2607 = vmatprep.mubr.bf16.mxu0 %v4791_v1 }
 0x170   : > { %1721 = vrot.lane.b32.xlu0 %v5600_v28, %s5070_s16 }
 0x171   : > { %v4481_v26 = vpack.c.bf16 %v5650_v16, %v5659_v24  ;;  %v4450_v27 = vpack.c.bf16 %v1169_v15, %v1167_v23  ;;  %v4449_v29 = vpack.c.bf16 %v1168_v14, %v1166_v21  ;;  %1723 = vrot.lane.b32.xlu1 %v5607_v31, %s5070_s16  ;;  %v4482_v30 = vpack.c.bf16 %v5652_v18, %v5661_v25 }
 0x173   : > { %2650 = vmatprep.subr.bf16.mxu1 %v4450_v27 }
 0x174   : > { %2651 = vmatpush1.bf16.msra.mxu1 %v4449_v29  ;;  %1725 = vrot.lane.b32.xlu0 %v5587_v17, %s5070_s16  ;;  %v4190_v29 = vld [vmem:[%s6458_s3 + $0x3c] sm:$0x3] }
 0x175   : > { %1727 = vrot.lane.b32.xlu1 %v5592_v22, %s5070_s16  ;;  %s4962_s16 = scalar_lea.vmem %s6406_s2, 512 }
 0x176   : > { %2608 = vmatmul.mubr.bf16.gmra.mxu0 %v4793_v32  ;;  %p4963_p12 = scmp.ne.s32.totalorder %s6406_s2, %s4962_s16  ;;  %p4970_p7 = scmp.lt.s32.totalorder %s4968_s13, %s4962_s16 }
 0x177   : > { %2617 = vmatprep.mubr.bf16.mxu0 %v4794_v33 }
 0x178   : > { %1393 = vrot.lane.b32.xlu0 %v5600_v28, %s5071_s20  ;;  %v4803_v28 = vld [vmem:[%s6456_s1 + $0xc] ss:$20 sps:$4 sm:$0xff]   ;;  %p4964_p5 = pnand %p4963_p12, %p6529_p0  ;;  %p4971_p9 = por %p4970_p7, %p4969_p10 }
 0x179   : > { %1395 = vrot.lane.b32.xlu1 %v5607_v31, %s5071_s20  ;;  %2670 = vmatprep.mubr.bf16.mxu1 %v4803_v28  ;;  %v4799_v31 = vld [vmem:[%s6456_s1 + $0xc8] ss:$20 sps:$4 sm:$0xff]   ;;  %v1694_v28 = vrot.slane %v4190_v29, %v5392_v10 }
 0x17a   : > { %p4965_p3 = pneg %p4964_p5 }
 0x17c   : > { %1397 = vrot.lane.b32.xlu0 %v5587_v17, %s5071_s20  ;;  %v509_v17 = vunpack.c.l.s4 %v5074_v47  ;;  %p4972_p2 = pnand %p4971_p9, %p4965_p3 }
 0x17d   : > { %1399 = vrot.lane.b32.xlu1 %v5592_v22, %s5071_s20  ;;  %v503_v22 = vunpack.c.0.s8 %v502_v44 }
 0x17e   : > { %2618 = vmatmul.mubr.bf16.gmra.mxu0 %v4796_v34  ;;  %v510_v49 = vunpack.c.0.s8 %v509_v17 }
 0x17f   : > { %2627 = vmatprep.mubr.bf16.mxu0 %v4797_v38  ;;  %v506_v57 = vsub.s32 %v503_v22, %v5380_v7 }
 0x180   : > { %v513_v2 = vsub.s32 %v510_v49, %v5380_v7 }
 0x186   : > { %2628 = vmatmul.mubr.bf16.gmra.mxu0 %v4799_v31  ;;  %v1698_v31 = vrot.slane %v4190_v29, %v5387_v9 }
 0x187   : > { %2763 = vmatprep.mubr.bf16.mxu0 %v6474_v37 }
 0x1a2   : > { %v493_v48 = vpop.xlane.xlu0 %492 }
 0x1a3   : > { %v497_v50 = vmul.f32 0.00390625, %v493_v48 }
 0x1a6   : > { %v496_v55 = vpop.xlane.xlu1 %495  ;;  %v1097_v56 = vpop.permute.xlu0 %1096 }
 0x1a7   : > { %v498_v0 = vmul.f32 0.00390625, %v496_v55 }
 0x1a9   : > { %v499_v58 = vpack.c.bf16 %v498_v0, %v497_v50 }
 0x1aa   : > { %v1099_v60 = vpop.permute.xlu1 %1098  ;;  %v1101_v61 = vpop.permute.xlu0 %1100 }
 0x1ab   : > { %v507_v62 = vrot.slane %v499_v58, %v506_v57  ;;  %v514_v63 = vrot.slane %v499_v58, %v513_v2  ;;  %v1105_v1 = vsel %vm1104_vm2, %v1097_v56, %v1101_v61  ;;  %v1107_v11 = vsel %vm1104_vm2, %v1101_v61, %v1097_v56  ;;  %v4187_v57 = vld [vmem:[%s6458_s3 + $0x3a] sm:$0x3] }
 0x1ac   : > { %v1122_v20 = vmul.f32 %v1115_v6, %v1105_v1  ;;  %v1123_v21 = vmul.f32 %v1119_v3, %v1107_v11  ;;  %v1654_v61 = vrot.slane %v4187_v57, %v5387_v9 }
 0x1ad   : > { %v4310_v12 = vcombine.high %v507_v62, %v514_v63  ;;  %v4309_v7 = vcombine.low %v507_v62, %v514_v63 }
 0x1ae   : > { %v1103_v13 = vpop.permute.xlu1 %1102  ;;  %v1676_v14 = vpop.permute.xlu0 %1675 }
 0x1af   : > { %v1106_v15 = vsel %vm1104_vm2, %v1099_v60, %v1103_v13  ;;  %v1108_v19 = vsel %vm1104_vm2, %v1103_v13, %v1099_v60  ;;  %2735 = vmatprep.subr.bf16.mxu0 %v4310_v12  ;;  %v1650_v60 = vrot.slane %v4187_v57, %v5392_v10 }
 0x1b0   : > { %v1124_v23 = vmul.f32 %v1115_v6, %v1106_v15  ;;  %v1125_v27 = vmul.f32 %v1119_v3, %v1108_v19  ;;  %2736 = vmatpush1.bf16.msra.mxu0 %v4309_v7  ;;  %v4181_v15 = vld [vmem:[%s6458_s3 + $0x36] sm:$0x3] }
 0x1b1   : > { %v1579_v29 = vrot.slane %v4181_v15, %v5387_v9 }
 0x1b2   : > { %v1678_v32 = vpop.permute.xlu1 %1677  ;;  %v1680_v33 = vpop.permute.xlu0 %1679  ;;  %v4448_v34 = vpack.c.bf16 %v1125_v27, %v1123_v21  ;;  %v4447_v38 = vpack.c.bf16 %v1124_v23, %v1122_v20  ;;  %v1575_v27 = vrot.slane %v4181_v15, %v5392_v10 }
 0x1b3   : > { %v1684_v43 = vsel %vm1683_vm3, %v1676_v14, %v1680_v33  ;;  %v1686_v44 = vsel %vm1683_vm3, %v1680_v33, %v1676_v14 }
 0x1b4   : > { %2652 = vmatprep.subr.bf16.mxu1 %v4448_v34  ;;  %v1701_v49 = vmul.f32 %v1694_v28, %v1686_v44  ;;  %v1702_v50 = vmul.f32 %v1698_v31, %v1684_v43 }
 0x1b5   : > { %2653 = vmatpush1.bf16.msra.mxu1 %v4447_v38 }
 0x1b6   : > { %v1682_v47 = vpop.permute.xlu1 %1681  ;;  %v1632_v17 = vpop.permute.xlu0 %1631 }
 0x1b7   : > { %v1685_v48 = vsel %vm1683_vm3, %v1678_v32, %v1682_v47  ;;  %v1687_v22 = vsel %vm1683_vm3, %v1682_v47, %v1678_v32 }
 0x1b8   : > { %v1703_v55 = vmul.f32 %v1694_v28, %v1687_v22  ;;  %v1704_v56 = vmul.f32 %v1698_v31, %v1685_v48  ;;  %v4202_v48 = vld [vmem:[%s6458_s3 + $0x46] sm:$0x3] }
 0x1ba   : > { %v1634_v2 = vpop.permute.xlu1 %1633  ;;  %v1636_v0 = vpop.permute.xlu0 %1635  ;;  %v4476_v58 = vpack.c.bf16 %v1704_v56, %v1702_v50  ;;  %v4475_v59 = vpack.c.bf16 %v1703_v55, %v1701_v49  ;;  %v1859_v49 = vrot.slane %v4202_v48, %v5392_v10  ;;  %v1863_v50 = vrot.slane %v4202_v48, %v5387_v9 }
 0x1bb   : > { %v1640_v62 = vsel %vm1639_vm4, %v1632_v17, %v1636_v0  ;;  %v1642_v63 = vsel %vm1639_vm4, %v1636_v0, %v1632_v17 }
 0x1bc   : > { %2654 = vmatprep.subr.bf16.mxu1 %v4476_v58  ;;  %v1657_v12 = vmul.f32 %v1650_v60, %v1640_v62  ;;  %v1658_v7 = vmul.f32 %v1654_v61, %v1642_v63 }
 0x1bd   : > { %2655 = vmatpush2.bf16.msra.mxu1 %v4475_v59 }
 0x1be   : > { %v1638_v6 = vpop.permute.xlu1 %1637  ;;  %v1557_v3 = vpop.permute.xlu0 %1556 }
 0x1bf   : > { %v1641_v1 = vsel %vm1639_vm4, %v1634_v2, %v1638_v6  ;;  %v1643_v11 = vsel %vm1639_vm4, %v1638_v6, %v1634_v2 }
 0x1c0   : > { %v1659_v13 = vmul.f32 %v1650_v60, %v1641_v1  ;;  %v1660_v14 = vmul.f32 %v1654_v61, %v1643_v11  ;;  %v4178_v60 = vld [vmem:[%s6458_s3 + $0x34] sm:$0x3] }
 0x1c1   : > { %v1535_v1 = vrot.slane %v4178_v60, %v5387_v9 }
 0x1c2   : > { %v1559_v19 = vpop.permute.xlu1 %1558  ;;  %v1561_v20 = vpop.permute.xlu0 %1560  ;;  %v4474_v21 = vpack.c.bf16 %v1660_v14, %v1658_v7  ;;  %v4473_v23 = vpack.c.bf16 %v1659_v13, %v1657_v12 }
 0x1c3   : > { %v1565_v32 = vsel %vm1564_vm5, %v1557_v3, %v1561_v20  ;;  %v1567_v33 = vsel %vm1564_vm5, %v1561_v20, %v1557_v3  ;;  %v1531_v3 = vrot.slane %v4178_v60, %v5392_v10 }
 0x1c4   : > { %2656 = vmatprep.subr.bf16.mxu1 %v4474_v21  ;;  %v1582_v43 = vmul.f32 %v1575_v27, %v1565_v32  ;;  %v1583_v44 = vmul.f32 %v1579_v29, %v1567_v33 }
 0x1c5   : > { %2657 = vmatpush2.bf16.msra.mxu1 %v4473_v23 }
 0x1c6   : > { %v1563_v34 = vpop.permute.xlu1 %1562  ;;  %2658 = vmatprep.subr.bf16.mxu1 %v4472_v51  ;;  %v1841_v38 = vpop.permute.xlu0 %1840 }
 0x1c7   : > { %v1566_v28 = vsel %vm1564_vm5, %v1559_v19, %v1563_v34  ;;  %v1568_v31 = vsel %vm1564_vm5, %v1563_v34, %v1559_v19 }
 0x1c8   : > { %v1584_v47 = vmul.f32 %v1575_v27, %v1566_v28  ;;  %v1585_v17 = vmul.f32 %v1579_v29, %v1568_v31  ;;  %v4196_v27 = vld [vmem:[%s6458_s3 + $0x42] sm:$0x3] }
 0x1c9   : > { %2659 = vmatpush2.bf16.msra.mxu1 %v4471_v54  ;;  %v1784_v32 = vrot.slane %v4196_v27, %v5392_v10  ;;  %v1788_v33 = vrot.slane %v4196_v27, %v5387_v9 }
 0x1ca   : > { %v1843_v22 = vpop.permute.xlu1 %1842  ;;  %v1845_v36 = vpop.permute.xlu0 %1844  ;;  %v4470_v40 = vpack.c.bf16 %v1585_v17, %v1583_v44  ;;  %v4469_v51 = vpack.c.bf16 %v1584_v47, %v1582_v43  ;;  %v4172_v17 = vld [vmem:[%s6458_s3 + $0x30] sm:$0x3] }
 0x1cb   : > { %v1849_v55 = vsel %vm1848_vm6, %v1841_v38, %v1845_v36  ;;  %v1851_v56 = vsel %vm1848_vm6, %v1845_v36, %v1841_v38  ;;  %v1460_v36 = vrot.slane %v4172_v17, %v5387_v9 }
 0x1cc   : > { %2660 = vmatprep.subr.bf16.mxu1 %v4470_v40  ;;  %v1866_v2 = vmul.f32 %v1859_v49, %v1851_v56  ;;  %v1867_v0 = vmul.f32 %v1863_v50, %v1849_v55 }
 0x1cd   : > { %2661 = vmatpush2.bf16.msra.mxu1 %v4469_v51 }
 0x1ce   : > { %v1847_v35 = vpop.permute.xlu1 %1846  ;;  %v1513_v39 = vpop.permute.xlu0 %1512 }
 0x1cf   : > { %v1850_v54 = vsel %vm1848_vm6, %v1843_v22, %v1847_v35  ;;  %v1852_v57 = vsel %vm1848_vm6, %v1847_v35, %v1843_v22 }
 0x1d0   : > { %v1868_v58 = vmul.f32 %v1859_v49, %v1852_v57  ;;  %v1869_v59 = vmul.f32 %v1863_v50, %v1850_v54 }
 0x1d2   : > { %v4483_v61 = vpack.c.bf16 %v1868_v58, %v1866_v2  ;;  %v1515_v62 = vpop.permute.xlu1 %1514  ;;  %v1517_v63 = vpop.permute.xlu0 %1516  ;;  %v4484_v6 = vpack.c.bf16 %v1869_v59, %v1867_v0 }
 0x1d3   : > { %v1521_v11 = vsel %vm1520_vm7, %v1513_v39, %v1517_v63  ;;  %v1523_v12 = vsel %vm1520_vm7, %v1517_v63, %v1513_v39  ;;  %v4193_v39 = vld [vmem:[%s6458_s3 + $0x40] sm:$0x3] }
 0x1d4   : > { %2737 = vmatprep.subr.bf16.mxu0 %v4484_v6  ;;  %v1538_v19 = vmul.f32 %v1531_v3, %v1521_v11  ;;  %v1539_v20 = vmul.f32 %v1535_v1, %v1523_v12  ;;  %v1740_v58 = vrot.slane %v4193_v39, %v5392_v10  ;;  %v1744_v59 = vrot.slane %v4193_v39, %v5387_v9 }
 0x1d5   : > { %2738 = vmatpush1.bf16.msra.mxu0 %v4483_v61 }
 0x1d6   : > { %v1519_v7 = vpop.permute.xlu1 %1518  ;;  %2739 = vmatprep.subr.bf16.mxu0 %v4482_v30  ;;  %v1766_v13 = vpop.permute.xlu0 %1765 }
 0x1d7   : > { %v1522_v14 = vsel %vm1520_vm7, %v1515_v62, %v1519_v7  ;;  %v1524_v15 = vsel %vm1520_vm7, %v1519_v7, %v1515_v62 }
 0x1d8   : > { %v1540_v21 = vmul.f32 %v1531_v3, %v1522_v14  ;;  %v1541_v23 = vmul.f32 %v1535_v1, %v1524_v15 }
 0x1d9   : > { %2740 = vmatpush1.bf16.msra.mxu0 %v4481_v26 }
 0x1da   : > { %v1768_v29 = vpop.permute.xlu1 %1767  ;;  %v1770_v18 = vpop.permute.xlu0 %1769  ;;  %v4468_v25 = vpack.c.bf16 %v1541_v23, %v1539_v20  ;;  %v4467_v30 = vpack.c.bf16 %v1540_v21, %v1538_v19 }
 0x1db   : > { %v1774_v34 = vsel %vm1773_vm8, %v1766_v13, %v1770_v18  ;;  %v1776_v38 = vsel %vm1773_vm8, %v1770_v18, %v1766_v13  ;;  %v4169_v13 = vld [vmem:[%s6458_s3 + $0x2e] sm:$0x3] }
 0x1dc   : > { %2662 = vmatprep.subr.bf16.mxu1 %v4468_v25  ;;  %v1791_v31 = vmul.f32 %v1784_v32, %v1776_v38  ;;  %v1792_v43 = vmul.f32 %v1788_v33, %v1774_v34  ;;  %v1412_v21 = vrot.slane %v4169_v13, %v5392_v10  ;;  %v1416_v23 = vrot.slane %v4169_v13, %v5387_v9 }
 0x1dd   : > { %2663 = vmatpush2.bf16.msra.mxu1 %v4467_v30 }
 0x1de   : > { %v1772_v16 = vpop.permute.xlu1 %1771  ;;  %2664 = vmatprep.subr.bf16.mxu1 %v4466_v52  ;;  %v1438_v24 = vpop.permute.xlu0 %1437  ;;  %v1456_v52 = vrot.slane %v4172_v17, %v5392_v10  ;;  %v4815_v17 = vld [vmem:[%s6456_s1 + $0x80] ss:$20 sps:$4 sm:$0xff]  }
 0x1df   : > { %v1775_v26 = vsel %vm1773_vm8, %v1768_v29, %v1772_v16  ;;  %v1777_v28 = vsel %vm1773_vm8, %v1772_v16, %v1768_v29 }
 0x1e0   : > { %v1793_v44 = vmul.f32 %v1784_v32, %v1777_v28  ;;  %v1794_v47 = vmul.f32 %v1788_v33, %v1775_v26  ;;  %v4807_v26 = vld [vmem:[%s6456_s1 + $0x30] ss:$20 sps:$4 sm:$0xff]  }
 0x1e1   : > { %2665 = vmatpush2.bf16.msra.mxu1 %v4465_v53  ;;  %v4809_v28 = vld [vmem:[%s6456_s1 + $0x5c] ss:$20 sps:$4 sm:$0xff]  }
 0x1e2   : > { %v4479_v48 = vpack.c.bf16 %v1793_v44, %v1791_v31  ;;  %v1440_v22 = vpop.permute.xlu1 %1439  ;;  %v1442_v42 = vpop.permute.xlu0 %1441  ;;  %v4480_v46 = vpack.c.bf16 %v1794_v47, %v1792_v43  ;;  %v4808_v31 = vld [vmem:[%s6456_s1 + $0x60] ss:$20 sps:$4 sm:$0xff]   ;;  %v4811_v43 = vld [vmem:[%s6456_s1 + $0x58] ss:$20 sps:$4 sm:$0xff]   ;;  %v4812_v47 = vld [vmem:[%s6456_s1 + $0x88] ss:$20 sps:$4 sm:$0xff]  }
 0x1e3   : > { %v1446_v40 = vsel %vm1445_vm9, %v1438_v24, %v1442_v42  ;;  %v1448_v51 = vsel %vm1445_vm9, %v1442_v42, %v1438_v24  ;;  %v4805_v24 = vld [vmem:[%s6456_s1 + $0x34] ss:$20 sps:$4 sm:$0xff]   ;;  %v4813_v44 = vld [vmem:[%s6456_s1 + $0x84] ss:$20 sps:$4 sm:$0xff]  }
 0x1e4   : > { %2741 = vmatprep.subr.bf16.mxu0 %v4480_v46  ;;  %v1463_v50 = vmul.f32 %v1456_v52, %v1446_v40  ;;  %v1464_v55 = vmul.f32 %v1460_v36, %v1448_v51  ;;  %v4819_v42 = vld [vmem:[%s6456_s1 + $0xa8] ss:$20 sps:$4 sm:$0xff]  }
 0x1e5   : > { %2742 = vmatpush1.bf16.msra.mxu0 %v4479_v48  ;;  %v4817_v48 = vld [vmem:[%s6456_s1 + $0xac] ss:$20 sps:$4 sm:$0xff]   ;;  %v4821_v46 = vld [vmem:[%s6456_s1 + $0xd4] ss:$20 sps:$4 sm:$0xff]  }
 0x1e6   : > { %v1444_v41 = vpop.permute.xlu1 %1443  ;;  %v1722_v45 = vpop.permute.xlu0 %1721 }
 0x1e7   : > { %v1447_v53 = vsel %vm1445_vm9, %v1440_v22, %v1444_v41  ;;  %v1449_v49 = vsel %vm1445_vm9, %v1444_v41, %v1440_v22  ;;  %v4816_v22 = vld [vmem:[%s6456_s1 + $0xb0] ss:$20 sps:$4 sm:$0xff]  }
 0x1e8   : > { %v1465_v56 = vmul.f32 %v1456_v52, %v1447_v53  ;;  %v1466_v35 = vmul.f32 %v1460_v36, %v1449_v49  ;;  %v4820_v52 = vld [vmem:[%s6456_s1 + $0xd8] ss:$20 sps:$4 sm:$0xff]   ;;  %v4823_v36 = vld [vmem:[%s6456_s1 + $0xd0] ss:$20 sps:$4 sm:$0xff]  }
 0x1ea   : > { %v1724_v54 = vpop.permute.xlu1 %1723  ;;  %v1726_v57 = vpop.permute.xlu0 %1725  ;;  %v4464_v2 = vpack.c.bf16 %v1466_v35, %v1464_v55  ;;  %v4463_v0 = vpack.c.bf16 %v1465_v56, %v1463_v50 }
 0x1eb   : > { %v1730_v60 = vsel %vm1729_vm10, %v1722_v45, %v1726_v57  ;;  %v1732_v61 = vsel %vm1729_vm10, %v1726_v57, %v1722_v45 }
 0x1ec   : > { %2666 = vmatprep.subr.bf16.mxu1 %v4464_v2  ;;  %v1747_v1 = vmul.f32 %v1740_v58, %v1730_v60  ;;  %v1748_v11 = vmul.f32 %v1744_v59, %v1732_v61 }
 0x1ed   : > { %2667 = vmatpush2.bf16.msra.mxu1 %v4463_v0 }
 0x1ee   : > { %v1728_v62 = vpop.permute.xlu1 %1727  ;;  %v1394_v63 = vpop.permute.xlu0 %1393 }
 0x1ef   : > { %v1731_v6 = vsel %vm1729_vm10, %v1724_v54, %v1728_v62  ;;  %v1733_v3 = vsel %vm1729_vm10, %v1728_v62, %v1724_v54 }
 0x1f0   : > { %v1749_v12 = vmul.f32 %v1740_v58, %v1731_v6  ;;  %v1750_v7 = vmul.f32 %v1744_v59, %v1733_v3 }
 0x1f2   : > { %v4477_v14 = vpack.c.bf16 %v1749_v12, %v1747_v1  ;;  %v1396_v15 = vpop.permute.xlu1 %1395  ;;  %v1398_v19 = vpop.permute.xlu0 %1397  ;;  %v4478_v20 = vpack.c.bf16 %v1750_v7, %v1748_v11 }
 0x1f3   : > { %v1402_v27 = vsel %vm1401_vm11, %v1394_v63, %v1398_v19  ;;  %v1404_v29 = vsel %vm1401_vm11, %v1398_v19, %v1394_v63 }
 0x1f4   : > { %2743 = vmatprep.subr.bf16.mxu0 %v4478_v20  ;;  %v1419_v32 = vmul.f32 %v1412_v21, %v1402_v27  ;;  %v1420_v33 = vmul.f32 %v1416_v23, %v1404_v29 }
 0x1f5   : > { %2744 = vmatpush1.bf16.msra.mxu0 %v4477_v14 }
 0x1f6   : > { %v1400_v18 = vpop.permute.xlu1 %1399  ;;  %2745 = vmatprep.subr.bf16.mxu0 %v5318_v4  ;;  %v4801_v4 = vld [vmem:[%s6456_s1 + $0x8] ss:$20 sps:$4 sm:$0xff]  }
 0x1f7   : > { %v1403_v25 = vsel %vm1401_vm11, %v1396_v15, %v1400_v18  ;;  %v1405_v30 = vsel %vm1401_vm11, %v1400_v18, %v1396_v15 }
 0x1f8   : > { %v1421_v34 = vmul.f32 %v1412_v21, %v1403_v25  ;;  %v1422_v38 = vmul.f32 %v1416_v23, %v1405_v30 }
 0x1f9   : > { %2746 = vmatpush1.bf16.msra.mxu0 %v5324_v5  ;;  %v4804_v5 = vld [vmem:[%s6456_s1 + $0x38] ss:$20 sps:$4 sm:$0xff]  }
 0x1fa   : > { %v4462_v9 = vpack.c.bf16 %v1422_v38, %v1420_v33  ;;  %v4461_v16 = vpack.c.bf16 %v1421_v34, %v1419_v32 }
 0x1fc   : > { %2668 = vmatprep.subr.bf16.mxu1 %v4462_v9  ;;  %4311 = vmatmul.mubr.msk.bf16.vlgmr.msra.gmra.mxu0 %vm2526_vm12, %v4800_v8 }
 0x1fd   : > { %2669 = vmatpush2.bf16.msra.mxu1 %v4461_v16  ;;  %2773 = vmatprep.mubr.bf16.mxu0 %v6474_v37 }
 0x200   : > { %2671 = vmatmul.mubr.bf16.vlgmr.msra.gmra.mxu1 %v4801_v4 }
 0x201   : > { %2680 = vmatprep.mubr.bf16.mxu1 %v4805_v24 }
 0x204   : > { %4312 = vmatmul.mubr.msk.bf16.gmra.mxu0 %vm2526_vm12, %v4804_v5 }
 0x205   : > { %2783 = vmatprep.mubr.bf16.mxu0 %v6474_v37 }
 0x208   : > { %2681 = vmatmul.mubr.bf16.gmra.mxu1 %v4807_v26 }
 0x209   : > { %2690 = vmatprep.mubr.bf16.mxu1 %v4809_v28 }
 0x20c   : > { %4313 = vmatmul.mubr.msk.bf16.gmra.mxu0 %vm2526_vm12, %v4808_v31 }
 0x20d   : > { %2793 = vmatprep.mubr.bf16.mxu0 %v6474_v37 }
 0x210   : > { %2691 = vmatmul.mubr.bf16.gmra.mxu1 %v4811_v43 }
 0x211   : > { %2700 = vmatprep.mubr.bf16.mxu1 %v4813_v44 }
 0x214   : > { %4314 = vmatmul.mubr.msk.bf16.gmra.mxu0 %vm2526_vm12, %v4812_v47 }
 0x215   : > { %2803 = vmatprep.mubr.bf16.mxu0 %v6474_v37 }
 0x218   : > { %2701 = vmatmul.mubr.bf16.gmra.mxu1 %v4815_v17 }
 0x219   : > { %2710 = vmatprep.mubr.bf16.mxu1 %v4817_v48 }
 0x21c   : > { %4315 = vmatmul.mubr.msk.bf16.gmra.mxu0 %vm2526_vm12, %v4816_v22 }
 0x21d   : > { %2813 = vmatprep.mubr.bf16.mxu0 %v6474_v37 }
 0x21e   : > { %v2579_v40 = vpop.f32.mrf.mxu0 }
 0x220   : > { %2711 = vmatmul.mubr.bf16.gmra.mxu1 %v4819_v42  ;;  %v2581_v51 = vpop.f32.mrf.mxu0 }
 0x221   : > { %2720 = vmatprep.mubr.bf16.mxu1 %v4821_v46 }
 0x222   : > { %v5840_v41 = vpop.f32.mrf.mxu0 }
 0x224   : > { %4316 = vmatmul.mubr.msk.bf16.gmra.mxu0 %vm2526_vm12, %v4820_v52  ;;  %v5842_v45 = vpop.f32.mrf.mxu0 }
 0x226   : > { %v5844_v53 = vpop.f32.mrf.mxu0 }
 0x227   : > { %6501 = vst [vmem:[#allocation20_spill] sm:$0xff] %v5844_v53 }
 0x228   : > { %2721 = vmatmul.mubr.bf16.gmra.mxu1 %v4823_v36  ;;  %v5846_v49 = vpop.f32.mrf.mxu0 }
 0x229   : > { %6502 = vst [vmem:[#allocation21_spill] sm:$0xff] %v5846_v49 }
 0x22a   : > { %v5848_v50 = vpop.f32.mrf.mxu0 }
 0x22c   : > { %v5850_v55 = vpop.f32.mrf.mxu0 }
 0x22e   : > { %v5852_v56 = vpop.f32.mrf.mxu0 }
 0x22f   : > { %6503 = vst [vmem:[#allocation22_spill] sm:$0xff] %v5852_v56 }
 0x230   : > { %v5854_v35 = vpop.f32.mrf.mxu0 }
 0x232   : > { %v5856_v39 = vpop.f32.mrf.mxu0 }
 0x234   : > { %v5858_v54 = vpop.f32.mrf.mxu0 }
 0x236   : > { %v5860_v57 = vpop.f32.mrf.mxu0 }
 0x238   : > { %v5862_v2 = vpop.f32.mrf.mxu0 }
 0x23a   : > { %v5864_v0 = vpop.f32.mrf.mxu0 }
 0x23c   : > { %v2615_v58 = vpop.f32.mrf.mxu0 }
 0x23e   : > { %v5866_v59 = vpop.f32.mrf.mxu0 }
 0x240   : > { %v5868_v60 = vpop.f32.mrf.mxu0 }
 0x242   : > { %v5870_v61 = vpop.f32.mrf.mxu0 }
 0x244   : > { %v5872_v62 = vpop.f32.mrf.mxu0 }
 0x246   : > { %v2629_v63 = vpop.f32.mrf.mxu0 }
 0x248   : > { %v2631_v6 = vpop.f32.mrf.mxu0 }
 0x24a   : > { %v2633_v3 = vpop.f32.mrf.mxu0 }
 0x24c   : > { %v2635_v1 = vpop.f32.mrf.mxu0 }
 0x2bc   : > { %v2765_v11 = vpop.f32.mrf.mxu0 }
 0x2be   : > { %v2767_v12 = vpop.f32.mrf.mxu0 }
 0x2c0   : > { %v2672_v7 = vpop.f32.mrf.mxu1  ;;  %v5874_v13 = vpop.f32.mrf.mxu0 }
 0x2c1   : > { %v2673_v14 = vadd.f32 %v2672_v7, %v2579_v40 }
 0x2c2   : > { %v2674_v15 = vpop.f32.mrf.mxu1  ;;  %v5876_v19 = vpop.f32.mrf.mxu0 }
 0x2c3   : > { %v5878_v20 = vadd.f32 %v2765_v11, %v2673_v14  ;;  %v2675_v21 = vadd.f32 %v2674_v15, %v2581_v51 }
 0x2c4   : > { %v5880_v23 = vpop.f32.mrf.mxu1  ;;  %v5882_v27 = vpop.f32.mrf.mxu0 }
 0x2c5   : > { %6504 = vst [vmem:[#allocation23_spill] sm:$0xff] %v5878_v20  ;;  %6505 = vst [vmem:[#allocation24_spill] sm:$0xff] %v5882_v27  ;;  %v5884_v29 = vadd.f32 %v2767_v12, %v2675_v21 }
 0x2c6   : > { %v5886_v18 = vpop.f32.mrf.mxu1  ;;  %v5888_v25 = vpop.f32.mrf.mxu0 }
 0x2c7   : > { %6506 = vst [vmem:[#allocation25_spill] sm:$0xff] %v5884_v29  ;;  %6507 = vst [vmem:[#allocation26_spill] sm:$0xff] %v5888_v25 }
 0x2c8   : > { %v5890_v30 = vpop.f32.mrf.mxu1  ;;  %v5892_v32 = vpop.f32.mrf.mxu0 }
 0x2c9   : > { %6508 = vst [vmem:[#allocation27_spill] sm:$0xff] %v5890_v30 }
 0x2ca   : > { %v5894_v33 = vpop.f32.mrf.mxu1  ;;  %v5896_v34 = vpop.f32.mrf.mxu0 }
 0x2cb   : > { %6509 = vst [vmem:[#allocation28_spill] sm:$0xff] %v5894_v33 }
 0x2cc   : > { %v2686_v38 = vpop.f32.mrf.mxu1  ;;  %v5898_v8 = vpop.f32.mrf.mxu0 }
 0x2cd   : > { %6510 = vst [vmem:[#allocation29_spill] sm:$0xff] %v5898_v8 }
 0x2ce   : > { %v2688_v9 = vpop.f32.mrf.mxu1  ;;  %v5900_v16 = vpop.f32.mrf.mxu0 }
 0x2cf   : > { %6511 = vst [vmem:[#allocation30_spill] sm:$0xff] %v5900_v16 }
 0x2d0   : > { %v5902_v4 = vpop.f32.mrf.mxu1  ;;  %v2789_v24 = vpop.f32.mrf.mxu0 }
 0x2d1   : > { %6512 = vst [vmem:[#allocation31_spill] sm:$0xff] %v5902_v4 }
 0x2d2   : > { %v5904_v5 = vpop.f32.mrf.mxu1  ;;  %v2791_v26 = vpop.f32.mrf.mxu0 }
 0x2d4   : > { %v2696_v28 = vpop.f32.mrf.mxu1  ;;  %v5906_v31 = vpop.f32.mrf.mxu0 }
 0x2d5   : > { %6513 = vst [vmem:[#allocation32_spill] sm:$0xff] %v5906_v31 }
 0x2d6   : > { %v2698_v43 = vpop.f32.mrf.mxu1  ;;  %v5908_v44 = vpop.f32.mrf.mxu0 }
 0x2d7   : > { %v2699_v49 = vadd.f32 %v2698_v43, %v5858_v54  ;;  %v2689_v54 = vadd.f32 %v2688_v9, %v5850_v55  ;;  %v6519_v43 = vld [vmem:[#allocation30_spill] sm:$0xff] }
 0x2d8   : > { %v2702_v47 = vpop.f32.mrf.mxu1  ;;  %v2799_v17 = vpop.f32.mrf.mxu0 }
 0x2d9   : > { %v5948_v55 = vadd.f32 %v5896_v34, %v2689_v54  ;;  %v2695_v34 = vadd.f32 %v5904_v5, %v5854_v35  ;;  %v6517_v35 = vld [vmem:[#allocation21_spill] sm:$0xff]  ;;  %v6518_v5 = vld [vmem:[#allocation28_spill] sm:$0xff] }
 0x2da   : > { %v2704_v48 = vpop.f32.mrf.mxu1  ;;  %v2801_v22 = vpop.f32.mrf.mxu0 }
 0x2dc   : > { %v2706_v42 = vpop.f32.mrf.mxu1  ;;  %v2805_v46 = vpop.f32.mrf.mxu0 }
 0x2dd   : > { %v2707_v30 = vadd.f32 %v2706_v42, %v5864_v0  ;;  %v6522_v42 = vld [vmem:[#allocation29_spill] sm:$0xff] }
 0x2de   : > { %v2708_v52 = vpop.f32.mrf.mxu1  ;;  %v2807_v36 = vpop.f32.mrf.mxu0 }
 0x2df   : > { %v2709_v20 = vadd.f32 %v2708_v52, %v2615_v58  ;;  %v5922_v0 = vadd.f32 %v2799_v17, %v2707_v30  ;;  %v6520_v17 = vld [vmem:[#allocation20_spill] sm:$0xff]  ;;  %v6523_v52 = vld [vmem:[#allocation26_spill] sm:$0xff] }
 0x2e0   : > { %v2712_v40 = vpop.f32.mrf.mxu1  ;;  %v2809_v51 = vpop.f32.mrf.mxu0 }
 0x2e1   : > { %v5916_v4 = vadd.f32 %v2801_v22, %v2709_v20  ;;  %v5930_v20 = vadd.f32 %v2791_v26, %v2699_v49  ;;  %v2713_v30 = vadd.f32 %v2712_v40, %v5866_v59  ;;  %v2679_v49 = vadd.f32 %v5886_v18, %v5842_v45 }
 0x2e2   : > { %v2714_v11 = vpop.f32.mrf.mxu1  ;;  %v2811_v12 = vpop.f32.mrf.mxu0  ;;  %v2703_v45 = vadd.f32 %v2702_v47, %v5860_v57 }
 0x2e3   : > { %v5963_v18 = vadd.f32 %v2805_v46, %v2713_v30 }
 0x2e4   : > { %v2716_v7 = vpop.f32.mrf.mxu1  ;;  %v2815_v14 = vpop.f32.mrf.mxu0 }
 0x2e6   : > { %v2718_v15 = vpop.f32.mrf.mxu1  ;;  %v2817_v21 = vpop.f32.mrf.mxu0 }
 0x2e7   : > { %v2719_v56 = vadd.f32 %v2718_v15, %v5872_v62  ;;  %v2715_v62 = vadd.f32 %v2714_v11, %v5868_v60 }
 0x2e8   : > { %v2722_v37 = vpop.f32.mrf.mxu1  ;;  %v2819_v25 = vpop.f32.mrf.mxu0 }
 0x2e9   : > { %v2723_v10 = vadd.f32 %v2722_v37, %v2629_v63  ;;  %v2697_v63 = vadd.f32 %v2696_v28, %v5856_v39  ;;  %v5951_v60 = vadd.f32 %v2807_v36, %v2715_v62 }
 0x2ea   : > { %v2724_v29 = vpop.f32.mrf.mxu1 }
 0x2eb   : > { %v2725_v27 = vadd.f32 %v2724_v29, %v2631_v6  ;;  %v5911_v53 = vadd.f32 %v2815_v14, %v2723_v10  ;;  %v2821_v6 = vpop.f32.mrf.mxu0  ;;  %v2717_v10 = vadd.f32 %v2716_v7, %v5870_v61  ;;  %v2857_v29 = vadd.f32 %v5916_v4, %v5922_v0  ;;  %v6525_v7 = vld [vmem:[#allocation23_spill] sm:$0xff]  ;;  %v6526_v14 = vld [vmem:[#allocation25_spill] sm:$0xff] }
 0x2ec   : > { %v2726_v8 = vpop.f32.mrf.mxu1  ;;  %v2687_v61 = vadd.f32 %v2686_v38, %v5848_v50  ;;  %v2677_v38 = vadd.f32 %v5880_v23, %v5840_v41  ;;  %v2860_v41 = vadd.f32 %v5951_v60, %v5963_v18  ;;  %v2836_v15 = vadd.f32 %v6526_v14, %v6525_v7 }
 0x2ed   : > { %v5913_v16 = vadd.f32 %v2817_v21, %v2725_v27  ;;  %v2727_v33 = vadd.f32 %v2726_v8, %v2633_v3  ;;  %v2824_v21 = vld [vmem:[#allocation6] sm:$0xff] }
 0x2ee   : > { %v2728_v31 = vpop.f32.mrf.mxu1  ;;  %v5960_v8 = vadd.f32 %v5892_v32, %v2687_v61  ;;  %v5978_v57 = vadd.f32 %v5874_v13, %v2677_v38  ;;  %v6514_v32 = vld [vmem:[#allocation22_spill] sm:$0xff]  ;;  %4572 = vmatprep.mubr.msk.f32.mxu1 %vm2526_vm12, %v2824_v21 }
 0x2ef   : > { %v2729_v37 = vadd.f32 %v2728_v31, %v2635_v1  ;;  %v2866_v58 = vadd.f32 %v5913_v16, %v5911_v53  ;;  %v5925_v27 = vadd.f32 %v2819_v25, %v2727_v33  ;;  %v5933_v1 = vadd.f32 %v2811_v12, %v2719_v56  ;;  %v6022_v38 = vld [vmem:[#allocation6 + $0x20] sm:$0xff] }
 0x2f0   : > { %v5940_v25 = vadd.f32 %v2789_v24, %v2697_v63  ;;  %v5943_v33 = vadd.f32 %v2809_v51, %v2717_v10  ;;  %v2705_v56 = vadd.f32 %v2704_v48, %v5862_v2  ;;  %v5966_v2 = vadd.f32 %v5876_v19, %v2679_v49  ;;  %v6515_v24 = vld [vmem:[#allocation31_spill] sm:$0xff]  ;;  %v6516_v19 = vld [vmem:[#allocation32_spill] sm:$0xff] }
 0x2f1   : > { %v5927_v3 = vadd.f32 %v2821_v6, %v2729_v37  ;;  %2867 = vadd.xlane.f32.xlu1 %v2866_v58  ;;  %v2845_v23 = vadd.f32 %v5948_v55, %v5960_v8  ;;  %v2693_v26 = vadd.f32 %v6515_v24, %v6514_v32  ;;  %v5983_v28 = vadd.f32 %v6516_v19, %v2703_v45  ;;  %v6521_v48 = vld [vmem:[#allocation27_spill] sm:$0xff]  ;;  %v6524_v51 = vld [vmem:[#allocation24_spill] sm:$0xff] }
 0x2f2   : > { %v2863_v50 = vadd.f32 %v5933_v1, %v5943_v33  ;;  %v2851_v59 = vadd.f32 %v5930_v20, %v5940_v25  ;;  %v5971_v9 = vadd.f32 %v5908_v44, %v2705_v56  ;;  %v2685_v31 = vadd.f32 %v6518_v5, %v6517_v35  ;;  %v6012_v56 = vld [vmem:[#allocation6 + $0x8] sm:$0xff]  ;;  %v6046_v24 = vld [vmem:[#allocation6 + $0x50] sm:$0xff] }
 0x2f3   : > { %v2869_v39 = vadd.f32 %v5927_v3, %v5925_v27  ;;  %v5988_v44 = vadd.f32 %v6519_v43, %v2695_v34  ;;  %v2839_v13 = vadd.f32 %v5966_v2, %v5978_v57  ;;  %v2683_v22 = vadd.f32 %v6521_v48, %v6520_v17  ;;  %v6028_v45 = vld [vmem:[#allocation6 + $0x28] sm:$0xff]  ;;  %v6030_v34 = vld [vmem:[#allocation6 + $0x30] sm:$0xff] }
 0x2f4   : > { %v2854_v47 = vadd.f32 %v5971_v9, %v5983_v28  ;;  %v5997_v46 = vadd.f32 %v6522_v42, %v2693_v26  ;;  %v6000_v36 = vadd.f32 %v6523_v52, %v2685_v31  ;;  %v6044_v32 = vld [vmem:[#allocation6 + $0x48] sm:$0xff]  ;;  %v6052_v26 = vld [vmem:[#allocation6 + $0x58] sm:$0xff] }
 0x2f5   : > { %2870 = vadd.xlane.f32.xlu0 %v2869_v39  ;;  %2858 = vadd.xlane.f32.xlu1 %v2857_v29  ;;  %v6005_v11 = vadd.f32 %v6524_v51, %v2683_v22 }
 0x2f6   : > { %v2848_v40 = vadd.f32 %v5988_v44, %v5997_v46 }
 0x2f7   : > { %v2842_v12 = vadd.f32 %v6000_v36, %v6005_v11 }
 0x2f9   : > { %2864 = vadd.xlane.f32.xlu0 %v2863_v50  ;;  %2852 = vadd.xlane.f32.xlu1 %v2851_v59  ;;  %v6014_v50 = vld [vmem:[#allocation6 + $0x10] sm:$0xff]  ;;  %v6020_v59 = vld [vmem:[#allocation6 + $0x18] sm:$0xff] }
 0x2fd   : > { %2861 = vadd.xlane.f32.xlu0 %v2860_v41  ;;  %2846 = vadd.xlane.f32.xlu1 %v2845_v23  ;;  %v6036_v41 = vld [vmem:[#allocation6 + $0x38] sm:$0xff]  ;;  %v6038_v23 = vld [vmem:[#allocation6 + $0x40] sm:$0xff] }
 0x301   : > { %2855 = vadd.xlane.f32.xlu0 %v2854_v47  ;;  %2840 = vadd.xlane.f32.xlu1 %v2839_v13 }
 0x305   : > { %2849 = vadd.xlane.f32.xlu0 %v2848_v40 }
 0x309   : > { %2843 = vadd.xlane.f32.xlu0 %v2842_v12 }
 0x30d   : > { %2837 = vadd.xlane.f32.xlu0 %v2836_v15 }
 0x37a   : > { %v2868_v37 = vpop.xlane.xlu1 %2867 }
 0x37e   : > { %v2871_v58 = vpop.xlane.xlu0 %2870  ;;  %v2859_v63 = vpop.xlane.xlu1 %2858 }
 0x37f   : > { %4548 = vmatprep.subr.mxu1 %v2871_v58 }
 0x380   : > { %4549 = vmatpush3.msra.mxu1 %v2871_v58 }
 0x381   : > { %4550 = vmatprep.subr.mxu1 %v2868_v37 }
 0x382   : > { %4551 = vmatpush3.msra.mxu1 %v2868_v37  ;;  %v2865_v6 = vpop.xlane.xlu0 %2864  ;;  %v2853_v54 = vpop.xlane.xlu1 %2852 }
 0x383   : > { %4552 = vmatprep.subr.mxu1 %v2865_v6 }
 0x384   : > { %4553 = vmatpush3.msra.mxu1 %v2865_v6 }
 0x386   : > { %v2862_v10 = vpop.xlane.xlu0 %2861  ;;  %v2847_v39 = vpop.xlane.xlu1 %2846 }
 0x387   : > { %4554 = vmatprep.subr.mxu1 %v2862_v10 }
 0x388   : > { %4555 = vmatpush3.msra.mxu1 %v2862_v10 }
 0x389   : > { %4556 = vmatprep.subr.mxu1 %v2859_v63 }
 0x38a   : > { %4557 = vmatpush3.msra.mxu1 %v2859_v63  ;;  %v2856_v62 = vpop.xlane.xlu0 %2855  ;;  %v2841_v30 = vpop.xlane.xlu1 %2840 }
 0x38b   : > { %4558 = vmatprep.subr.mxu1 %v2856_v62 }
 0x38c   : > { %4559 = vmatpush3.msra.mxu1 %v2856_v62 }
 0x38d   : > { %4560 = vmatprep.subr.mxu1 %v2853_v54 }
 0x38e   : > { %4561 = vmatpush3.msra.mxu1 %v2853_v54  ;;  %v2850_v29 = vpop.xlane.xlu0 %2849 }
 0x38f   : > { %4562 = vmatprep.subr.mxu1 %v2850_v29 }
 0x390   : > { %4563 = vmatpush3.msra.mxu1 %v2850_v29 }
 0x391   : > { %4564 = vmatprep.subr.mxu1 %v2847_v39 }
 0x392   : > { %4565 = vmatpush3.msra.mxu1 %v2847_v39  ;;  %v2844_v61 = vpop.xlane.xlu0 %2843 }
 0x393   : > { %4566 = vmatprep.subr.mxu1 %v2844_v61 }
 0x394   : > { %4567 = vmatpush3.msra.mxu1 %v2844_v61 }
 0x395   : > { %4568 = vmatprep.subr.mxu1 %v2841_v30 }
 0x396   : > { %4569 = vmatpush3.msra.mxu1 %v2841_v30  ;;  %v2838_v49 = vpop.xlane.xlu0 %2837 }
 0x397   : > { %4570 = vmatprep.subr.mxu1 %v2838_v49 }
 0x398   : > { %4571 = vmatpush3.msra.mxu1 %v2838_v49 }
 0x399   : > { %4573 = vmatmul.mubr.msk.f32.vlgmr.msra.gmra.mxu1 %vm2526_vm12, %v6012_v56 }
 0x39a   : > { %4575 = vmatprep.mubr.msk.f32.mxu1 %vm2526_vm12, %v6014_v50 }
 0x39d   : > { %4576 = vmatmul.mubr.msk.f32.gmra.mxu1 %vm2526_vm12, %v6020_v59 }
 0x39e   : > { %4578 = vmatprep.mubr.msk.f32.mxu1 %vm2526_vm12, %v6022_v38 }
 0x3a1   : > { %4579 = vmatmul.mubr.msk.f32.gmra.mxu1 %vm2526_vm12, %v6028_v45 }
 0x3a2   : > { %4581 = vmatprep.mubr.msk.f32.mxu1 %vm2526_vm12, %v6030_v34 }
 0x3a5   : > { %4582 = vmatmul.mubr.msk.f32.gmra.mxu1 %vm2526_vm12, %v6036_v41 }
 0x3a6   : > { %4584 = vmatprep.mubr.msk.f32.mxu1 %vm2526_vm12, %v6038_v23 }
 0x3a9   : > { %4585 = vmatmul.mubr.msk.f32.gmra.mxu1 %vm2526_vm12, %v6044_v32 }
 0x3aa   : > { %4587 = vmatprep.mubr.msk.f32.mxu1 %vm2526_vm12, %v6046_v24 }
 0x3ad   : > { %4588 = vmatmul.mubr.msk.f32.gmra.mxu1 %vm2526_vm12, %v6052_v26 }
 0x3ae   : > { %4614 = vmatprep.mubr.msk.f32.mxu1 %vm2526_vm12, %v2824_v21 }
 0x459   : > { %v4574_v19 = vpop.f32.mrf.mxu1 }
 0x45a   : > { %v3034_v15 = vmul.f32 0.001953125, %v4574_v19 }
 0x45b   : > { %v2974_v35 = vpop.f32.mrf.mxu1 }
 0x45c   : > { %v3033_v62 = vmul.f32 0.001953125, %v2974_v35 }
 0x45d   : > { %v4577_v5 = vpop.f32.mrf.mxu1 }
 0x45e   : > { %v3036_v10 = vmul.f32 0.001953125, %v4577_v5 }
 0x45f   : > { %v2984_v31 = vpop.f32.mrf.mxu1 }
 0x460   : > { %v3035_v54 = vmul.f32 0.001953125, %v2984_v31 }
 0x461   : > { %v4580_v43 = vpop.f32.mrf.mxu1 }
 0x462   : > { %v3038_v63 = vmul.f32 0.001953125, %v4580_v43 }
 0x463   : > { %v2994_v47 = vpop.f32.mrf.mxu1 }
 0x464   : > { %v3037_v6 = vmul.f32 0.001953125, %v2994_v47 }
 0x465   : > { %v4583_v13 = vpop.f32.mrf.mxu1 }
 0x466   : > { %v3040_v37 = vmul.f32 0.001953125, %v4583_v13 }
 0x467   : > { %v3004_v17 = vpop.f32.mrf.mxu1 }
 0x468   : > { %v3039_v58 = vmul.f32 0.001953125, %v3004_v17 }
 0x469   : > { %v4586_v48 = vpop.f32.mrf.mxu1 }
 0x46a   : > { %v3042_v12 = vmul.f32 0.001953125, %v4586_v48 }
 0x46b   : > { %v3014_v22 = vpop.f32.mrf.mxu1 }
 0x46c   : > { %v3041_v21 = vmul.f32 0.001953125, %v3014_v22 }
 0x46d   : > { %v4589_v42 = vpop.f32.mrf.mxu1 }
 0x46e   : > { %v3044_v52 = vmul.f32 0.001953125, %v4589_v42 }
 0x46f   : > { %v3024_v40 = vpop.f32.mrf.mxu1 }
 0x470   : > { %v3043_v51 = vmul.f32 0.001953125, %v3024_v40  ;;  %3102 = vperm.xlu1 %4780, %v3044_v52  }
 0x472   : > { %3097 = vperm.xlu0 %4781, %v3043_v51  }
 0x474   : > { %3092 = vperm.xlu1 %4780, %v3042_v12  }
 0x476   : > { %3052 = vperm.xlu0 %4781, %v3034_v15  }
 0x478   : > { %3087 = vperm.xlu1 %4780, %v3041_v21  }
 0x47c   : > { %3082 = vperm.xlu1 %4780, %v3040_v37  }
 0x480   : > { %3077 = vperm.xlu1 %4780, %v3039_v58  }
 0x484   : > { %3072 = vperm.xlu1 %4780, %v3038_v63  }
 0x488   : > { %3067 = vperm.xlu1 %4780, %v3037_v6  }
 0x48c   : > { %3062 = vperm.xlu1 %4780, %v3036_v10  }
 0x490   : > { %3057 = vperm.xlu1 %4780, %v3035_v54  }
 0x494   : > { %3047 = vperm.xlu1 %4780, %v3033_v62  }
 0x4eb   : > { %v3103_v39 = vpop.permute.xlu1 %3102 }
 0x4ec   : > { %v6058_v29 = vsub.f32 %v5925_v27, %v3103_v39  ;;  %v6061_v61 = vsub.f32 %v5927_v3, %v3103_v39 }
 0x4ed   : > { %v3098_v30 = vpop.permute.xlu0 %3097 }
 0x4ee   : > { %v3151_v49 = vmul.f32 %v6058_v29, %v6058_v29  ;;  %v3152_v19 = vmul.f32 %v6061_v61, %v6061_v61  ;;  %v6068_v5 = vsub.f32 %v5911_v53, %v3098_v30  ;;  %v6071_v35 = vsub.f32 %v5913_v16, %v3098_v30 }
 0x4ef   : > { %v3093_v31 = vpop.permute.xlu1 %3092 }
 0x4f0   : > { %v3149_v27 = vmul.f32 %v6068_v5, %v6068_v5  ;;  %v3150_v3 = vmul.f32 %v6071_v35, %v6071_v35  ;;  %v6078_v43 = vsub.f32 %v5943_v33, %v3093_v31  ;;  %v6081_v47 = vsub.f32 %v5933_v1, %v3093_v31 }
 0x4f1   : > { %v3186_v13 = vadd.f32 %v3152_v19, %v3151_v49  ;;  %v3053_v30 = vpop.permute.xlu0 %3052 }
 0x4f2   : > { %v3147_v53 = vmul.f32 %v6078_v43, %v6078_v43  ;;  %v3148_v16 = vmul.f32 %v6081_v47, %v6081_v47  ;;  %v3183_v48 = vadd.f32 %v3150_v3, %v3149_v27  ;;  %v6138_v27 = vsub.f32 %v5978_v57, %v3053_v30 }
 0x4f3   : > { %3187 = vadd.xlane.f32.xlu0 %v3186_v13  ;;  %v3088_v17 = vpop.permute.xlu1 %3087  ;;  %v6141_v13 = vsub.f32 %v5966_v2, %v3053_v30 }
 0x4f4   : > { %v6088_v22 = vsub.f32 %v5963_v18, %v3088_v17  ;;  %v6091_v42 = vsub.f32 %v5951_v60, %v3088_v17  ;;  %3184 = vadd.xlane.f32.xlu1 %v3183_v48  ;;  %v3180_v33 = vadd.f32 %v3148_v16, %v3147_v53  ;;  %v3131_v57 = vmul.f32 %v6138_v27, %v6138_v27 }
 0x4f5   : > { %v3132_v2 = vmul.f32 %v6141_v13, %v6141_v13 }
 0x4f6   : > { %v3145_v1 = vmul.f32 %v6088_v22, %v6088_v22  ;;  %v3146_v52 = vmul.f32 %v6091_v42, %v6091_v42 }
 0x4f7   : > { %3181 = vadd.xlane.f32.xlu0 %v3180_v33  ;;  %v3083_v40 = vpop.permute.xlu1 %3082 }
 0x4f8   : > { %v6098_v51 = vsub.f32 %v5922_v0, %v3083_v40  ;;  %v6101_v12 = vsub.f32 %v5916_v4, %v3083_v40  ;;  %v3177_v18 = vadd.f32 %v3146_v52, %v3145_v1 }
 0x4fa   : > { %v3143_v60 = vmul.f32 %v6098_v51, %v6098_v51  ;;  %v3144_v15 = vmul.f32 %v6101_v12, %v6101_v12 }
 0x4fb   : > { %3178 = vadd.xlane.f32.xlu0 %v3177_v18  ;;  %v3078_v21 = vpop.permute.xlu1 %3077 }
 0x4fc   : > { %v6108_v37 = vsub.f32 %v5983_v28, %v3078_v21  ;;  %v6111_v58 = vsub.f32 %v5971_v9, %v3078_v21  ;;  %v3174_v0 = vadd.f32 %v3144_v15, %v3143_v60  ;;  %v3156_v15 = vadd.f32 %v3132_v2, %v3131_v57 }
 0x4fe   : > { %v3141_v4 = vmul.f32 %v6108_v37, %v6108_v37  ;;  %v3142_v63 = vmul.f32 %v6111_v58, %v6111_v58  ;;  %3175 = vadd.xlane.f32.xlu1 %v3174_v0 }
 0x4ff   : > { %v3073_v6 = vpop.permute.xlu1 %3072 }
 0x500   : > { %v6118_v10 = vsub.f32 %v5940_v25, %v3073_v6  ;;  %v6121_v54 = vsub.f32 %v5930_v20, %v3073_v6  ;;  %v3171_v28 = vadd.f32 %v3142_v63, %v3141_v4  ;;  %v3539_v4 = vld [vmem:[%s6460_s5 + $0x48] sm:$0xff]  ;;  %v3445_v63 = vld [vmem:[%s6459_s4 + $0x58] sm:$0xff] }
 0x501   : > { %v3441_v6 = vld [vmem:[%s6459_s4 + $0x38] sm:$0xff] }
 0x502   : > { %v3139_v9 = vmul.f32 %v6118_v10, %v6118_v10  ;;  %v3140_v62 = vmul.f32 %v6121_v54, %v6121_v54  ;;  %3172 = vadd.xlane.f32.xlu0 %v3171_v28  ;;  %v3444_v28 = vld [vmem:[%s6459_s4 + $0x50] sm:$0xff] }
 0x503   : > { %v3068_v39 = vpop.permute.xlu1 %3067 }
 0x504   : > { %v6128_v49 = vsub.f32 %v5997_v46, %v3068_v39  ;;  %v6131_v19 = vsub.f32 %v5988_v44, %v3068_v39  ;;  %v3168_v25 = vadd.f32 %v3140_v62, %v3139_v9  ;;  %v3540_v9 = vld [vmem:[%s6460_s5 + $0x50] sm:$0xff]  ;;  %v3442_v62 = vld [vmem:[%s6459_s4 + $0x40] sm:$0xff] }
 0x505   : > { %v3538_v39 = vld [vmem:[%s6460_s5 + $0x40] sm:$0xff] }
 0x506   : > { %v3137_v20 = vmul.f32 %v6128_v49, %v6128_v49  ;;  %v3138_v31 = vmul.f32 %v6131_v19, %v6131_v19  ;;  %3169 = vadd.xlane.f32.xlu1 %v3168_v25 }
 0x507   : > { %v3063_v3 = vpop.permute.xlu1 %3062 }
 0x508   : > { %v6144_v46 = vsub.f32 %v5960_v8, %v3063_v3  ;;  %v6147_v44 = vsub.f32 %v5948_v55, %v3063_v3  ;;  %v3165_v53 = vadd.f32 %v3138_v31, %v3137_v20 }
 0x50a   : > { %v3135_v16 = vmul.f32 %v6144_v46, %v6144_v46  ;;  %v3136_v17 = vmul.f32 %v6147_v44, %v6147_v44  ;;  %3166 = vadd.xlane.f32.xlu0 %v3165_v53 }
 0x50b   : > { %v3058_v48 = vpop.permute.xlu1 %3057 }
 0x50c   : > { %v6158_v8 = vsub.f32 %v6005_v11, %v3058_v48  ;;  %v6161_v55 = vsub.f32 %v6000_v36, %v3058_v48  ;;  %v3162_v33 = vadd.f32 %v3136_v17, %v3135_v16 }
 0x50e   : > { %v3133_v1 = vmul.f32 %v6158_v8, %v6158_v8  ;;  %v3134_v52 = vmul.f32 %v6161_v55, %v6161_v55  ;;  %3163 = vadd.xlane.f32.xlu1 %v3162_v33 }
 0x50f   : > { %v3048_v40 = vpop.permute.xlu1 %3047 }
 0x510   : > { %v6168_v18 = vsub.f32 %v6525_v7, %v3048_v40  ;;  %v6171_v60 = vsub.f32 %v6526_v14, %v3048_v40  ;;  %v3159_v11 = vadd.f32 %v3134_v52, %v3133_v1  ;;  %v3541_v7 = vld [vmem:[%s6460_s5 + $0x58] sm:$0xff]  ;;  %v3443_v14 = vld [vmem:[%s6459_s4 + $0x48] sm:$0xff] }
 0x512   : > { %v3129_v36 = vmul.f32 %v6168_v18, %v6168_v18  ;;  %v3130_v21 = vmul.f32 %v6171_v60, %v6171_v60  ;;  %3160 = vadd.xlane.f32.xlu0 %v3159_v11  ;;  %3157 = vadd.xlane.f32.xlu1 %v3156_v15 }
 0x514   : > { %v3153_v0 = vadd.f32 %v3130_v21, %v3129_v36 }
 0x516   : > { %3154 = vadd.xlane.f32.xlu0 %v3153_v0 }
 0x523   : > { %3599 = vperm.xlu1 %4780, %v3541_v7  }
 0x527   : > { %3493 = vperm.xlu1 %4780, %v3443_v14  }
 0x52b   : > { %3589 = vperm.xlu1 %4780, %v3539_v4  }
 0x52c   : > { %3503 = vperm.xlu0 %4781, %v3445_v63  }
 0x52f   : > { %3483 = vperm.xlu1 %4780, %v3441_v6  }
 0x530   : > { %3498 = vperm.xlu0 %4781, %v3444_v28  }
 0x534   : > { %3594 = vperm.xlu0 %4781, %v3540_v9  }
 0x538   : > { %3488 = vperm.xlu0 %4781, %v3442_v62  }
 0x53c   : > { %3584 = vperm.xlu0 %4781, %v3538_v39   ;;  %v3730_v39 = vld [vmem:[%s6461_s6 + $0x50] sm:$0xff] }
 0x57c   : > { %v3188_v30 = vpop.xlane.xlu0 %3187 }
 0x57d   : > { %4590 = vmatprep.subr.mxu1 %v3188_v30  ;;  %v3185_v25 = vpop.xlane.xlu1 %3184 }
 0x57e   : > { %4591 = vmatpush3.msra.mxu1 %v3188_v30 }
 0x57f   : > { %4592 = vmatprep.subr.mxu1 %v3185_v25 }
 0x580   : > { %4593 = vmatpush3.msra.mxu1 %v3185_v25  ;;  %v3182_v20 = vpop.xlane.xlu0 %3181  ;;  %v3729_v25 = vld [vmem:[%s6461_s6 + $0x48] sm:$0xff] }
 0x581   : > { %4594 = vmatprep.subr.mxu1 %v3182_v20 }
 0x582   : > { %4595 = vmatpush3.msra.mxu1 %v3182_v20 }
 0x584   : > { %v3179_v31 = vpop.xlane.xlu0 %3178 }
 0x585   : > { %4596 = vmatprep.subr.mxu1 %v3179_v31 }
 0x586   : > { %4597 = vmatpush3.msra.mxu1 %v3179_v31 }
 0x587   : > { %v3176_v3 = vpop.xlane.xlu1 %3175 }
 0x588   : > { %4598 = vmatprep.subr.mxu1 %v3176_v3 }
 0x589   : > { %4599 = vmatpush3.msra.mxu1 %v3176_v3 }
 0x58b   : > { %v3173_v53 = vpop.xlane.xlu0 %3172 }
 0x58c   : > { %4600 = vmatprep.subr.mxu1 %v3173_v53 }
 0x58d   : > { %4601 = vmatpush3.msra.mxu1 %v3173_v53 }
 0x58f   : > { %v3170_v16 = vpop.xlane.xlu1 %3169 }
 0x590   : > { %4602 = vmatprep.subr.mxu1 %v3170_v16 }
 0x591   : > { %4603 = vmatpush3.msra.mxu1 %v3170_v16  ;;  %v3728_v16 = vld [vmem:[%s6461_s6 + $0x40] sm:$0xff] }
 0x593   : > { %v3167_v17 = vpop.xlane.xlu0 %3166 }
 0x594   : > { %4604 = vmatprep.subr.mxu1 %v3167_v17 }
 0x595   : > { %4605 = vmatpush3.msra.mxu1 %v3167_v17 }
 0x597   : > { %v3164_v57 = vpop.xlane.xlu1 %3163 }
 0x598   : > { %4606 = vmatprep.subr.mxu1 %v3164_v57 }
 0x599   : > { %4607 = vmatpush3.msra.mxu1 %v3164_v57  ;;  %v3727_v57 = vld [vmem:[%s6461_s6 + $0x38] sm:$0xff] }
 0x59b   : > { %v3161_v48 = vpop.xlane.xlu0 %3160  ;;  %v3158_v2 = vpop.xlane.xlu1 %3157 }
 0x59c   : > { %4608 = vmatprep.subr.mxu1 %v3161_v48 }
 0x59d   : > { %4609 = vmatpush3.msra.mxu1 %v3161_v48 }
 0x59e   : > { %4610 = vmatprep.subr.mxu1 %v3158_v2 }
 0x59f   : > { %4611 = vmatpush3.msra.mxu1 %v3158_v2  ;;  %v3155_v33 = vpop.xlane.xlu0 %3154  ;;  %v3726_v2 = vld [vmem:[%s6461_s6 + $0x30] sm:$0xff] }
 0x5a0   : > { %4612 = vmatprep.subr.mxu1 %v3155_v33 }
 0x5a1   : > { %4613 = vmatpush3.msra.mxu1 %v3155_v33 }
 0x5a2   : > { %4615 = vmatmul.mubr.msk.f32.vlgmr.msra.gmra.mxu1 %vm2526_vm12, %v6012_v56  ;;  %v3731_v56 = vld [vmem:[%s6461_s6 + $0x58] sm:$0xff] }
 0x5a3   : > { %4617 = vmatprep.mubr.msk.f32.mxu1 %vm2526_vm12, %v6014_v50  ;;  %v5075_v50 = vmov 0.0  }
 0x5a4   : > { %4632 = vmatprep.subr.mxu1 %v5075_v50 }
 0x5a5   : > { %4633 = vmatpush3.msra.mxu1 %v3731_v56  ;;  %v3440_v56 = vld [vmem:[%s6459_s4 + $0x30] sm:$0xff] }
 0x5a6   : > { %4618 = vmatmul.mubr.msk.f32.gmra.mxu1 %vm2526_vm12, %v6020_v59  ;;  %4634 = vmatprep.subr.mxu1 %v5075_v50 }
 0x5a7   : > { %4620 = vmatprep.mubr.msk.f32.mxu1 %vm2526_vm12, %v6022_v38  ;;  %4635 = vmatpush3.msra.mxu1 %v3730_v39 }
 0x5a8   : > { %4636 = vmatprep.subr.mxu1 %v5075_v50 }
 0x5a9   : > { %4637 = vmatpush3.msra.mxu1 %v3729_v25  ;;  %v3532_v25 = vld [vmem:[%s6460_s5 + $0x10] sm:$0xff] }
 0x5aa   : > { %4621 = vmatmul.mubr.msk.f32.gmra.mxu1 %vm2526_vm12, %v6028_v45  ;;  %4638 = vmatprep.subr.mxu1 %v5075_v50 }
 0x5ab   : > { %4623 = vmatprep.mubr.msk.f32.mxu1 %vm2526_vm12, %v6030_v34  ;;  %4639 = vmatpush3.msra.mxu1 %v3728_v16  ;;  %v3435_v16 = vld [vmem:[%s6459_s4 + $0x8] sm:$0xff] }
 0x5ac   : > { %4640 = vmatprep.subr.mxu1 %v5075_v50 }
 0x5ad   : > { %4641 = vmatpush3.msra.mxu1 %v3727_v57  ;;  %v3531_v57 = vld [vmem:[%s6460_s5 + $0x8] sm:$0xff] }
 0x5ae   : > { %4624 = vmatmul.mubr.msk.f32.gmra.mxu1 %vm2526_vm12, %v6036_v41  ;;  %4642 = vmatprep.subr.mxu1 %v5075_v50 }
 0x5af   : > { %4626 = vmatprep.mubr.msk.f32.mxu1 %vm2526_vm12, %v6038_v23  ;;  %4643 = vmatpush3.msra.mxu1 %v3726_v2  ;;  %v3916_v2 = vld [vmem:[%s6466_s11 + $0x8] sm:$0xff] }
 0x5b0   : > { %4644 = vmatprep.subr.mxu1 %v5075_v50 }
 0x5b2   : > { %4627 = vmatmul.mubr.msk.f32.gmra.mxu1 %vm2526_vm12, %v6044_v32 }
 0x5b3   : > { %4629 = vmatprep.mubr.msk.f32.mxu1 %vm2526_vm12, %v6046_v24 }
 0x5b6   : > { %4630 = vmatmul.mubr.msk.f32.gmra.mxu1 %vm2526_vm12, %v6052_v26 }
 0x5b7   : > { %4656 = vmatprep.mubr.msk.f32.mxu1 %vm5077_vm13, %v5075_v50 }
 0x662   : > { %v6231_v59 = vpop.f32.mrf.mxu1 }
 0x664   : > { %v6233_v38 = vpop.f32.mrf.mxu1 }
 0x666   : > { %v4619_v45 = vpop.f32.mrf.mxu1 }
 0x668   : > { %v3265_v34 = vpop.f32.mrf.mxu1 }
 0x66a   : > { %v4622_v41 = vpop.f32.mrf.mxu1 }
 0x66b   : > { %v3319_v30 = vmul.f32 0.001953125, %v4622_v41  ;;  %v3316_v41 = vmul.f32 0.001953125, %v3265_v34  ;;  %v3536_v34 = vld [vmem:[%s6460_s5 + $0x30] sm:$0xff] }
 0x66c   : > { %v3275_v23 = vpop.f32.mrf.mxu1 }
 0x66d   : > { %v3318_v62 = vmul.f32 0.001953125, %v3275_v23  ;;  %v3331_v53 = vadd.f32 1e-05, %v3319_v30  ;;  %v3725_v23 = vld [vmem:[%s6461_s6 + $0x28] sm:$0xff]  ;;  %v3437_v30 = vld [vmem:[%s6459_s4 + $0x18] sm:$0xff] }
 0x66e   : > { %v4625_v32 = vpop.f32.mrf.mxu1  ;;  %4645 = vmatpush3.msra.mxu1 %v3725_v23 }
 0x66f   : > { %v3321_v24 = vmul.f32 0.001953125, %v4625_v32  ;;  %v3330_v31 = vadd.f32 1e-05, %v3318_v62  ;;  %v3317_v32 = vmul.f32 0.001953125, %v4619_v45  ;;  %4646 = vmatprep.subr.mxu1 %v5075_v50  ;;  %v3723_v45 = vld [vmem:[%s6461_s6 + $0x18] sm:$0xff] }
 0x670   : > { %v3285_v26 = vpop.f32.mrf.mxu1 }
 0x671   : > { %v3333_v1 = vadd.f32 1e-05, %v3321_v24  ;;  %v3320_v52 = vmul.f32 0.001953125, %v3285_v26  ;;  %v3724_v24 = vld [vmem:[%s6461_s6 + $0x20] sm:$0xff] }
 0x672   : > { %v4628_v40 = vpop.f32.mrf.mxu1  ;;  %4647 = vmatpush3.msra.mxu1 %v3724_v24 }
 0x673   : > { %4824 = vrsqrt.f32 %v3333_v1  ;;  %v3332_v11 = vadd.f32 1e-05, %v3320_v52  ;;  %v3323_v15 = vmul.f32 0.001953125, %v4628_v40  ;;  %v3328_v1 = vadd.f32 1e-05, %v3316_v41  ;;  %4648 = vmatprep.subr.mxu1 %v5075_v50  ;;  %v3537_v52 = vld [vmem:[%s6460_s5 + $0x38] sm:$0xff]  ;;  %v3600_v41 = vpop.permute.xlu1 %3599 }
 0x674   : > { %v3295_v36 = vpop.f32.mrf.mxu1  ;;  %4649 = vmatpush3.msra.mxu1 %v3723_v45  ;;  %v3329_v40 = vadd.f32 1e-05, %v3317_v32 }
 0x675   : > { %4826 = vrsqrt.f32 %v3332_v11  ;;  %v3335_v21 = vadd.f32 1e-05, %v3323_v15  ;;  %v3322_v0 = vmul.f32 0.001953125, %v3295_v36  ;;  %4650 = vmatprep.subr.mxu1 %v5075_v50  ;;  %v3722_v11 = vld [vmem:[%s6461_s6 + $0x10] sm:$0xff]  ;;  %v3721_v15 = vld [vmem:[%s6461_s6 + $0x8] sm:$0xff] }
 0x676   : > { %v4631_v7 = vpop.f32.mrf.mxu1  ;;  %4651 = vmatpush3.msra.mxu1 %v3722_v11 }
 0x677   : > { %4828 = vrsqrt.f32 %v3335_v21  ;;  %v3334_v14 = vadd.f32 1e-05, %v3322_v0  ;;  %v3325_v4 = vmul.f32 0.001953125, %v4631_v7  ;;  %4652 = vmatprep.subr.mxu1 %v5075_v50  ;;  %v3720_v21 = vld [vmem:[%s6461_s6] sm:$0xff]  ;;  %v3494_v32 = vpop.permute.xlu1 %3493 }
 0x678   : > { %v3305_v63 = vpop.f32.mrf.mxu1  ;;  %4653 = vmatpush3.msra.mxu1 %v3721_v15  ;;  %v3438_v7 = vld [vmem:[%s6459_s4 + $0x20] sm:$0xff] }
 0x679   : > { %4830 = vrsqrt.f32 %v3334_v14  ;;  %v3337_v6 = vadd.f32 1e-05, %v3325_v4  ;;  %v3324_v28 = vmul.f32 0.001953125, %v3305_v63  ;;  %4654 = vmatprep.subr.mxu1 %v5075_v50  ;;  %v3314_v14 = vmul.f32 0.001953125, %v6233_v38  ;;  %v3439_v4 = vld [vmem:[%s6459_s4 + $0x28] sm:$0xff] }
 0x67a   : > { %4655 = vmatpush3.msra.mxu1 %v3720_v21  ;;  %v3315_v63 = vmul.f32 0.001953125, %v6231_v59  ;;  %v3436_v59 = vld [vmem:[%s6459_s4 + $0x10] sm:$0xff] }
 0x67b   : > { %4832 = vrsqrt.f32 %v3337_v6  ;;  %v3336_v9 = vadd.f32 1e-05, %v3324_v28  ;;  %v3534_v6 = vld [vmem:[%s6460_s5 + $0x20] sm:$0xff]  ;;  %v3326_v28 = vadd.f32 1e-05, %v3314_v14 }
 0x67c   : > { %v3327_v62 = vadd.f32 1e-05, %v3315_v63 }
 0x67d   : > { %4834 = vrsqrt.f32 %v3336_v9  ;;  %v3535_v9 = vld [vmem:[%s6460_s5 + $0x28] sm:$0xff] }
 0x67e   : > { %4836 = vrsqrt.f32 %v3330_v31 }
 0x67f   : > { %4838 = vrsqrt.f32 %v3331_v53  ;;  %v3434_v53 = vld [vmem:[%s6459_s4] sm:$0xff] }
 0x680   : > { %v4825_v20 = vpop.eup %4824  ;;  %4840 = vrsqrt.f32 %v3328_v1 }
 0x681   : > { %3387 = vperm.xlu1 %4780, %v4825_v20   ;;  %4842 = vrsqrt.f32 %v3329_v40  ;;  %v3533_v20 = vld [vmem:[%s6460_s5 + $0x18] sm:$0xff] }
 0x682   : > { %v4827_v3 = vpop.eup %4826  ;;  %4844 = vrsqrt.f32 %v3326_v28 }
 0x683   : > { %3382 = vperm.xlu0 %4781, %v4827_v3   ;;  %4846 = vrsqrt.f32 %v3327_v62 }
 0x684   : > { %v4829_v17 = vpop.eup %4828 }
 0x685   : > { %3397 = vperm.xlu1 %4780, %v4829_v17   ;;  %v3915_v17 = vld [vmem:[%s6466_s11] sm:$0xff] }
 0x686   : > { %v4831_v48 = vpop.eup %4830 }
 0x687   : > { %3392 = vperm.xlu0 %4781, %v4831_v48   ;;  %v3530_v48 = vld [vmem:[%s6460_s5] sm:$0xff] }
 0x688   : > { %v4833_v33 = vpop.eup %4832 }
 0x689   : > { %3407 = vperm.xlu1 %4780, %v4833_v33   ;;  %v5076_v33 = vmov 0.00390625  }
 0x68a   : > { %v4835_v26 = vpop.eup %4834  ;;  %3714 = vmatprep.mubr.f32.mxu0 %v5076_v33 }
 0x68b   : > { %3478 = vperm.xlu0 %4781, %v3440_v56   ;;  %v4837_v36 = vpop.eup %4836  ;;  %v3504_v56 = vpop.permute.xlu0 %3503 }
 0x68c   : > { %v4839_v0 = vpop.eup %4838 }
 0x68d   : > { %3402 = vperm.xlu1 %4780, %v4835_v26   ;;  %v4841_v38 = vpop.eup %4840  ;;  %v3590_v26 = vpop.permute.xlu1 %3589 }
 0x68e   : > { %v4843_v39 = vpop.eup %4842 }
 0x68f   : > { %3574 = vperm.xlu0 %4781, %v3536_v34   ;;  %v4845_v31 = vpop.eup %4844  ;;  %v3499_v23 = vpop.permute.xlu0 %3498 }
 0x690   : > { %v4847_v3 = vpop.eup %4846 }
 0x691   : > { %3579 = vperm.xlu1 %4780, %v3537_v52   ;;  %v3484_v1 = vpop.permute.xlu1 %3483 }
 0x693   : > { %3372 = vperm.xlu0 %4781, %v4837_v36   ;;  %v3595_v24 = vpop.permute.xlu0 %3594 }
 0x695   : > { %3377 = vperm.xlu1 %4780, %v4839_v0  }
 0x697   : > { %3468 = vperm.xlu0 %4781, %v3438_v7   ;;  %v3489_v34 = vpop.permute.xlu0 %3488 }
 0x699   : > { %3473 = vperm.xlu1 %4780, %v3439_v4  }
 0x69b   : > { %3564 = vperm.xlu0 %4781, %v3534_v6   ;;  %v3585_v45 = vpop.permute.xlu0 %3584 }
 0x69d   : > { %3569 = vperm.xlu1 %4780, %v3535_v9  }
 0x69f   : > { %3362 = vperm.xlu0 %4781, %v4841_v38  }
 0x6a1   : > { %3367 = vperm.xlu1 %4780, %v4843_v39  }
 0x6a3   : > { %3458 = vperm.xlu0 %4781, %v3436_v59  }
 0x6a5   : > { %3463 = vperm.xlu1 %4780, %v3437_v30  }
 0x6a7   : > { %3554 = vperm.xlu0 %4781, %v3532_v25  }
 0x6a9   : > { %3559 = vperm.xlu1 %4780, %v3533_v20  }
 0x6ab   : > { %3352 = vperm.xlu0 %4781, %v4845_v31  }
 0x6ad   : > { %3357 = vperm.xlu1 %4780, %v4847_v3  }
 0x6af   : > { %3448 = vperm.xlu0 %4781, %v3434_v53  }
 0x6b1   : > { %3453 = vperm.xlu1 %4780, %v3435_v16  }
 0x6b3   : > { %3919 = vperm.xlu0 %4781, %v3915_v17  }
 0x6b5   : > { %3549 = vperm.xlu1 %4780, %v3531_v57  }
 0x6b9   : > { %3544 = vperm.xlu1 %4780, %v3530_v48  }
 0x6bd   : > { %3924 = vperm.xlu1 %4780, %v3916_v2  }
 0x6fc   : > { %v3388_v52 = vpop.permute.xlu1 %3387 }
 0x6fd   : > { %v3424_v21 = vmul.f32 %v3388_v52, %v6098_v51  ;;  %v3425_v0 = vmul.f32 %v3388_v52, %v6101_v12 }
 0x6fe   : > { %v3383_v40 = vpop.permute.xlu0 %3382 }
 0x6ff   : > { %v3423_v51 = vmul.f32 %v3383_v40, %v6111_v58  ;;  %v3520_v25 = vmul.f32 %v3484_v1, %v3424_v21 }
 0x700   : > { %v3398_v11 = vpop.permute.xlu1 %3397 }
 0x701   : > { %v3428_v15 = vmul.f32 %v3398_v11, %v6078_v43  ;;  %v3429_v36 = vmul.f32 %v3398_v11, %v6081_v47  ;;  %v3422_v47 = vmul.f32 %v3383_v40, %v6108_v37 }
 0x702   : > { %v3393_v7 = vpop.permute.xlu0 %3392 }
 0x703   : > { %v3524_v14 = vmul.f32 %v3494_v32, %v3428_v15  ;;  %v3525_v4 = vmul.f32 %v3494_v32, %v3429_v36  ;;  %v3426_v63 = vmul.f32 %v3393_v7, %v6088_v22  ;;  %v3427_v6 = vmul.f32 %v3393_v7, %v6091_v42 }
 0x704   : > { %v3408_v28 = vpop.permute.xlu1 %3407  ;;  %v3521_v42 = vmul.f32 %v3484_v1, %v3425_v0 }
 0x705   : > { %v6338_v9 = vadd.f32 %v3590_v26, %v3524_v14  ;;  %v3522_v62 = vmul.f32 %v3489_v34, %v3426_v63  ;;  %v3523_v38 = vmul.f32 %v3489_v34, %v3427_v6  ;;  %v3432_v43 = vmul.f32 %v3408_v28, %v6058_v29 }
 0x706   : > { %v3433_v12 = vmul.f32 %v3408_v28, %v6061_v61  ;;  %v3479_v39 = vpop.permute.xlu0 %3478  ;;  %v3621_v59 = vadd.f32 %v3590_v26, %v3525_v4 }
 0x707   : > { %v6344_v30 = vadd.f32 %v3585_v45, %v3522_v62  ;;  %v3528_v22 = vmul.f32 %v3504_v56, %v3432_v43  ;;  %v3644_v20 = vmax.f32 %v6338_v9, 0.0  ;;  %v3518_v3 = vmul.f32 %v3479_v39, %v3422_v47 }
 0x708   : > { %v3529_v31 = vmul.f32 %v3504_v56, %v3433_v12  ;;  %v3403_v53 = vpop.permute.xlu1 %3402  ;;  %v3619_v16 = vadd.f32 %v3585_v45, %v3523_v38  ;;  %v3519_v17 = vmul.f32 %v3479_v39, %v3423_v51  ;;  %v3645_v2 = vmax.f32 %v3621_v59, 0.0 }
 0x709   : > { %v3642_v29 = vmax.f32 %v6344_v30, 0.0  ;;  %v3624_v37 = vadd.f32 %v3600_v41, %v3528_v22  ;;  %v3430_v58 = vmul.f32 %v3403_v53, %v6068_v5  ;;  %v3431_v61 = vmul.f32 %v3403_v53, %v6071_v35 }
 0x70a   : > { %v3575_v57 = vpop.permute.xlu0 %3574  ;;  %v3625_v48 = vadd.f32 %v3600_v41, %v3529_v31  ;;  %v3643_v32 = vmax.f32 %v3619_v16, 0.0 }
 0x70b   : > { %v3648_v26 = vmax.f32 %v3624_v37, 0.0  ;;  %v3526_v34 = vmul.f32 %v3499_v23, %v3430_v58  ;;  %v3527_v1 = vmul.f32 %v3499_v23, %v3431_v61  ;;  %v6350_v52 = vadd.f32 %v3575_v57, %v3518_v3 }
 0x70c   : > { %v3615_v56 = vadd.f32 %v3575_v57, %v3519_v17  ;;  %v3580_v40 = vpop.permute.xlu1 %3579  ;;  %v3649_v45 = vmax.f32 %v3625_v48, 0.0  ;;  %v6352_v11 = vpack.c.bf16 %v3645_v2, %v3643_v32  ;;  %v6354_v15 = vpack.c.bf16 %v3644_v20, %v3642_v29 }
 0x70d   : > { %v3622_v5 = vadd.f32 %v3595_v24, %v3526_v34  ;;  %v3616_v36 = vadd.f32 %v3580_v40, %v3520_v25  ;;  %v3617_v35 = vadd.f32 %v3580_v40, %v3521_v42  ;;  %v3623_v41 = vadd.f32 %v3595_v24, %v3527_v1 }
 0x70e   : > { %3658 = vmatprep.subr.mxu0 %v3649_v45  ;;  %v3373_v21 = vpop.permute.xlu0 %3372  ;;  %v3638_v7 = vmax.f32 %v6350_v52, 0.0  ;;  %v3639_v4 = vmax.f32 %v3615_v56, 0.0 }
 0x70f   : > { %v3646_v0 = vmax.f32 %v3622_v5, 0.0  ;;  %v3640_v14 = vmax.f32 %v3616_v36, 0.0  ;;  %v3641_v23 = vmax.f32 %v3617_v35, 0.0  ;;  %3659 = vmatpush1.xpose.msra.mxu0 %v3648_v26  ;;  %v3647_v6 = vmax.f32 %v3623_v41, 0.0 }
 0x710   : > { %v3378_v63 = vpop.permute.xlu1 %3377  ;;  %v3418_v24 = vmul.f32 %v3373_v21, %v6128_v49  ;;  %v3419_v47 = vmul.f32 %v3373_v21, %v6131_v19 }
 0x711   : > { %v6357_v28 = vpack.c.bf16 %v3640_v14, %v3638_v7  ;;  %v6359_v9 = vpack.c.bf16 %v3648_v26, %v3646_v0  ;;  %3660 = vmatprep.subr.mxu0 %v3647_v6  ;;  %v3914_v38 = vpack.c.bf16 %v3649_v45, %v3647_v6  ;;  %v6361_v43 = vpack.c.bf16 %v3641_v23, %v3639_v4 }
 0x712   : > { %v3469_v62 = vpop.permute.xlu0 %3468  ;;  %v3420_v12 = vmul.f32 %v3378_v63, %v6118_v10  ;;  %v3421_v39 = vmul.f32 %v3378_v63, %v6121_v54 }
 0x713   : > { %3661 = vmatpush1.xpose.msra.mxu0 %v3646_v0  ;;  %3934 = vmatprep.subr.bf16.mxu1 %v3914_v38  ;;  %v3514_v59 = vmul.f32 %v3469_v62, %v3418_v24  ;;  %v3515_v30 = vmul.f32 %v3469_v62, %v3419_v47 }
 0x714   : > { %3662 = vmatprep.subr.mxu0 %v3645_v2  ;;  %v3474_v51 = vpop.permute.xlu1 %3473 }
 0x715   : > { %v3516_v25 = vmul.f32 %v3474_v51, %v3420_v12  ;;  %v3517_v42 = vmul.f32 %v3474_v51, %v3421_v39 }
 0x716   : > { %v3565_v22 = vpop.permute.xlu0 %3564 }
 0x717   : > { %3663 = vmatpush1.xpose.msra.mxu0 %v3644_v20  ;;  %v3610_v31 = vadd.f32 %v3565_v22, %v3514_v59  ;;  %v3611_v3 = vadd.f32 %v3565_v22, %v3515_v30 }
 0x718   : > { %3664 = vmatprep.subr.mxu0 %v3643_v32  ;;  %v3570_v49 = vpop.permute.xlu1 %3569 }
 0x719   : > { %v3612_v53 = vadd.f32 %v3570_v49, %v3516_v25  ;;  %v3613_v19 = vadd.f32 %v3570_v49, %v3517_v42  ;;  %v3634_v37 = vmax.f32 %v3610_v31, 0.0  ;;  %v3635_v58 = vmax.f32 %v3611_v3, 0.0 }
 0x71a   : > { %v3363_v16 = vpop.permute.xlu0 %3362 }
 0x71b   : > { %v3636_v61 = vmax.f32 %v3612_v53, 0.0  ;;  %v3637_v17 = vmax.f32 %v3613_v19, 0.0  ;;  %3665 = vmatpush1.xpose.msra.mxu0 %v3642_v29  ;;  %v3414_v20 = vmul.f32 %v3363_v16, %v6158_v8  ;;  %v3415_v2 = vmul.f32 %v3363_v16, %v6161_v55 }
 0x71c   : > { %3666 = vmatprep.subr.mxu0 %v3641_v23  ;;  %v3368_v10 = vpop.permute.xlu1 %3367  ;;  %v6527_v19 = vmov 0  }
 0x71d   : > { %v6367_v54 = vpack.c.bf16 %v3636_v61, %v3634_v37  ;;  %v6369_v57 = vpack.c.bf16 %v3637_v17, %v3635_v58  ;;  %v3416_v26 = vmul.f32 %v3368_v10, %v6144_v46  ;;  %v3417_v34 = vmul.f32 %v3368_v10, %v6147_v44 }
 0x71e   : > { %v3459_v48 = vpop.permute.xlu0 %3458 }
 0x71f   : > { %3667 = vmatpush1.xpose.msra.mxu0 %v3640_v14  ;;  %v3510_v1 = vmul.f32 %v3459_v48, %v3414_v20  ;;  %v3511_v29 = vmul.f32 %v3459_v48, %v3415_v2  ;;  %v3893_v48 = vld [vmem:[%s6465_s10] sm:$0xff]  ;;  %v3894_v20 = vld [vmem:[%s6465_s10 + $0x8] sm:$0xff] }
 0x720   : > { %3668 = vmatprep.subr.mxu0 %v3639_v4  ;;  %v3464_v32 = vpop.permute.xlu1 %3463  ;;  %v6528_v2 = vld [vmem:[#allocation19_spill] sm:$0xff] }
 0x721   : > { %v3512_v56 = vmul.f32 %v3464_v32, %v3416_v26  ;;  %v3513_v40 = vmul.f32 %v3464_v32, %v3417_v34 }
 0x722   : > { %v3555_v52 = vpop.permute.xlu0 %3554 }
 0x723   : > { %3669 = vmatpush1.xpose.msra.mxu0 %v3638_v7  ;;  %v3606_v45 = vadd.f32 %v3555_v52, %v3510_v1  ;;  %v3607_v5 = vadd.f32 %v3555_v52, %v3511_v29 }
 0x724   : > { %3670 = vmatprep.subr.mxu0 %v3637_v17  ;;  %v3560_v36 = vpop.permute.xlu1 %3559 }
 0x725   : > { %v3608_v8 = vadd.f32 %v3560_v36, %v3512_v56  ;;  %v3609_v35 = vadd.f32 %v3560_v36, %v3513_v40  ;;  %v3630_v55 = vmax.f32 %v3606_v45, 0.0  ;;  %v3631_v21 = vmax.f32 %v3607_v5, 0.0 }
 0x726   : > { %v3353_v23 = vpop.permute.xlu0 %3352 }
 0x727   : > { %v3632_v41 = vmax.f32 %v3608_v8, 0.0  ;;  %v3633_v0 = vmax.f32 %v3609_v35, 0.0  ;;  %3671 = vmatpush1.xpose.msra.mxu0 %v3636_v61  ;;  %v3410_v47 = vmul.f32 %v3353_v23, %v6168_v18  ;;  %v3411_v51 = vmul.f32 %v3353_v23, %v6171_v60 }
 0x728   : > { %3672 = vmatprep.subr.mxu0 %v3635_v58  ;;  %v3358_v46 = vpop.permute.xlu1 %3357 }
 0x729   : > { %v3905_v44 = vpack.c.bf16 %v3632_v41, %v3630_v55  ;;  %v3906_v14 = vpack.c.bf16 %v3633_v0, %v3631_v21  ;;  %v3412_v7 = vmul.f32 %v3358_v46, %v6138_v27  ;;  %v3413_v63 = vmul.f32 %v3358_v46, %v6141_v13 }
 0x72a   : > { %v3449_v38 = vpop.permute.xlu0 %3448 }
 0x72b   : > { %3673 = vmatpush1.xpose.msra.mxu0 %v3634_v37  ;;  %v3506_v59 = vmul.f32 %v3449_v38, %v3410_v47  ;;  %v3507_v30 = vmul.f32 %v3449_v38, %v3411_v51 }
 0x72c   : > { %3674 = vmatprep.subr.mxu0 %v3633_v0  ;;  %v3454_v4 = vpop.permute.xlu1 %3453 }
 0x72d   : > { %v3508_v6 = vmul.f32 %v3454_v4, %v3412_v7  ;;  %v3509_v62 = vmul.f32 %v3454_v4, %v3413_v63 }
 0x72e   : > { %v3920_v29 = vpop.permute.xlu0 %3919 }
 0x72f   : > { %3675 = vmatpush1.xpose.msra.mxu0 %v3632_v41 }
 0x730   : > { %3676 = vmatprep.subr.mxu0 %v3631_v21  ;;  %v3550_v24 = vpop.permute.xlu1 %3549 }
 0x731   : > { %v3604_v12 = vadd.f32 %v3550_v24, %v3508_v6  ;;  %v3605_v39 = vadd.f32 %v3550_v24, %v3509_v62 }
 0x733   : > { %v3628_v22 = vmax.f32 %v3604_v12, 0.0  ;;  %v3629_v25 = vmax.f32 %v3605_v39, 0.0  ;;  %3677 = vmatpush1.xpose.msra.mxu0 %v3630_v55 }
 0x734   : > { %v3545_v27 = vpop.permute.xlu1 %3544 }
 0x735   : > { %v3602_v42 = vadd.f32 %v3545_v27, %v3506_v59  ;;  %v3603_v13 = vadd.f32 %v3545_v27, %v3507_v30  ;;  %3678 = vmatprep.subr.mxu0 %v3629_v25 }
 0x737   : > { %v3626_v31 = vmax.f32 %v3602_v42, 0.0  ;;  %v3627_v3 = vmax.f32 %v3603_v13, 0.0  ;;  %3679 = vmatpush1.xpose.msra.mxu0 %v3628_v22 }
 0x738   : > { %v3925_v5 = vpop.permute.xlu1 %3924 }
 0x739   : > { %v3903_v49 = vpack.c.bf16 %v3628_v22, %v3626_v31  ;;  %3680 = vmatprep.subr.mxu0 %v3627_v3  ;;  %v3904_v53 = vpack.c.bf16 %v3629_v25, %v3627_v3 }
 0x73b   : > { %3681 = vmatpush1.xpose.msra.mxu0 %v3626_v31 }
 0x73c   : > { %4659 = vmatprep.subr.mxu0 %v5075_v50 }
 0x73e   : > { %3715 = vmatmul.mubr.f32.vlgmr.msra.gmra.mxu0 %v5076_v33  ;;  %v3732_v33 = vld [vmem:[%s6462_s7] sm:$0x1] }
 0x73f   : > { %4661 = vmatprep.mubr.msk.f32.mxu0 %vm5077_vm13, %v5075_v50  ;;  %v3807_v50 = vld [vmem:[#allocation8] sm:$0x3f] }
 0x740   : > { %4660 = vmatpush3.msk.msra.mxu0 %vm3813_vm14, %v3807_v50 }
 0x7fe   : > { %v3716_v18 = vpop.f32.mrf.mxu0 }
 0x7ff   : > { %4657 = vmatmul.mubr.msk.f32.vlgmr.msra.gmra.mxu1 %vm2526_vm12, %v3716_v18 }
 0x800   : > { %3935 = vmatpush1.bf16.msra.mxu1 %v6359_v9  ;;  %v3718_v60 = vpop.f32.mrf.mxu0  ;;  %3962 = vmatprep.mubr.bf16.mxu1 %v6527_v19 }
 0x801   : > { %3936 = vmatprep.subr.bf16.mxu1 %v6352_v11 }
 0x804   : > { %3937 = vmatpush1.bf16.msra.mxu1 %v6354_v15 }
 0x805   : > { %3938 = vmatprep.subr.bf16.mxu1 %v6361_v43  ;;  %v3808_v43 = vld [vmem:[#allocation9] sm:$0x1] }
 0x808   : > { %3939 = vmatpush1.bf16.msra.mxu1 %v6357_v28 }
 0x809   : > { %3940 = vmatprep.subr.bf16.mxu1 %v6369_v57 }
 0x80c   : > { %3941 = vmatpush1.bf16.msra.mxu1 %v6367_v54 }
 0x80d   : > { %3942 = vmatprep.subr.bf16.mxu1 %v3906_v14 }
 0x810   : > { %3943 = vmatpush1.bf16.msra.mxu1 %v3905_v44 }
 0x811   : > { %3944 = vmatprep.subr.bf16.mxu1 %v3904_v53 }
 0x814   : > { %3945 = vmatpush1.bf16.msra.mxu1 %v3903_v49 }
 0x8bf   : > { %v3802_v11 = vpop.f32.mrf.mxu1 }
 0x8c0   : > { %v3803_v15 = vadd.f32 %v3802_v11, %v3732_v33 }
 0x8c1   : > { %v4658_v9 = vpop.f32.mrf.mxu1 }
 0x8c2   : > { %v3806_v28 = vmax.f32 %v3803_v15, 0.0 }
 0x8c4   : > { %4662 = vmatmul.mubr.msk.f32.vlgmr.msra.gmra.mxu0 %vm3809_vm15, %v3806_v28 }
 0x984   : > { %v3883_v16 = vpop.f32.mrf.mxu0 }
 0x985   : > { %v3884_v37 = vadd.f32 %v3883_v16, %v3808_v43 }
 0x986   : > { %v4663_v58 = vpop.f32.mrf.mxu0 }
 0x987   : > { %v4344_v61 = vmul.f32 -1.442695, %v3884_v37 }
 0x989   : > { %4848 = vpow2.f32 %v4344_v61 }
 0x996   : > { %v4849_v17 = vpop.eup %4848 }
 0x997   : > { %v3890_v10 = vadd.f32 1.0, %v4849_v17 }
 0x999   : > { %4850 = vrcp.f32 %v3890_v10 }
 0x9a6   : > { %v4851_v54 = vpop.eup %4850 }
 0x9a7   : > { %v3895_v57 = vadd.f32 1.0, %v4851_v54 }
 0x9a9   : > { %v3899_v32 = vrot.slane %v3895_v57, %v6528_v2 }
 0x9ab   : > { %v3900_v26 = vmul.f32 %v3899_v32, %v3893_v48  ;;  %v3901_v34 = vmul.f32 %v3899_v32, %v3894_v20 }
 0x9ad   : > { %v3902_v1 = vpack.c.bf16 %v3901_v34, %v3900_v26 }
 0x9af   : > { %4345 = vmatmul.mubr.msk.bf16.vlgmr.msra.gmra.mxu1 %vm2526_vm12, %v3902_v1 }
 0xa6f   : > { %v3964_v52 = vpop.f32.mrf.mxu1 }
 0xa70   : > { %v3965_v56 = vadd.f32 %v3964_v52, %v3920_v29 }
 0xa71   : > { %v3966_v40 = vpop.f32.mrf.mxu1 }
 0xa72   : > { %3973 = vst [vmem:[%s471_s18] sm:$0xff] %v3965_v56  ;;  %v3967_v45 = vadd.f32 %v3966_v40, %v3920_v29 }
 0xa73   : > { %v3968_v36 = vpop.f32.mrf.mxu1 }
 0xa74   : > { %3974 = vst [vmem:[%s471_s18 + $0x8] sm:$0xff] %v3967_v45  ;;  %v3969_v8 = vadd.f32 %v3968_v36, %v3925_v5 }
 0xa75   : > { %v3970_v35 = vpop.f32.mrf.mxu1 }
 0xa76   : > { %3975 = vst [vmem:[%s471_s18 + $0x10] sm:$0xff] %v3969_v8  ;;  %v3971_v55 = vadd.f32 %v3970_v35, %v3925_v5 }
 0xa78   : > { %3976 = vst [vmem:[%s471_s18 + $0x18] sm:$0xff] %v3971_v55 }
 0xa79   : > { %4975 = shalt.err (!%p4972_p2)
}
 0xa7a   : > { %s4976_s26 = scalar_lea.hbm %s6411_s23, 512  ;;  %s4980_s18 = scalar_lea.hbm %s6467_s12, 1024 }
 0xa7b   : > { %p4977_p13 = scmp.ne.s32.totalorder %s6411_s23, %s4976_s26  ;;  %p4981_p1 = scmp.lt.s32.totalorder %s6411_s23, %s6467_s12 }
 0xa7c   : > { %p4982_p11 = scmp.lt.s32.totalorder %s4980_s18, %s4976_s26 }
 0xa7d   : > { %p4978_p4 = pnand %p4977_p13, %p6529_p0 }
 0xa7e   : > { %p4983_p6 = por %p4982_p11, %p4981_p1 }
 0xa7f   : > { %p4979_p8 = pneg %p4978_p4 }
 0xa81   : > { %p4984_p12 = pnand %p4983_p6, %p4979_p8 }
 0xa83   : > { %4987 = shalt.err (!%p4984_p12)
}
 0xa84   : > { %s5079_s29 = smov 256  }
 0xa85   : > { %4678 = dma.vmem_to_hbm [thread:$0]  (%p6529_p0), %s6406_s2, 512, %s6411_s23, %s3978_s14, %s5079_s29, %s5079_s29, %s5048_s30  }
 0xa86 PF: > { %s6530_s16 = sld [smem:[#allocation17_spill]]  ;;  %s4006_s25 = sand.u32 1, %s5022_s21  }
 0xa87   : > { %p6532_p3 = scmp.ge.s32.totalorder %s5034_s24, 2  ;;  %s4007_s19 = scalar_lea.sflag [#allocation5], %s4006_s25 }
 0xa8c   : > { %p6531_p5 = scmp.ne.s32.totalorder %s6530_s16, 0 }
 0xa8e   : > { %p4695_p10 = pnand %p6532_p3, %p6531_p5 }
 0xa90   : > { %p4696_p7 = pneg %p4695_p10 }
 0xa92   : > { %5017 = dma.done.wait (%p4696_p7), %s4007_s19, 512  }
 0xa93   : > { %5019 = vsyncadd (%p4696_p7), %s4007_s19, 4294966784  ;;  %s6533_s17 = sld [smem:[#allocation16_spill]]  ;;  %p27_p9 = scmp.ge.s32.totalorder %s5225_s28, 4  }
 0xa94   : > { %s6534_s23 = sld [smem:[#allocation18_spill]]  ;;  %s6535_s21 = smov %s5026_s22 }
 0xa95   : > { %s6537_s24 = smov %s5225_s28  ;;  %29 = sbr.rel (!%p27_p9) target bundleno = 11 (0xb), region = 156 }
 0xa99   : > { %s6536_s22 = smov %s6533_s17 }
 0xa9a   :  { %4012 = vsyncpa [#allocation4], 1 }
 0xa9b   :  { %4014 = vsyncpa [#allocation4 + $0x1], 1 }
 0xa9c   :  { %4015 = vsyncpa [#allocation7], 1 }
 0xa9d   :  { %4016 = vsyncpa [#allocation10], 1 }
 0xa9e   :  { %4017 = vsyncpa [#allocation5], 1 }
 0xa9f   :  { %4019 = vsyncpa [#allocation5 + $0x1], 1 }

</bundles_post_ra>
